<compile_context>
chip_gen: v6e
topology: v6e:2x2x1
jax: 0.10.0
libtpu: 0.0.40
codegen_flags: <defaults>
</compile_context>

<pallas_src>
import jax
import jax.numpy as jnp
from jax.experimental import pallas as pl
from jax.experimental.pallas import tpu as pltpu


def _im2col_into(pcol_ref, src_pad_ref, H, W, C):
    """Scatter the 9 conv taps of a zero-padded (C, H+2, W+2) buffer into the
    im2col scratch as a (9*C, H*W) matrix (rows: tap-major, channel-minor)."""
    for kh in range(3):
        for kw in range(3):
            t = kh * 3 + kw
            patch = src_pad_ref[:, kh:kh + H, kw:kw + W].reshape(C, H * W)
            pcol_ref[t * C:(t + 1) * C, :] = patch


def basic_block_kernel(x_ref, w1_ref, s1_ref, b1_ref, w2_ref, s2_ref, b2_ref,
                       o_ref, xpad_ref, hpad_ref, pcol_ref):
    C, H, W = x_ref.shape[1], x_ref.shape[2], x_ref.shape[3]

    # --- on-chip zero padding of the input (no HBM pad materialization). ---
    # Re-zeroed every grid step so the kernel stays correct if the batch axis
    # is split across TensorCores (megacore); the cost is a few KiB of stores.
    xpad_ref[...] = jnp.zeros_like(xpad_ref)
    xpad_ref[:, 1:H + 1, 1:W + 1] = x_ref[0]

    # --- conv1 (im2col: single MXU push, K = 9*Cin) + bn1 + ReLU20 ---------
    _im2col_into(pcol_ref, xpad_ref, H, W, C)
    # The center tap (kh=1, kw=1) of conv1's im2col matrix is exactly the
    # flattened input: grab it now (before pcol is reused for conv2) and use
    # it as the residual -- avoids an extra relayout of x.
    residual = pcol_ref[4 * C:5 * C, :]
    h = jnp.dot(w1_ref[...], pcol_ref[...], preferred_element_type=jnp.float32)
    h = h * s1_ref[...] + b1_ref[...]
    h = jnp.clip(h, 0.0, 20.0)                    # ReLU20 == Hardtanh(0, 20)

    # --- intermediate activation stays in VMEM, padded for conv2's halo ----
    hpad_ref[...] = jnp.zeros_like(hpad_ref)
    hpad_ref[:, 1:H + 1, 1:W + 1] = h.reshape(C, H, W)

    # --- conv2 + bn2 + residual add + ReLU20 --------------------------------
    _im2col_into(pcol_ref, hpad_ref, H, W, C)
    y = jnp.dot(w2_ref[...], pcol_ref[...], preferred_element_type=jnp.float32)
    y = y * s2_ref[...] + b2_ref[...]
    y = jnp.clip(y + residual, 0.0, 20.0)

    o_ref[0] = y.astype(o_ref.dtype)              # (C, H*W): lane-dense store


def _fold_bn(gamma, beta, mean, var, eps=1e-5):
    scale = gamma * jax.lax.rsqrt(var + eps)
    bias = beta - mean * scale
    return scale, bias


def _pack_conv_weight(w_oihw):
    """(Cout, Cin, 3, 3) OIHW -> (Cout, 9*Cin), columns tap-major / cin-minor."""
    cout, cin = w_oihw.shape[0], w_oihw.shape[1]
    return jnp.transpose(w_oihw, (0, 2, 3, 1)).reshape(cout, 9 * cin)


def basic_block_forward(x_nchw, params, eps=1e-5):
    """Fused BasicBlock.forward (stride=1, downsample=None). NCHW in / NCHW out."""
    N, C, H, W = x_nchw.shape
    assert params["w1"].shape == (C, C, 3, 3)     # stride=1, no downsample => Cin == Cout
    assert params["w2"].shape == (C, C, 3, 3)

    w1 = _pack_conv_weight(params["w1"]).astype(jnp.float32)
    w2 = _pack_conv_weight(params["w2"]).astype(jnp.float32)
    s1, b1 = _fold_bn(params["gamma1"], params["beta1"], params["mean1"], params["var1"], eps)
    s2, b2 = _fold_bn(params["gamma2"], params["beta2"], params["mean2"], params["var2"], eps)
    s1 = s1.reshape(C, 1).astype(jnp.float32)
    b1 = b1.reshape(C, 1).astype(jnp.float32)
    s2 = s2.reshape(C, 1).astype(jnp.float32)
    b2 = b2.reshape(C, 1).astype(jnp.float32)

    flops = 2 * (2 * N * H * W * (9 * C) * C)                       # two convs
    bytes_accessed = 4 * (2 * N * C * H * W + 2 * 9 * C * C + 4 * C)

    out_flat = pl.pallas_call(
        basic_block_kernel,
        out_shape=jax.ShapeDtypeStruct((N, C, H * W), jnp.float32),
        grid=(N,),
        in_specs=[
            pl.BlockSpec((1, C, H, W), lambda n: (n, 0, 0, 0)),     # x (unpadded)
            pl.BlockSpec((C, 9 * C), lambda n: (0, 0)),             # w1 (im2col-packed)
            pl.BlockSpec((C, 1), lambda n: (0, 0)),                 # bn1 scale
            pl.BlockSpec((C, 1), lambda n: (0, 0)),                 # bn1 bias
            pl.BlockSpec((C, 9 * C), lambda n: (0, 0)),             # w2
            pl.BlockSpec((C, 1), lambda n: (0, 0)),                 # bn2 scale
            pl.BlockSpec((C, 1), lambda n: (0, 0)),                 # bn2 bias
        ],
        out_specs=pl.BlockSpec((1, C, H * W), lambda n: (n, 0, 0)),
        scratch_shapes=[
            pltpu.VMEM((C, H + 2, W + 2), jnp.float32),             # padded input
            pltpu.VMEM((C, H + 2, W + 2), jnp.float32),             # padded intermediate h
            pltpu.VMEM((9 * C, H * W), jnp.float32),                # shared im2col buffer
        ],
        compiler_params=pltpu.CompilerParams(
            dimension_semantics=("parallel",)),
        cost_estimate=pl.CostEstimate(
            flops=flops, transcendentals=0, bytes_accessed=bytes_accessed),
    )(x_nchw.astype(jnp.float32), w1, s1, b1, w2, s2, b2)

    return out_flat.reshape(N, C, H, W)


def reference_forward(x_nchw, params, eps=1e-5):
    """Pure-JAX NCHW reference for correctness checking."""
    dn = ("NCHW", "OIHW", "NCHW")

    def conv(a, w):
        return jax.lax.conv_general_dilated(
            a, w, (1, 1), "SAME", dimension_numbers=dn,
            precision=jax.lax.Precision.HIGHEST)

    def bn(a, g, b, m, v):
        g, b, m, v = (t.reshape(1, -1, 1, 1) for t in (g, b, m, v))
        return (a - m) * jax.lax.rsqrt(v + eps) * g + b

    h = conv(x_nchw, params["w1"])
    h = bn(h, params["gamma1"], params["beta1"], params["mean1"], params["var1"])
    h = jnp.clip(h, 0.0, 20.0)
    y = conv(h, params["w2"])
    y = bn(y, params["gamma2"], params["beta2"], params["mean2"], params["var2"])
    return jnp.clip(y + x_nchw, 0.0, 20.0)


if __name__ == "__main__":
    # Small deterministic problem: BasicBlock(in_channels=4, channels=4)
    N, C, H, W = 2, 4, 16, 16
    key = jax.random.PRNGKey(0)
    kx, kw1, kw2, kbn = jax.random.split(key, 4)

    x = jax.random.normal(kx, (N, C, H, W), dtype=jnp.float32)

    kb = jax.random.split(kbn, 8)
    params = {
        # PyTorch nn.Conv2d weight layout: (Cout, Cin, 3, 3)
        "w1": 0.2 * jax.random.normal(kw1, (C, C, 3, 3), dtype=jnp.float32),
        "w2": 0.2 * jax.random.normal(kw2, (C, C, 3, 3), dtype=jnp.float32),
        "gamma1": 1.0 + 0.1 * jax.random.normal(kb[0], (C,), dtype=jnp.float32),
        "beta1": 0.1 * jax.random.normal(kb[1], (C,), dtype=jnp.float32),
        "mean1": 0.1 * jax.random.normal(kb[2], (C,), dtype=jnp.float32),
        "var1": 1.0 + 0.1 * jnp.abs(jax.random.normal(kb[3], (C,), dtype=jnp.float32)),
        "gamma2": 1.0 + 0.1 * jax.random.normal(kb[4], (C,), dtype=jnp.float32),
        "beta2": 0.1 * jax.random.normal(kb[5], (C,), dtype=jnp.float32),
        "mean2": 0.1 * jax.random.normal(kb[6], (C,), dtype=jnp.float32),
        "var2": 1.0 + 0.1 * jnp.abs(jax.random.normal(kb[7], (C,), dtype=jnp.float32)),
    }

    out = jax.block_until_ready(basic_block_forward(x, params))
    ref = jax.block_until_ready(reference_forward(x, params))

    assert out.shape == (N, C, H, W), out.shape
    err = float(jnp.max(jnp.abs(out - ref)))
    assert err < 1e-4, err
    print("KERNEL_OK")
</pallas_src>

<mosaic_0001>
module attributes {stable_mosaic.version = 11 : i64} {
  func.func @basic_block_kernel(%arg0: i32, %arg1: memref<1x4x16x16xf32, #tpu.memory_space<vmem>>, %arg2: memref<4x36xf32, #tpu.memory_space<vmem>>, %arg3: memref<4x1xf32, #tpu.memory_space<vmem>>, %arg4: memref<4x1xf32, #tpu.memory_space<vmem>>, %arg5: memref<4x36xf32, #tpu.memory_space<vmem>>, %arg6: memref<4x1xf32, #tpu.memory_space<vmem>>, %arg7: memref<4x1xf32, #tpu.memory_space<vmem>>, %arg8: memref<1x4x256xf32, #tpu.memory_space<vmem>>, %arg9: memref<4x18x18xf32, #tpu.memory_space<vmem>>, %arg10: memref<4x18x18xf32, #tpu.memory_space<vmem>>, %arg11: memref<36x256xf32, #tpu.memory_space<vmem>>) attributes {dimension_semantics = [#tpu.dimension_semantics<parallel>], iteration_bounds = array<i64: 2>, scalar_prefetch = 0 : i64, scratch_operands = 3 : i64, tpu.core_type = #tpu.core_type<tc>, window_params = [{transform_indices = @transform_0, window_bounds = array<i64: 1, 4, 16, 16>}, {pipeline_mode = #tpu.pipeline_mode<synchronous>, transform_indices = @transform_1, window_bounds = array<i64: 4, 36>}, {pipeline_mode = #tpu.pipeline_mode<synchronous>, transform_indices = @transform_2, window_bounds = array<i64: 4, 1>}, {pipeline_mode = #tpu.pipeline_mode<synchronous>, transform_indices = @transform_3, window_bounds = array<i64: 4, 1>}, {pipeline_mode = #tpu.pipeline_mode<synchronous>, transform_indices = @transform_4, window_bounds = array<i64: 4, 36>}, {pipeline_mode = #tpu.pipeline_mode<synchronous>, transform_indices = @transform_5, window_bounds = array<i64: 4, 1>}, {pipeline_mode = #tpu.pipeline_mode<synchronous>, transform_indices = @transform_6, window_bounds = array<i64: 4, 1>}, {transform_indices = @transform_7, window_bounds = array<i64: 1, 4, 256>}]} {
    %cst = arith.constant 0.000000e+00 : f32
    %0 = vector.broadcast %cst : f32 to vector<4x18x18xf32>
    %c0 = arith.constant 0 : index
    %c0_0 = arith.constant 0 : index
    %c0_1 = arith.constant 0 : index
    %1 = vector.load %arg9[%c0, %c0_0, %c0_1] : memref<4x18x18xf32, #tpu.memory_space<vmem>>, vector<4x18x18xf32>
    tpu.vector_store %arg9[%c0, %c0_0, %c0_1], %0 {strides = array<i32>} : memref<4x18x18xf32, #tpu.memory_space<vmem>>, vector<4x18x18xf32>,
    %c0_2 = arith.constant 0 : index
    %c0_3 = arith.constant 0 : index
    %c0_4 = arith.constant 0 : index
    %c0_5 = arith.constant 0 : index
    %2 = vector.load %arg1[%c0_2, %c0_3, %c0_4, %c0_5] : memref<1x4x16x16xf32, #tpu.memory_space<vmem>>, vector<1x4x16x16xf32>
    %3 = vector.shape_cast %2 : vector<1x4x16x16xf32> to vector<4x16x16xf32>
    %c0_6 = arith.constant 0 : index
    %c1 = arith.constant 1 : index
    %c1_7 = arith.constant 1 : index
    %4 = vector.load %arg9[%c0_6, %c1, %c1_7] : memref<4x18x18xf32, #tpu.memory_space<vmem>>, vector<4x16x16xf32>
    tpu.vector_store %arg9[%c0_6, %c1, %c1_7], %3 {strides = array<i32>} : memref<4x18x18xf32, #tpu.memory_space<vmem>>, vector<4x16x16xf32>,
    %c0_8 = arith.constant 0 : index
    %c0_9 = arith.constant 0 : index
    %c0_10 = arith.constant 0 : index
    %5 = vector.load %arg9[%c0_8, %c0_9, %c0_10] : memref<4x18x18xf32, #tpu.memory_space<vmem>>, vector<4x16x16xf32>
    %6 = vector.shape_cast %5 : vector<4x16x16xf32> to vector<4x256xf32>
    %c0_11 = arith.constant 0 : index
    %c0_12 = arith.constant 0 : index
    %7 = vector.load %arg11[%c0_11, %c0_12] : memref<36x256xf32, #tpu.memory_space<vmem>>, vector<4x256xf32>
    tpu.vector_store %arg11[%c0_11, %c0_12], %6 {strides = array<i32>} : memref<36x256xf32, #tpu.memory_space<vmem>>, vector<4x256xf32>,
    %c0_13 = arith.constant 0 : index
    %c0_14 = arith.constant 0 : index
    %c1_15 = arith.constant 1 : index
    %8 = vector.load %arg9[%c0_13, %c0_14, %c1_15] : memref<4x18x18xf32, #tpu.memory_space<vmem>>, vector<4x16x16xf32>
    %9 = vector.shape_cast %8 : vector<4x16x16xf32> to vector<4x256xf32>
    %c4 = arith.constant 4 : index
    %c0_16 = arith.constant 0 : index
    %10 = vector.load %arg11[%c4, %c0_16] : memref<36x256xf32, #tpu.memory_space<vmem>>, vector<4x256xf32>
    tpu.vector_store %arg11[%c4, %c0_16], %9 {strides = array<i32>} : memref<36x256xf32, #tpu.memory_space<vmem>>, vector<4x256xf32>,
    %c0_17 = arith.constant 0 : index
    %c0_18 = arith.constant 0 : index
    %c2 = arith.constant 2 : index
    %11 = vector.load %arg9[%c0_17, %c0_18, %c2] : memref<4x18x18xf32, #tpu.memory_space<vmem>>, vector<4x16x16xf32>
    %12 = vector.shape_cast %11 : vector<4x16x16xf32> to vector<4x256xf32>
    %c8 = arith.constant 8 : index
    %c0_19 = arith.constant 0 : index
    %13 = vector.load %arg11[%c8, %c0_19] : memref<36x256xf32, #tpu.memory_space<vmem>>, vector<4x256xf32>
    tpu.vector_store %arg11[%c8, %c0_19], %12 {strides = array<i32>} : memref<36x256xf32, #tpu.memory_space<vmem>>, vector<4x256xf32>,
    %c0_20 = arith.constant 0 : index
    %c1_21 = arith.constant 1 : index
    %c0_22 = arith.constant 0 : index
    %14 = vector.load %arg9[%c0_20, %c1_21, %c0_22] : memref<4x18x18xf32, #tpu.memory_space<vmem>>, vector<4x16x16xf32>
    %15 = vector.shape_cast %14 : vector<4x16x16xf32> to vector<4x256xf32>
    %c12 = arith.constant 12 : index
    %c0_23 = arith.constant 0 : index
    %16 = vector.load %arg11[%c12, %c0_23] : memref<36x256xf32, #tpu.memory_space<vmem>>, vector<4x256xf32>
    tpu.vector_store %arg11[%c12, %c0_23], %15 {strides = array<i32>} : memref<36x256xf32, #tpu.memory_space<vmem>>, vector<4x256xf32>,
    %c0_24 = arith.constant 0 : index
    %c1_25 = arith.constant 1 : index
    %c1_26 = arith.constant 1 : index
    %17 = vector.load %arg9[%c0_24, %c1_25, %c1_26] : memref<4x18x18xf32, #tpu.memory_space<vmem>>, vector<4x16x16xf32>
    %18 = vector.shape_cast %17 : vector<4x16x16xf32> to vector<4x256xf32>
    %c16 = arith.constant 16 : index
    %c0_27 = arith.constant 0 : index
    %19 = vector.load %arg11[%c16, %c0_27] : memref<36x256xf32, #tpu.memory_space<vmem>>, vector<4x256xf32>
    tpu.vector_store %arg11[%c16, %c0_27], %18 {strides = array<i32>} : memref<36x256xf32, #tpu.memory_space<vmem>>, vector<4x256xf32>,
    %c0_28 = arith.constant 0 : index
    %c1_29 = arith.constant 1 : index
    %c2_30 = arith.constant 2 : index
    %20 = vector.load %arg9[%c0_28, %c1_29, %c2_30] : memref<4x18x18xf32, #tpu.memory_space<vmem>>, vector<4x16x16xf32>
    %21 = vector.shape_cast %20 : vector<4x16x16xf32> to vector<4x256xf32>
    %c20 = arith.constant 20 : index
    %c0_31 = arith.constant 0 : index
    %22 = vector.load %arg11[%c20, %c0_31] : memref<36x256xf32, #tpu.memory_space<vmem>>, vector<4x256xf32>
    tpu.vector_store %arg11[%c20, %c0_31], %21 {strides = array<i32>} : memref<36x256xf32, #tpu.memory_space<vmem>>, vector<4x256xf32>,
    %c0_32 = arith.constant 0 : index
    %c2_33 = arith.constant 2 : index
    %c0_34 = arith.constant 0 : index
    %23 = vector.load %arg9[%c0_32, %c2_33, %c0_34] : memref<4x18x18xf32, #tpu.memory_space<vmem>>, vector<4x16x16xf32>
    %24 = vector.shape_cast %23 : vector<4x16x16xf32> to vector<4x256xf32>
    %c24 = arith.constant 24 : index
    %c0_35 = arith.constant 0 : index
    %25 = vector.load %arg11[%c24, %c0_35] : memref<36x256xf32, #tpu.memory_space<vmem>>, vector<4x256xf32>
    tpu.vector_store %arg11[%c24, %c0_35], %24 {strides = array<i32>} : memref<36x256xf32, #tpu.memory_space<vmem>>, vector<4x256xf32>,
    %c0_36 = arith.constant 0 : index
    %c2_37 = arith.constant 2 : index
    %c1_38 = arith.constant 1 : index
    %26 = vector.load %arg9[%c0_36, %c2_37, %c1_38] : memref<4x18x18xf32, #tpu.memory_space<vmem>>, vector<4x16x16xf32>
    %27 = vector.shape_cast %26 : vector<4x16x16xf32> to vector<4x256xf32>
    %c28 = arith.constant 28 : index
    %c0_39 = arith.constant 0 : index
    %28 = vector.load %arg11[%c28, %c0_39] : memref<36x256xf32, #tpu.memory_space<vmem>>, vector<4x256xf32>
    tpu.vector_store %arg11[%c28, %c0_39], %27 {strides = array<i32>} : memref<36x256xf32, #tpu.memory_space<vmem>>, vector<4x256xf32>,
    %c0_40 = arith.constant 0 : index
    %c2_41 = arith.constant 2 : index
    %c2_42 = arith.constant 2 : index
    %29 = vector.load %arg9[%c0_40, %c2_41, %c2_42] : memref<4x18x18xf32, #tpu.memory_space<vmem>>, vector<4x16x16xf32>
    %30 = vector.shape_cast %29 : vector<4x16x16xf32> to vector<4x256xf32>
    %c32 = arith.constant 32 : index
    %c0_43 = arith.constant 0 : index
    %31 = vector.load %arg11[%c32, %c0_43] : memref<36x256xf32, #tpu.memory_space<vmem>>, vector<4x256xf32>
    tpu.vector_store %arg11[%c32, %c0_43], %30 {strides = array<i32>} : memref<36x256xf32, #tpu.memory_space<vmem>>, vector<4x256xf32>,
    %c16_44 = arith.constant 16 : index
    %c0_45 = arith.constant 0 : index
    %32 = vector.load %arg11[%c16_44, %c0_45] : memref<36x256xf32, #tpu.memory_space<vmem>>, vector<4x256xf32>
    %c0_46 = arith.constant 0 : index
    %c0_47 = arith.constant 0 : index
    %33 = vector.load %arg2[%c0_46, %c0_47] : memref<4x36xf32, #tpu.memory_space<vmem>>, vector<4x36xf32>
    %c0_48 = arith.constant 0 : index
    %c0_49 = arith.constant 0 : index
    %34 = vector.load %arg11[%c0_48, %c0_49] : memref<36x256xf32, #tpu.memory_space<vmem>>, vector<36x256xf32>
    %cst_50 = arith.constant dense<0.000000e+00> : vector<4x256xf32>
    %35 = tpu.matmul %33, %34, %cst_50 {dimension_numbers = #tpu.dot_dimension_numbers<[1], [0], [0], [1], [0, 0, 1, 1], [], []>} : vector<4x36xf32>, vector<36x256xf32>, vector<4x256xf32> -> vector<4x256xf32>
    %c0_51 = arith.constant 0 : index
    %c0_52 = arith.constant 0 : index
    %36 = vector.load %arg3[%c0_51, %c0_52] : memref<4x1xf32, #tpu.memory_space<vmem>>, vector<4x1xf32>
    %37 = vector.broadcast %36 : vector<4x1xf32> to vector<4x256xf32>
    %38 = arith.mulf %35, %37 : vector<4x256xf32>
    %c0_53 = arith.constant 0 : index
    %c0_54 = arith.constant 0 : index
    %39 = vector.load %arg4[%c0_53, %c0_54] : memref<4x1xf32, #tpu.memory_space<vmem>>, vector<4x1xf32>
    %40 = vector.broadcast %39 : vector<4x1xf32> to vector<4x256xf32>
    %41 = arith.addf %38, %40 : vector<4x256xf32>
    %cst_55 = arith.constant 0.000000e+00 : f32
    %cst_56 = arith.constant 2.000000e+01 : f32
    %42 = vector.broadcast %cst_55 : f32 to vector<4x256xf32>
    %43 = arith.maximumf %42, %41 : vector<4x256xf32>
    %44 = vector.broadcast %cst_56 : f32 to vector<4x256xf32>
    %45 = arith.minimumf %44, %43 : vector<4x256xf32>
    %cst_57 = arith.constant 0.000000e+00 : f32
    %46 = vector.broadcast %cst_57 : f32 to vector<4x18x18xf32>
    %c0_58 = arith.constant 0 : index
    %c0_59 = arith.constant 0 : index
    %c0_60 = arith.constant 0 : index
    %47 = vector.load %arg10[%c0_58, %c0_59, %c0_60] : memref<4x18x18xf32, #tpu.memory_space<vmem>>, vector<4x18x18xf32>
    tpu.vector_store %arg10[%c0_58, %c0_59, %c0_60], %46 {strides = array<i32>} : memref<4x18x18xf32, #tpu.memory_space<vmem>>, vector<4x18x18xf32>,
    %48 = vector.shape_cast %45 : vector<4x256xf32> to vector<4x16x16xf32>
    %c0_61 = arith.constant 0 : index
    %c1_62 = arith.constant 1 : index
    %c1_63 = arith.constant 1 : index
    %49 = vector.load %arg10[%c0_61, %c1_62, %c1_63] : memref<4x18x18xf32, #tpu.memory_space<vmem>>, vector<4x16x16xf32>
    tpu.vector_store %arg10[%c0_61, %c1_62, %c1_63], %48 {strides = array<i32>} : memref<4x18x18xf32, #tpu.memory_space<vmem>>, vector<4x16x16xf32>,
    %c0_64 = arith.constant 0 : index
    %c0_65 = arith.constant 0 : index
    %c0_66 = arith.constant 0 : index
    %50 = vector.load %arg10[%c0_64, %c0_65, %c0_66] : memref<4x18x18xf32, #tpu.memory_space<vmem>>, vector<4x16x16xf32>
    %51 = vector.shape_cast %50 : vector<4x16x16xf32> to vector<4x256xf32>
    %c0_67 = arith.constant 0 : index
    %c0_68 = arith.constant 0 : index
    %52 = vector.load %arg11[%c0_67, %c0_68] : memref<36x256xf32, #tpu.memory_space<vmem>>, vector<4x256xf32>
    tpu.vector_store %arg11[%c0_67, %c0_68], %51 {strides = array<i32>} : memref<36x256xf32, #tpu.memory_space<vmem>>, vector<4x256xf32>,
    %c0_69 = arith.constant 0 : index
    %c0_70 = arith.constant 0 : index
    %c1_71 = arith.constant 1 : index
    %53 = vector.load %arg10[%c0_69, %c0_70, %c1_71] : memref<4x18x18xf32, #tpu.memory_space<vmem>>, vector<4x16x16xf32>
    %54 = vector.shape_cast %53 : vector<4x16x16xf32> to vector<4x256xf32>
    %c4_72 = arith.constant 4 : index
    %c0_73 = arith.constant 0 : index
    %55 = vector.load %arg11[%c4_72, %c0_73] : memref<36x256xf32, #tpu.memory_space<vmem>>, vector<4x256xf32>
    tpu.vector_store %arg11[%c4_72, %c0_73], %54 {strides = array<i32>} : memref<36x256xf32, #tpu.memory_space<vmem>>, vector<4x256xf32>,
    %c0_74 = arith.constant 0 : index
    %c0_75 = arith.constant 0 : index
    %c2_76 = arith.constant 2 : index
    %56 = vector.load %arg10[%c0_74, %c0_75, %c2_76] : memref<4x18x18xf32, #tpu.memory_space<vmem>>, vector<4x16x16xf32>
    %57 = vector.shape_cast %56 : vector<4x16x16xf32> to vector<4x256xf32>
    %c8_77 = arith.constant 8 : index
    %c0_78 = arith.constant 0 : index
    %58 = vector.load %arg11[%c8_77, %c0_78] : memref<36x256xf32, #tpu.memory_space<vmem>>, vector<4x256xf32>
    tpu.vector_store %arg11[%c8_77, %c0_78], %57 {strides = array<i32>} : memref<36x256xf32, #tpu.memory_space<vmem>>, vector<4x256xf32>,
    %c0_79 = arith.constant 0 : index
    %c1_80 = arith.constant 1 : index
    %c0_81 = arith.constant 0 : index
    %59 = vector.load %arg10[%c0_79, %c1_80, %c0_81] : memref<4x18x18xf32, #tpu.memory_space<vmem>>, vector<4x16x16xf32>
    %60 = vector.shape_cast %59 : vector<4x16x16xf32> to vector<4x256xf32>
    %c12_82 = arith.constant 12 : index
    %c0_83 = arith.constant 0 : index
    %61 = vector.load %arg11[%c12_82, %c0_83] : memref<36x256xf32, #tpu.memory_space<vmem>>, vector<4x256xf32>
    tpu.vector_store %arg11[%c12_82, %c0_83], %60 {strides = array<i32>} : memref<36x256xf32, #tpu.memory_space<vmem>>, vector<4x256xf32>,
    %c0_84 = arith.constant 0 : index
    %c1_85 = arith.constant 1 : index
    %c1_86 = arith.constant 1 : index
    %62 = vector.load %arg10[%c0_84, %c1_85, %c1_86] : memref<4x18x18xf32, #tpu.memory_space<vmem>>, vector<4x16x16xf32>
    %63 = vector.shape_cast %62 : vector<4x16x16xf32> to vector<4x256xf32>
    %c16_87 = arith.constant 16 : index
    %c0_88 = arith.constant 0 : index
    %64 = vector.load %arg11[%c16_87, %c0_88] : memref<36x256xf32, #tpu.memory_space<vmem>>, vector<4x256xf32>
    tpu.vector_store %arg11[%c16_87, %c0_88], %63 {strides = array<i32>} : memref<36x256xf32, #tpu.memory_space<vmem>>, vector<4x256xf32>,
    %c0_89 = arith.constant 0 : index
    %c1_90 = arith.constant 1 : index
    %c2_91 = arith.constant 2 : index
    %65 = vector.load %arg10[%c0_89, %c1_90, %c2_91] : memref<4x18x18xf32, #tpu.memory_space<vmem>>, vector<4x16x16xf32>
    %66 = vector.shape_cast %65 : vector<4x16x16xf32> to vector<4x256xf32>
    %c20_92 = arith.constant 20 : index
    %c0_93 = arith.constant 0 : index
    %67 = vector.load %arg11[%c20_92, %c0_93] : memref<36x256xf32, #tpu.memory_space<vmem>>, vector<4x256xf32>
    tpu.vector_store %arg11[%c20_92, %c0_93], %66 {strides = array<i32>} : memref<36x256xf32, #tpu.memory_space<vmem>>, vector<4x256xf32>,
    %c0_94 = arith.constant 0 : index
    %c2_95 = arith.constant 2 : index
    %c0_96 = arith.constant 0 : index
    %68 = vector.load %arg10[%c0_94, %c2_95, %c0_96] : memref<4x18x18xf32, #tpu.memory_space<vmem>>, vector<4x16x16xf32>
    %69 = vector.shape_cast %68 : vector<4x16x16xf32> to vector<4x256xf32>
    %c24_97 = arith.constant 24 : index
    %c0_98 = arith.constant 0 : index
    %70 = vector.load %arg11[%c24_97, %c0_98] : memref<36x256xf32, #tpu.memory_space<vmem>>, vector<4x256xf32>
    tpu.vector_store %arg11[%c24_97, %c0_98], %69 {strides = array<i32>} : memref<36x256xf32, #tpu.memory_space<vmem>>, vector<4x256xf32>,
    %c0_99 = arith.constant 0 : index
    %c2_100 = arith.constant 2 : index
    %c1_101 = arith.constant 1 : index
    %71 = vector.load %arg10[%c0_99, %c2_100, %c1_101] : memref<4x18x18xf32, #tpu.memory_space<vmem>>, vector<4x16x16xf32>
    %72 = vector.shape_cast %71 : vector<4x16x16xf32> to vector<4x256xf32>
    %c28_102 = arith.constant 28 : index
    %c0_103 = arith.constant 0 : index
    %73 = vector.load %arg11[%c28_102, %c0_103] : memref<36x256xf32, #tpu.memory_space<vmem>>, vector<4x256xf32>
    tpu.vector_store %arg11[%c28_102, %c0_103], %72 {strides = array<i32>} : memref<36x256xf32, #tpu.memory_space<vmem>>, vector<4x256xf32>,
    %c0_104 = arith.constant 0 : index
    %c2_105 = arith.constant 2 : index
    %c2_106 = arith.constant 2 : index
    %74 = vector.load %arg10[%c0_104, %c2_105, %c2_106] : memref<4x18x18xf32, #tpu.memory_space<vmem>>, vector<4x16x16xf32>
    %75 = vector.shape_cast %74 : vector<4x16x16xf32> to vector<4x256xf32>
    %c32_107 = arith.constant 32 : index
    %c0_108 = arith.constant 0 : index
    %76 = vector.load %arg11[%c32_107, %c0_108] : memref<36x256xf32, #tpu.memory_space<vmem>>, vector<4x256xf32>
    tpu.vector_store %arg11[%c32_107, %c0_108], %75 {strides = array<i32>} : memref<36x256xf32, #tpu.memory_space<vmem>>, vector<4x256xf32>,
    %c0_109 = arith.constant 0 : index
    %c0_110 = arith.constant 0 : index
    %77 = vector.load %arg5[%c0_109, %c0_110] : memref<4x36xf32, #tpu.memory_space<vmem>>, vector<4x36xf32>
    %c0_111 = arith.constant 0 : index
    %c0_112 = arith.constant 0 : index
    %78 = vector.load %arg11[%c0_111, %c0_112] : memref<36x256xf32, #tpu.memory_space<vmem>>, vector<36x256xf32>
    %cst_113 = arith.constant dense<0.000000e+00> : vector<4x256xf32>
    %79 = tpu.matmul %77, %78, %cst_113 {dimension_numbers = #tpu.dot_dimension_numbers<[1], [0], [0], [1], [0, 0, 1, 1], [], []>} : vector<4x36xf32>, vector<36x256xf32>, vector<4x256xf32> -> vector<4x256xf32>
    %c0_114 = arith.constant 0 : index
    %c0_115 = arith.constant 0 : index
    %80 = vector.load %arg6[%c0_114, %c0_115] : memref<4x1xf32, #tpu.memory_space<vmem>>, vector<4x1xf32>
    %81 = vector.broadcast %80 : vector<4x1xf32> to vector<4x256xf32>
    %82 = arith.mulf %79, %81 : vector<4x256xf32>
    %c0_116 = arith.constant 0 : index
    %c0_117 = arith.constant 0 : index
    %83 = vector.load %arg7[%c0_116, %c0_117] : memref<4x1xf32, #tpu.memory_space<vmem>>, vector<4x1xf32>
    %84 = vector.broadcast %83 : vector<4x1xf32> to vector<4x256xf32>
    %85 = arith.addf %82, %84 : vector<4x256xf32>
    %86 = arith.addf %85, %32 : vector<4x256xf32>
    %cst_118 = arith.constant 0.000000e+00 : f32
    %cst_119 = arith.constant 2.000000e+01 : f32
    %87 = vector.broadcast %cst_118 : f32 to vector<4x256xf32>
    %88 = arith.maximumf %87, %86 : vector<4x256xf32>
    %89 = vector.broadcast %cst_119 : f32 to vector<4x256xf32>
    %90 = arith.minimumf %89, %88 : vector<4x256xf32>
    %c0_120 = arith.constant 0 : index
    %c0_121 = arith.constant 0 : index
    %c0_122 = arith.constant 0 : index
    %91 = vector.load %arg8[%c0_120, %c0_121, %c0_122] : memref<1x4x256xf32, #tpu.memory_space<vmem>>, vector<1x4x256xf32>
    %92 = vector.shape_cast %91 : vector<1x4x256xf32> to vector<4x256xf32>
    %93 = vector.shape_cast %90 : vector<4x256xf32> to vector<1x4x256xf32>
    tpu.vector_store %arg8[%c0_120, %c0_121, %c0_122], %93 {strides = array<i32>} : memref<1x4x256xf32, #tpu.memory_space<vmem>>, vector<1x4x256xf32>,
    return
  }
  func.func @transform_0(%arg0: i32) -> (i32, i32, i32, i32) {
    %c0_i32 = arith.constant 0 : i32
    %c0_i32_0 = arith.constant 0 : i32
    %c0_i32_1 = arith.constant 0 : i32
    %c0_i32_2 = arith.constant 0 : i32
    return %arg0, %c0_i32, %c0_i32_0, %c0_i32_1 : i32, i32, i32, i32
  }
  func.func @transform_1(%arg0: i32) -> (i32, i32) {
    %c0_i32 = arith.constant 0 : i32
    %c0_i32_0 = arith.constant 0 : i32
    %c0_i32_1 = arith.constant 0 : i32
    return %c0_i32, %c0_i32_0 : i32, i32
  }
  func.func @transform_2(%arg0: i32) -> (i32, i32) {
    %c0_i32 = arith.constant 0 : i32
    %c0_i32_0 = arith.constant 0 : i32
    %c0_i32_1 = arith.constant 0 : i32
    return %c0_i32, %c0_i32_0 : i32, i32
  }
  func.func @transform_3(%arg0: i32) -> (i32, i32) {
    %c0_i32 = arith.constant 0 : i32
    %c0_i32_0 = arith.constant 0 : i32
    %c0_i32_1 = arith.constant 0 : i32
    return %c0_i32, %c0_i32_0 : i32, i32
  }
  func.func @transform_4(%arg0: i32) -> (i32, i32) {
    %c0_i32 = arith.constant 0 : i32
    %c0_i32_0 = arith.constant 0 : i32
    %c0_i32_1 = arith.constant 0 : i32
    return %c0_i32, %c0_i32_0 : i32, i32
  }
  func.func @transform_5(%arg0: i32) -> (i32, i32) {
    %c0_i32 = arith.constant 0 : i32
    %c0_i32_0 = arith.constant 0 : i32
    %c0_i32_1 = arith.constant 0 : i32
    return %c0_i32, %c0_i32_0 : i32, i32
  }
  func.func @transform_6(%arg0: i32) -> (i32, i32) {
    %c0_i32 = arith.constant 0 : i32
    %c0_i32_0 = arith.constant 0 : i32
    %c0_i32_1 = arith.constant 0 : i32
    return %c0_i32, %c0_i32_0 : i32, i32
  }
  func.func @transform_7(%arg0: i32) -> (i32, i32, i32) {
    %c0_i32 = arith.constant 0 : i32
    %c0_i32_0 = arith.constant 0 : i32
    %c0_i32_1 = arith.constant 0 : i32
    return %arg0, %c0_i32, %c0_i32_0 : i32, i32, i32
  }
}

</mosaic_0001>

<bundles_post_ra>
// kernel: tpu_custom_call.1
= control target key start
LH: loop header
LB: loop body
LE: loop exit
PB: predicated region body
PF: predicated region fallthrough
CT: control target
= control target key end

     0   :  { %12 = vsyncpa [#allocation6], 0  ;;  %s8720_s0 = inlined_call_operand.hbm [shape: f32[2,4,16,16], index: 0, kind: input, shape index: {}]   ;;  %s8721_s1 = inlined_call_operand.vmem [shape: f32[4,36], index: 1, kind: input, shape index: {}]   ;;  %s8722_s2 = inlined_call_operand.vmem [shape: f32[4,1], index: 2, kind: input, shape index: {}]   ;;  %s8723_s3 = inlined_call_operand.vmem [shape: f32[4,1], index: 3, kind: input, shape index: {}]   ;;  %s8724_s4 = inlined_call_operand.vmem [shape: f32[4,36], index: 4, kind: input, shape index: {}]   ;;  %s8725_s5 = inlined_call_operand.vmem [shape: f32[4,1], index: 5, kind: input, shape index: {}]   ;;  %s8726_s6 = inlined_call_operand.vmem [shape: f32[4,1], index: 6, kind: input, shape index: {}]   ;;  %s8727_s7 = inlined_call_operand.hbm [shape: f32[2,4,256], index: 7, kind: output, shape index: {}]  }
   0x1   :  { %14 = vsyncpa [#allocation6 + $0x1], 0 }
   0x2   :  { %15 = vsyncpa [#allocation7], 0 }
   0x3   :  { %17 = vsyncpa [#allocation7 + $0x1], 0  ;;  %s5519_s24 = smov 0   ;;  %s5521_s25 = smov 0  }
   0x4   :  { %s5523_s26 = smov 0   ;;  %s5525_s27 = smov 0  }
   0x5 LB: > { %s5540_s28 = sadd.s32 4294967295, %s5459_s27   ;;  %s5237_s29 = sadd.s32 4294967294, %s5459_s27   ;;  %s5459_s27 = sphi %s5525_s27, %s9004_s27   ;;  %s5455_s26 = sphi %s5523_s26, %s9003_s26   ;;  %s5451_s25 = sphi %s5521_s25, %s9002_s25   ;;  %s5447_s24 = sphi %s5519_s24, %s9001_s24  }
   0x6   : > { %s5544_s30 = sadd.s32 1, %s5459_s27   ;;  %s30_s8 = sadd.s32 1, %s5455_s26 }
   0x7   : > { %s27_s9 = ssub.s32 %s5459_s27, %s5544_s30  ;;  %p37_p0 = scmp.ne.s32.totalorder %s5455_s26, %s5451_s25 }
   0x8   : > { %p28_p1 = scmp.eq.s32.totalorder %s27_s9, 0  ;;  %p38_p2 = scmp.eq.s32.totalorder %s5459_s27, 0 }
   0x9   : > { %p43_p3 = scmp.ne.s32.totalorder %s5451_s25, %s5447_s24  ;;  %p44_p4 = scmp.eq.s32.totalorder %s5540_s28, 0 }
   0xa   : > { %s5556_s10 = scalar_select %p28_p1, %s5455_s26, %s30_s8  }
   0xb   : > { %p5558_p5 = por %p38_p2, %p37_p0  ;;  %p5562_p6 = por %p44_p4, %p43_p3 }
   0xc   : > { %p193_p7 = scmp.eq.s32.totalorder %s5540_s28, 1  ;;  %p199_p8 = scmp.eq.s32.totalorder %s5237_s29, 1 }
   0xd   : > { %s8802_s12 = scalar_select %p5562_p6, 1, 0 }
   0xe   : > { %p5271_p10 = scmp.lt.s32.totalorder %s5459_s27, 2  ;;  %p5569_p11 = por %p193_p7, %p37_p0 }
   0xf   : > { %p5573_p12 = por %p199_p8, %p43_p3  ;;  %s237_s15 = sand.u32 1, %s5455_s26  }
  0x10   : > { %s8803_s13 = scalar_select %p5569_p11, 1, 0 }
  0x11   : > { %s8804_s14 = scalar_select %p5573_p12, 1, 0 }
  0x12   : > { %s5257_s16 = sshll.u32 %s5459_s27, 10  ;;  %s5240_s17 = sshll.u32 %s237_s15, 6 }
  0x13   : > { %s5582_s20 = scalar_lea.hbm %s8720_s0, %s5257_s16  ;;  %s241_s21 = scalar_lea.vmem [#allocation5], %s5240_s17 }
  0x14   : > { %s248_s22 = sshll.u32 %s241_s21, 4  ;;  %p5586_p13 = pnand %p5271_p10, %p5558_p5  ;;  %s5590_s22 = int_to_ptr.vmem [resolvable:$true] %s248_s22 }
  0x15   : > { %s5592_s29 = scalar_lea.sflag [#allocation6], %s237_s15  ;;  %s5367_s8 = scalar_lea.hbm %s5582_s20, 1024 }
  0x16   : > { %p5368_p0 = scmp.ne.s32.totalorder %s5582_s20, %s5367_s8  ;;  %p5369_p1 = pneg %p5586_p13 }
  0x17   : > { %s5372_s17 = scalar_lea.hbm %s8720_s0, 2048  ;;  %p5373_p4 = scmp.lt.s32.totalorder %s5582_s20, %s8720_s0 }
  0x18   : > { %p5370_p2 = pnand %p5369_p1, %p5368_p0  ;;  %p5374_p5 = scmp.lt.s32.totalorder %s5372_s17, %s5367_s8 }
  0x1a   : > { %p5371_p3 = pneg %p5370_p2  ;;  %p5375_p7 = por %p5374_p5, %p5373_p4 }
  0x1c   : > { %p5376_p8 = pnand %p5375_p7, %p5371_p3 }
  0x1e   : > { %5379 = shalt.err (!%p5376_p8)
}
  0x1f   : > { %s5380_s15 = scalar_lea.vmem %s5590_s22, 1024  ;;  %s5461_s19 = smov [#allocation5]  }
  0x20   : > { %p5381_p10 = scmp.ne.s32.totalorder %s5590_s22, %s5380_s15  ;;  %s5385_s21 = sshll.u32 %s5461_s19, 4  ;;  %s5386_s21 = int_to_ptr.vmem [resolvable:$false] %s5385_s21 }
  0x21   : > { %s5387_s9 = scalar_lea.vmem %s5386_s21, 2048  ;;  %p5388_p2 = scmp.lt.s32.totalorder %s5590_s22, %s5386_s21 }
  0x22   : > { %p5383_p9 = pnand %p5381_p10, %p5369_p1  ;;  %p5389_p12 = scmp.lt.s32.totalorder %s5387_s9, %s5380_s15 }
  0x24   : > { %p5384_p0 = pneg %p5383_p9  ;;  %p5390_p11 = por %p5389_p12, %p5388_p2 }
  0x26   : > { %p5391_p6 = pnand %p5390_p11, %p5384_p0 }
  0x28   : > { %5394 = shalt.err (!%p5391_p6)
}
  0x29   : > { %s5462_s8 = smov 128   ;;  %s5463_s16 = smov 8  }
  0x2a   : > { %5266 = dma.hbm_to_vmem [thread:$0]  (!%p5586_p13), %s5582_s20, 1024, %s5590_s22, %s5592_s29, %s5462_s8, %s5462_s8, %s5463_s16  }
  0x2b   : > { %p5243_p9 = scmp.ge.s32.totalorder %s5459_s27, 1  ;;  %p256_p1 = scmp.lt.s32.totalorder %s5459_s27, 3 }
  0x2d   : > { %p257_p3 = pnand %p5243_p9, %p256_p1 }
  0x2f   : > { %260 = sbr.rel (%p257_p3) target bundleno = 1833 (0x729), region = 48 }
  0x34   : > { %s5616_s17 = sand.u32 1, %s5451_s25   ;;  %p8806_p6 = scmp.ne.s32.totalorder %s8802_s12, 0 }
  0x35   : > { %s5244_s11 = sshll.u32 %s5616_s17, 6  ;;  %s263_s18 = scalar_lea.sflag [#allocation6], %s5616_s17 }
  0x36   : > { %s5620_s15 = scalar_lea.vmem [#allocation5], %s5244_s11 }
  0x37   : > { %5438 = dma.done.wait (%p8806_p6), %s263_s18, 1024  }
  0x38   : > { %5440 = vsyncadd (%p8806_p6), %s263_s18, 4294966272  ;;  %vm297_vm0 = vcmask 146432   ;;  %vm300_vm1 = vcmask 140288   ;;  %v8730_v0 = vmov 0.0   ;;  %v316_v1 = vld [vmem:[%s5620_s15 + $0x28] sm:$0xff]  ;;  %s5465_s12 = smov 1   ;;  %v373_v13 = vlaneseq }
  0x39   : > { %306 = vst.msk [vmem:[#allocation2 + $0x38] sm:$0xff] %vm297_vm0, %v8730_v0  ;;  %298 = vst.msk [vmem:[#allocation2] sm:$0xff] %vm297_vm0, %v8730_v0  ;;  %2615 = vmatprep.mubr.f32.mxu0 %v8730_v0  ;;  %5118 = vmatprep.mubr.f32.mxu1 %v8730_v0  ;;  %v312_v2 = vld [vmem:[%s5620_s15 + $0x8] sm:$0xff]  ;;  %v318_v3 = vld [vmem:[%s5620_s15 + $0x38] sm:$0xff]  ;;  %vm351_vm2 = vcmask 138248   ;;  %s8773_s20 = smov 127  }
  0x3a   : > { %307 = vst.msk [vmem:[#allocation2 + $0x40] sm:$0x3] %vm300_vm1, %v8730_v0  ;;  %301 = vst.msk [vmem:[#allocation2 + $0x10] sm:$0x3] %vm300_vm1, %v8730_v0  ;;  %337 = vrot.lane.b32.xlu1 %v316_v1, %s5465_s12  ;;  %329 = vrot.lane.b32.xlu0 %v312_v2, %s5465_s12  ;;  %v314_v4 = vld [vmem:[%s5620_s15 + $0x18] sm:$0xff]  ;;  %v313_v5 = vld [vmem:[%s5620_s15 + $0x10] sm:$0xff] }
  0x3b   : > { %299 = vst.msk [vmem:[#allocation2 + $0x8] sm:$0xff] %vm297_vm0, %v8730_v0  ;;  %302 = vst.msk [vmem:[#allocation2 + $0x18] sm:$0xff] %vm297_vm0, %v8730_v0  ;;  %v311_v6 = vld [vmem:[%s5620_s15] sm:$0xff]  ;;  %v317_v7 = vld [vmem:[%s5620_s15 + $0x30] sm:$0xff]  ;;  %v5466_v11 = vmov 1983009808  }
  0x3c   : > { %303 = vst.msk [vmem:[#allocation2 + $0x20] sm:$0xff] %vm297_vm0, %v8730_v0  ;;  %305 = vst.msk [vmem:[#allocation2 + $0x30] sm:$0xff] %vm297_vm0, %v8730_v0  ;;  %v315_v8 = vld [vmem:[%s5620_s15 + $0x20] sm:$0xff]  ;;  %v371_v12 = vunpack.c.l.s4 %v5466_v11  ;;  %v5696_v17 = vshrl.u32 %v373_v13, 7  ;;  %s5468_s22 = smov 126   ;;  %s5470_s23 = smov 32  }
  0x3d   : > { %304 = vst.msk [vmem:[#allocation2 + $0x28] sm:$0x3] %vm300_vm1, %v8730_v0  ;;  %310 = vst.msk [vmem:[#allocation2 + $0x58] sm:$0x3] %vm300_vm1, %v8730_v0  ;;  %s5471_s29 = smov 64   ;;  %s5472_s19 = smov 16  }
  0x3e   : > { %308 = vst.msk [vmem:[#allocation2 + $0x48] sm:$0xff] %vm297_vm0, %v8730_v0  ;;  %309 = vst.msk [vmem:[#allocation2 + $0x50] sm:$0xff] %vm297_vm0, %v8730_v0  ;;  %341 = vrot.lane.b32.xlu1 %v318_v3, %s5465_s12  ;;  %333 = vrot.lane.b32.xlu0 %v314_v4, %s5465_s12  ;;  %v372_v16 = vunpack.c.0.s8 %v371_v12  ;;  %s5473_s21 = smov 48   ;;  %s5474_s9 = smov 80   ;;  %vm560_vm3 = vcmask 130048   ;;  %vm562_vm4 = vcmask 261120  }
  0x3f   : > { %2642 = vst.msk [vmem:[#allocation3] sm:$0xff] %vm297_vm0, %v8730_v0  ;;  %2643 = vst.msk [vmem:[#allocation3 + $0x8] sm:$0xff] %vm297_vm0, %v8730_v0  ;;  %s5475_s8 = smov 96   ;;  %s5476_s16 = smov 112   ;;  %vm564_vm5 = vcmask 392192   ;;  %vm566_vm6 = vcmask 523264  }
  0x40   : > { %2644 = vst.msk [vmem:[#allocation3 + $0x10] sm:$0x3] %vm300_vm1, %v8730_v0  ;;  %2647 = vst.msk [vmem:[#allocation3 + $0x28] sm:$0x3] %vm300_vm1, %v8730_v0  ;;  %v5708_v27 = vsub.s32 %v372_v16, %v5696_v17  ;;  %vm568_vm7 = vcmask 654336   ;;  %vm572_vm8 = vcmask 916480  }
  0x41   : > { %2645 = vst.msk [vmem:[#allocation3 + $0x18] sm:$0xff] %vm297_vm0, %v8730_v0  ;;  %2646 = vst.msk [vmem:[#allocation3 + $0x20] sm:$0xff] %vm297_vm0, %v8730_v0  ;;  %vm570_vm9 = vcmask 785408   ;;  %vm2544_vm10 = vcmask 1043456   ;;  %vm2540_vm11 = vcmask 293888   ;;  %p8998_p12 = scmp.ne.s32.totalorder %s8803_s13, 0 }
  0x42   : > { %2648 = vst.msk [vmem:[#allocation3 + $0x30] sm:$0xff] %vm297_vm0, %v8730_v0  ;;  %2649 = vst.msk [vmem:[#allocation3 + $0x38] sm:$0xff] %vm297_vm0, %v8730_v0  ;;  %331 = vrot.lane.b32.xlu1 %v313_v5, %s5465_s12  ;;  %327 = vrot.lane.b32.xlu0 %v311_v6, %s5465_s12 }
  0x43   : > { %2650 = vst.msk [vmem:[#allocation3 + $0x40] sm:$0x3] %vm300_vm1, %v8730_v0  ;;  %2653 = vst.msk [vmem:[#allocation3 + $0x58] sm:$0x3] %vm300_vm1, %v8730_v0 }
  0x44   : > { %2651 = vst.msk [vmem:[#allocation3 + $0x48] sm:$0xff] %vm297_vm0, %v8730_v0  ;;  %2652 = vst.msk [vmem:[#allocation3 + $0x50] sm:$0xff] %vm297_vm0, %v8730_v0 }
  0x45   : > { %8807 = vst [vmem:[#allocation11_spill] sm:$0xff] %v5708_v27 }
  0x46   : > { %339 = vrot.lane.b32.xlu1 %v317_v7, %s5465_s12  ;;  %335 = vrot.lane.b32.xlu0 %v315_v8, %s5465_s12 }
  0xac   : > { %v338_v9 = vpop.permute.xlu1 %337  ;;  %v330_v10 = vpop.permute.xlu0 %329 }
  0xad   : > { %357 = vst.msk [vmem:[#allocation2 + $0x39] sm:$0xff] %vm351_vm2, %v338_v9  ;;  %353 = vst.msk [vmem:[#allocation2 + $0x9] sm:$0xff] %vm351_vm2, %v330_v10 }
  0xb0   : > { %v342_v14 = vpop.permute.xlu1 %341  ;;  %v334_v15 = vpop.permute.xlu0 %333 }
  0xb1   : > { %359 = vst.msk [vmem:[#allocation2 + $0x51] sm:$0xff] %vm351_vm2, %v342_v14  ;;  %355 = vst.msk [vmem:[#allocation2 + $0x21] sm:$0xff] %vm351_vm2, %v334_v15 }
  0xb4   : > { %v332_v18 = vpop.permute.xlu1 %331  ;;  %v328_v19 = vpop.permute.xlu0 %327  ;;  %v2026_v20 = vld [vmem:[#allocation2 + $0xa] sm:$0xff]  ;;  %v2030_v21 = vld [vmem:[#allocation2 + $0x3a] sm:$0xff] }
  0xb5   : > { %v5698_v22 = vld [vmem:[#allocation2 + $0x9] sm:$0xff]  ;;  %354 = vst.msk [vmem:[#allocation2 + $0x19] sm:$0xff] %vm351_vm2, %v332_v18  ;;  %352 = vst.msk [vmem:[#allocation2 + $0x1] sm:$0xff] %vm351_vm2, %v328_v19  ;;  %2043 = vrot.lane.b32.xlu0 %v2026_v20, %s8773_s20  ;;  %v5703_v23 = vld [vmem:[#allocation2 + $0x39] sm:$0xff]  ;;  %v1885_v24 = vcombine.low %v2026_v20, %v2030_v21  ;;  %v1886_v25 = vcombine.high %v2026_v20, %v2030_v21 }
  0xb6   : > { %v1162_v26 = vcombine.high %v5698_v22, %v5703_v23 }
  0xb7   : > { %v5721_v37 = vrot.slane %v1885_v24, %v5708_v27  ;;  %v5727_v39 = vrot.slane %v1886_v25, %v5708_v27 }
  0xb8   : > { %v340_v28 = vpop.permute.xlu1 %339  ;;  %v336_v29 = vpop.permute.xlu0 %335  ;;  %v2028_v30 = vld [vmem:[#allocation2 + $0x22] sm:$0xff]  ;;  %v2032_v31 = vld [vmem:[#allocation2 + $0x52] sm:$0xff]  ;;  %v5733_v41 = vrot.slane %v1162_v26, %v5708_v27 }
  0xb9   : > { %v5710_v32 = vld [vmem:[#allocation2 + $0x21] sm:$0xff]  ;;  %358 = vst.msk [vmem:[#allocation2 + $0x49] sm:$0xff] %vm351_vm2, %v340_v28  ;;  %356 = vst.msk [vmem:[#allocation2 + $0x31] sm:$0xff] %vm351_vm2, %v336_v29  ;;  %2047 = vrot.lane.b32.xlu1 %v2028_v30, %s8773_s20  ;;  %2051 = vrot.lane.b32.xlu0 %v2030_v21, %s8773_s20  ;;  %v5716_v33 = vld [vmem:[#allocation2 + $0x51] sm:$0xff]  ;;  %v1901_v34 = vcombine.low %v2028_v30, %v2032_v31  ;;  %v1902_v35 = vcombine.high %v2028_v30, %v2032_v31 }
  0xba   : > { %v1178_v36 = vcombine.high %v5710_v32, %v5716_v33  ;;  %8808 = vst [vmem:[#allocation12_spill] sm:$0xff] %v5733_v41 }
  0xbb   : > { %v5724_v38 = vrot.slane %v1901_v34, %v5708_v27  ;;  %v5730_v40 = vrot.slane %v1902_v35, %v5708_v27 }
  0xbc   : > { %v5736_v42 = vrot.slane %v1178_v36, %v5708_v27  ;;  %v2025_v46 = vld [vmem:[#allocation2 + $0x2] sm:$0xff]  ;;  %v2027_v47 = vld [vmem:[#allocation2 + $0x1a] sm:$0xff]  ;;  %v5469_v36 = vmov 1934713408  }
  0xbd   : > { %2055 = vrot.lane.b32.xlu1 %v2032_v31, %s8773_s20  ;;  %2297 = vrot.lane.b32.xlu0 %v2026_v20, %s5468_s22  ;;  %v1918_v43 = vcombine.high %v5721_v37, %v5724_v38  ;;  %v1933_v44 = vcombine.low %v5727_v39, %v5730_v40  ;;  %v1917_v45 = vcombine.low %v5721_v37, %v5724_v38  ;;  %v5750_v50 = vld [vmem:[#allocation2 + $0x1] sm:$0xff]  ;;  %v5752_v51 = vld [vmem:[#allocation2 + $0x19] sm:$0xff] }
  0xbe   : > { %8809 = vst [vmem:[#allocation13_spill] sm:$0xff] %v5736_v42  ;;  %v1209_v48 = vcombine.low %v5733_v41, %v5736_v42  ;;  %v1934_v49 = vcombine.high %v5727_v39, %v5730_v40  ;;  %v584_v9 = vld [vmem:[#allocation2 + $0x8] sm:$0xff]  ;;  %v586_v10 = vld [vmem:[#allocation2 + $0x20] sm:$0xff]  ;;  %v585_v34 = vld [vmem:[#allocation2 + $0x18] sm:$0xff] }
  0xc0   : > { %v2029_v53 = vld [vmem:[#allocation2 + $0x32] sm:$0xff]  ;;  %v2031_v54 = vld [vmem:[#allocation2 + $0x4a] sm:$0xff] }
  0xc1   : > { %v5756_v55 = vld [vmem:[#allocation2 + $0x31] sm:$0xff]  ;;  %2301 = vrot.lane.b32.xlu1 %v2028_v30, %s5468_s22  ;;  %2305 = vrot.lane.b32.xlu0 %v2030_v21, %s5468_s22  ;;  %v5760_v56 = vld [vmem:[#allocation2 + $0x49] sm:$0xff]  ;;  %v1817_v57 = vcombine.low %v2025_v46, %v2029_v53  ;;  %v1833_v58 = vcombine.low %v2027_v47, %v2031_v54  ;;  %v1818_v61 = vcombine.high %v2025_v46, %v2029_v53 }
  0xc2   : > { %v1094_v59 = vcombine.high %v5750_v50, %v5756_v55  ;;  %v1110_v60 = vcombine.high %v5752_v51, %v5760_v56  ;;  %v1834_v1 = vcombine.high %v2027_v47, %v2031_v54  ;;  %v588_v6 = vld [vmem:[#allocation2 + $0x38] sm:$0xff]  ;;  %v590_v7 = vld [vmem:[#allocation2 + $0x50] sm:$0xff] }
  0xc3   : > { %v5767_v62 = vrot.slane %v1817_v57, %v5708_v27  ;;  %v5770_v63 = vrot.slane %v1833_v58, %v5708_v27  ;;  %v5773_v2 = vrot.slane %v1818_v61, %v5708_v27  ;;  %v436_v11 = vcombine.low %v584_v9, %v588_v6  ;;  %v587_v35 = vld [vmem:[#allocation2 + $0x30] sm:$0xff] }
  0xc4   : > { %v5780_v4 = vrot.slane %v1834_v1, %v5708_v27  ;;  %v452_v12 = vcombine.low %v586_v10, %v590_v7  ;;  %v5789_v13 = vrot.slane %v1094_v59, %v5708_v27  ;;  %v5792_v14 = vrot.slane %v1110_v60, %v5708_v27 }
  0xc5   : > { %8810 = vst [vmem:[#allocation14_spill] sm:$0xff] %v5773_v2  ;;  %2309 = vrot.lane.b32.xlu1 %v2032_v31, %s5468_s22  ;;  %2041 = vrot.lane.b32.xlu0 %v2025_v46, %s8773_s20  ;;  %v1850_v3 = vcombine.high %v5767_v62, %v5770_v63  ;;  %v1849_v5 = vcombine.low %v5767_v62, %v5770_v63  ;;  %v583_v31 = vld [vmem:[#allocation2] sm:$0xff] }
  0xc6   : > { %8811 = vst [vmem:[#allocation15_spill] sm:$0xff] %v5780_v4  ;;  %v1865_v8 = vcombine.low %v5773_v2, %v5780_v4  ;;  %v5797_v16 = vrot.slane %v436_v11, %v5708_v27  ;;  %v5800_v18 = vrot.slane %v452_v12, %v5708_v27  ;;  %v437_v24 = vcombine.high %v584_v9, %v588_v6 }
  0xc7   : > { %v453_v26 = vcombine.high %v586_v10, %v590_v7  ;;  %v1177_v60 = vcombine.low %v5710_v32, %v5716_v33 }
  0xc8   : > { %8812 = vst [vmem:[#allocation16_spill] sm:$0xff] %v5797_v16  ;;  %8813 = vst [vmem:[#allocation17_spill] sm:$0xff] %v5800_v18  ;;  %v5813_v25 = vrot.slane %v437_v24, %v5708_v27 }
  0xc9   : > { %2045 = vrot.lane.b32.xlu1 %v2027_v47, %s8773_s20  ;;  %2049 = vrot.lane.b32.xlu0 %v2029_v53, %s8773_s20  ;;  %v5819_v28 = vrot.slane %v453_v26, %v5708_v27  ;;  %v1185_v61 = vrot.slane %v1177_v60, %v5708_v27 }
  0xca   : > { %8814 = vst [vmem:[#allocation18_spill] sm:$0xff] %v5813_v25 }
  0xcb   : > { %8815 = vst [vmem:[#allocation19_spill] sm:$0xff] %v5819_v28 }
  0xcd   : > { %2053 = vrot.lane.b32.xlu1 %v2031_v54, %s8773_s20  ;;  %2295 = vrot.lane.b32.xlu0 %v2025_v46, %s5468_s22  ;;  %v403_v46 = vunpack.c.l.s4 %v5469_v36  ;;  %v468_v36 = vcombine.low %v5797_v16, %v5800_v18 }
  0xcf   : > { %v404_v57 = vunpack.c.0.s8 %v403_v46 }
  0xd1   : > { %2299 = vrot.lane.b32.xlu1 %v2027_v47, %s5468_s22  ;;  %2303 = vrot.lane.b32.xlu0 %v2029_v53, %s5468_s22  ;;  %v1093_v47 = vcombine.low %v5750_v50, %v5756_v55  ;;  %v1109_v53 = vcombine.low %v5752_v51, %v5760_v56 }
  0xd3   : > { %v1101_v58 = vrot.slane %v1093_v47, %v5708_v27  ;;  %v1117_v59 = vrot.slane %v1109_v53, %v5708_v27 }
  0xd5   : > { %2307 = vrot.lane.b32.xlu1 %v2031_v54, %s5468_s22  ;;  %1573 = vrot.lane.b32.xlu0 %v5698_v22, %s5468_s22  ;;  %v589_v54 = vld [vmem:[#allocation2 + $0x48] sm:$0xff]  ;;  %v1125_v62 = vcombine.low %v1101_v58, %v1117_v59 }
  0xd9   : > { %1577 = vrot.lane.b32.xlu1 %v5710_v32, %s5468_s22  ;;  %1581 = vrot.lane.b32.xlu0 %v5703_v23, %s5468_s22 }
  0xdd   : > { %1585 = vrot.lane.b32.xlu1 %v5716_v33, %s5468_s22  ;;  %1571 = vrot.lane.b32.xlu0 %v5750_v50, %s5468_s22 }
  0xe1   : > { %1575 = vrot.lane.b32.xlu1 %v5752_v51, %s5468_s22  ;;  %1579 = vrot.lane.b32.xlu0 %v5756_v55, %s5468_s22 }
  0xe5   : > { %1583 = vrot.lane.b32.xlu1 %v5760_v56, %s5468_s22  ;;  %1325 = vrot.lane.b32.xlu0 %v5698_v22, %s8773_s20 }
  0xe9   : > { %1329 = vrot.lane.b32.xlu1 %v5710_v32, %s8773_s20  ;;  %1333 = vrot.lane.b32.xlu0 %v5703_v23, %s8773_s20 }
  0xed   : > { %1337 = vrot.lane.b32.xlu1 %v5716_v33, %s8773_s20  ;;  %1323 = vrot.lane.b32.xlu0 %v5750_v50, %s8773_s20  ;;  %v5879_v50 = vsub.s32 %v404_v57, %v5696_v17 }
  0xef   : > { %v1932_v17 = vrot.slane %v1918_v43, %v5879_v50  ;;  %v1873_v1 = vrot.slane %v1865_v8, %v5879_v50  ;;  %v5926_v63 = vrot.slane %v1209_v48, %v5879_v50  ;;  %v5985_v60 = vrot.slane %v468_v36, %v5879_v50 }
  0xf1   : > { %1327 = vrot.lane.b32.xlu1 %v5752_v51, %s8773_s20  ;;  %1331 = vrot.lane.b32.xlu0 %v5756_v55, %s8773_s20  ;;  %v1161_v51 = vcombine.low %v5698_v22, %v5703_v23  ;;  %v1864_v55 = vrot.slane %v1850_v3, %v5879_v50  ;;  %v5907_v3 = vrot.slane %v1849_v5, %v5879_v50 }
  0xf2   : > { %v5934_v5 = vrot.slane %v1917_v45, %v5879_v50  ;;  %v1950_v45 = vcombine.high %v1932_v17, %v8730_v0  ;;  %8820 = vst [vmem:[#allocation24_spill] sm:$0xff] %v5985_v60 }
  0xf3   : > { %v1169_v32 = vrot.slane %v1161_v51, %v5708_v27  ;;  %8816 = vst [vmem:[#allocation20_spill] sm:$0xff] %v5907_v3  ;;  %v1882_v12 = vcombine.high %v1864_v55, %v8730_v0 }
  0xf4   : > { %8818 = vst [vmem:[#allocation22_spill] sm:$0xff] %v5934_v5  ;;  %v1949_v48 = vcombine.high %v5934_v5, %v8730_v0 }
  0xf5   : > { %1335 = vrot.lane.b32.xlu1 %v5760_v56, %s8773_s20  ;;  %601 = vrot.lane.b32.xlu0 %v584_v9, %s8773_s20  ;;  %v1126_v56 = vcombine.high %v1101_v58, %v1117_v59  ;;  %v1194_v23 = vcombine.high %v1169_v32, %v1185_v61  ;;  %v1193_v43 = vcombine.low %v1169_v32, %v1185_v61 }
  0xf6   : > { %v1883_v59 = vcombine.high %v1873_v1, %v8730_v0  ;;  %v5999_v32 = vrot.slane %v1934_v49, %v5879_v50 }
  0xf7   : > { %v1140_v22 = vrot.slane %v1126_v56, %v5879_v50  ;;  %v1208_v33 = vrot.slane %v1194_v23, %v5879_v50  ;;  %v5918_v8 = vrot.slane %v1193_v43, %v5879_v50 }
  0xf8   : > { %8821 = vst [vmem:[#allocation25_spill] sm:$0xff] %v5999_v32 }
  0xf9   : > { %605 = vrot.lane.b32.xlu1 %v586_v10, %s8773_s20  ;;  %609 = vrot.lane.b32.xlu0 %v588_v6, %s8773_s20  ;;  %8817 = vst [vmem:[#allocation21_spill] sm:$0xff] %v5918_v8 }
  0xfd   : > { %613 = vrot.lane.b32.xlu1 %v590_v7, %s8773_s20  ;;  %855 = vrot.lane.b32.xlu0 %v584_v9, %s5468_s22  ;;  %v5937_v9 = vrot.slane %v1125_v62, %v5879_v50 }
  0xff   : > { %8819 = vst [vmem:[#allocation23_spill] sm:$0xff] %v5937_v9  ;;  %v1157_v11 = vcombine.high %v5937_v9, %v8730_v0 }
 0x101   : > { %859 = vrot.lane.b32.xlu1 %v586_v10, %s5468_s22  ;;  %863 = vrot.lane.b32.xlu0 %v588_v6, %s5468_s22  ;;  %v1941_v6 = vrot.slane %v1933_v44, %v5879_v50  ;;  %v1225_v44 = vcombine.high %v5918_v8, %v8730_v0 }
 0x103   : > { %v1951_v58 = vcombine.high %v1941_v6, %v8730_v0 }
 0x105   : > { %867 = vrot.lane.b32.xlu1 %v590_v7, %s5468_s22  ;;  %599 = vrot.lane.b32.xlu0 %v583_v31, %s8773_s20  ;;  %v1881_v7 = vcombine.high %v5907_v3, %v8730_v0 }
 0x109   : > { %603 = vrot.lane.b32.xlu1 %v585_v34, %s8773_s20  ;;  %607 = vrot.lane.b32.xlu0 %v587_v35, %s8773_s20 }
 0x10d   : > { %611 = vrot.lane.b32.xlu1 %v589_v54, %s8773_s20  ;;  %853 = vrot.lane.b32.xlu0 %v583_v31, %s5468_s22 }
 0x111   : > { %857 = vrot.lane.b32.xlu1 %v585_v34, %s5468_s22  ;;  %861 = vrot.lane.b32.xlu0 %v587_v35, %s5468_s22  ;;  %v1226_v34 = vcombine.high %v1208_v33, %v8730_v0  ;;  %v1158_v35 = vcombine.high %v1140_v22, %v8730_v0 }
 0x115   : > { %865 = vrot.lane.b32.xlu1 %v589_v54, %s5468_s22  ;;  %1958 = vrot.lane.b32.xlu0 %v1864_v55, %s5470_s23 }
 0x119   : > { %1986 = vrot.lane.b32.xlu1 %v1932_v17, %s5470_s23  ;;  %1234 = vrot.lane.b32.xlu0 %v1140_v22, %s5470_s23  ;;  %v500_v17 = vcombine.high %v5985_v60, %v8730_v0 }
 0x11d   : > { %1262 = vrot.lane.b32.xlu1 %v1208_v33, %s5470_s23  ;;  %1966 = vrot.lane.b32.xlu0 %v1873_v1, %s5471_s29 }
 0x121   : > { %1994 = vrot.lane.b32.xlu1 %v1941_v6, %s5471_s29  ;;  %1954 = vrot.lane.b32.xlu0 %v1881_v7, %s5472_s19 }
 0x125   : > { %1270 = vrot.lane.b32.xlu1 %v5926_v63, %s5471_s29  ;;  %1258 = vrot.lane.b32.xlu0 %v1225_v44, %s5472_s19 }
 0x127   : > { %v5942_v10 = vpop.permute.xlu0 %2043 }
 0x129   : > { %1982 = vrot.lane.b32.xlu1 %v1949_v48, %s5472_s19  ;;  %1230 = vrot.lane.b32.xlu0 %v1157_v11, %s5472_s19 }
 0x12b   : > { %v5950_v37 = vpop.permute.xlu1 %2047  ;;  %v5952_v38 = vpop.permute.xlu0 %2051 }
 0x12c   : > { %v2133_v24 = vcombine.low %v5942_v10, %v5952_v38  ;;  %v2134_v21 = vcombine.high %v5942_v10, %v5952_v38 }
 0x12d   : > { %1990 = vrot.lane.b32.xlu1 %v1950_v45, %s5473_s21  ;;  %1962 = vrot.lane.b32.xlu0 %v1882_v12, %s5473_s21 }
 0x12e   : > { %v5973_v47 = vrot.slane %v2133_v24, %v5708_v27  ;;  %v6094_v43 = vrot.slane %v2134_v21, %v5708_v27 }
 0x12f   : > { %v5960_v26 = vpop.permute.xlu1 %2055  ;;  %v5962_v31 = vpop.permute.xlu0 %2297 }
 0x130   : > { %v2149_v46 = vcombine.low %v5950_v37, %v5960_v26 }
 0x131   : > { %1266 = vrot.lane.b32.xlu1 %v1226_v34, %s5473_s21  ;;  %1238 = vrot.lane.b32.xlu0 %v1158_v35, %s5473_s21 }
 0x132   : > { %v5976_v53 = vrot.slane %v2149_v46, %v5708_v27 }
 0x133   : > { %v5978_v54 = vpop.permute.xlu1 %2301  ;;  %v5980_v57 = vpop.permute.xlu0 %2305 }
 0x134   : > { %v2387_v55 = vcombine.low %v5962_v31, %v5980_v57  ;;  %v2166_v22 = vcombine.high %v5973_v47, %v5976_v53 }
 0x135   : > { %1998 = vrot.lane.b32.xlu1 %v1951_v58, %s5474_s9  ;;  %1970 = vrot.lane.b32.xlu0 %v1883_v59, %s5474_s9 }
 0x136   : > { %v6010_v33 = vrot.slane %v2387_v55, %v5708_v27  ;;  %v6018_v1 = vrot.slane %v2166_v22, %v5879_v50 }
 0x137   : > { %v2310_v56 = vpop.permute.xlu1 %2309  ;;  %v5993_v61 = vpop.permute.xlu0 %2041 }
 0x138   : > { %v2403_v23 = vcombine.low %v5978_v54, %v2310_v56  ;;  %v2404_v52 = vcombine.high %v5978_v54, %v2310_v56 }
 0x139   : > { %2002 = vrot.lane.b32.xlu1 %v5999_v32, %s5475_s8  ;;  %533 = vrot.lane.b32.xlu0 %v500_v17, %s5472_s19 }
 0x13a   : > { %v6013_v39 = vrot.slane %v2403_v23, %v5708_v27  ;;  %v6097_v10 = vrot.slane %v2404_v52, %v5708_v27 }
 0x13b   : > { %v2046_v40 = vpop.permute.xlu1 %2045  ;;  %v6015_v49 = vpop.permute.xlu0 %2049 }
 0x13c   : > { %v2420_v6 = vcombine.high %v6010_v33, %v6013_v39  ;;  %v2065_v7 = vcombine.low %v5993_v61, %v6015_v49  ;;  %v2066_v52 = vcombine.high %v5993_v61, %v6015_v49 }
 0x13d   : > { %2234 = vrot.lane.b32.xlu1 %v6018_v1, %s5470_s23 }
 0x13e   : > { %v6029_v62 = vrot.slane %v2420_v6, %v5879_v50  ;;  %v6036_v45 = vrot.slane %v2065_v7, %v5708_v27 }
 0x13f   : > { %v2054_v44 = vpop.permute.xlu1 %2053  ;;  %v6031_v48 = vpop.permute.xlu0 %2295 }
 0x140   : > { %v2081_v11 = vcombine.low %v2046_v40, %v2054_v44  ;;  %v2082_v54 = vcombine.high %v2046_v40, %v2054_v44 }
 0x141   : > { %2488 = vrot.lane.b32.xlu1 %v6029_v62, %s5470_s23 }
 0x142   : > { %v6039_v12 = vrot.slane %v2081_v11, %v5708_v27 }
 0x143   : > { %v6041_v24 = vpop.permute.xlu1 %2299  ;;  %v6043_v34 = vpop.permute.xlu0 %2303 }
 0x144   : > { %v2098_v35 = vcombine.high %v6036_v45, %v6039_v12  ;;  %v2319_v36 = vcombine.low %v6031_v48, %v6043_v34 }
 0x146   : > { %v6050_v46 = vrot.slane %v2098_v35, %v5879_v50  ;;  %v6058_v17 = vrot.slane %v2319_v36, %v5708_v27  ;;  %v2150_v35 = vcombine.high %v5950_v37, %v5960_v26  ;;  %v2388_v26 = vcombine.high %v5962_v31, %v5980_v57 }
 0x147   : > { %v2308_v58 = vpop.permute.xlu1 %2307  ;;  %v6052_v59 = vpop.permute.xlu0 %1573 }
 0x148   : > { %v2335_v55 = vcombine.low %v6041_v24, %v2308_v58  ;;  %2206 = vrot.lane.b32.xlu0 %v6050_v46, %s5470_s23  ;;  %v6086_v37 = vrot.slane %v2150_v35, %v5708_v27  ;;  %v6102_v35 = vrot.slane %v2388_v26, %v5708_v27 }
 0x14a   : > { %v6061_v22 = vrot.slane %v2335_v55, %v5708_v27  ;;  %v2181_v21 = vcombine.low %v6094_v43, %v6086_v37  ;;  %v2435_v40 = vcombine.low %v6102_v35, %v6097_v10 }
 0x14b   : > { %v6063_v23 = vpop.permute.xlu1 %1577  ;;  %v6065_v6 = vpop.permute.xlu0 %1581 }
 0x14c   : > { %v2352_v7 = vcombine.high %v6058_v17, %v6061_v22  ;;  %v1663_v36 = vcombine.low %v6052_v59, %v6065_v6  ;;  %v1664_v3 = vcombine.high %v6052_v59, %v6065_v6 }
 0x14e   : > { %v6070_v11 = vrot.slane %v2352_v7, %v5879_v50  ;;  %v6091_v20 = vrot.slane %v1663_v36, %v5708_v27 }
 0x14f   : > { %v1586_v30 = vpop.permute.xlu1 %1585  ;;  %v1572_v29 = vpop.permute.xlu0 %1571 }
 0x150   : > { %v1679_v55 = vcombine.low %v6063_v23, %v1586_v30  ;;  %2460 = vrot.lane.b32.xlu0 %v6070_v11, %s5470_s23 }
 0x152   : > { %v6083_v7 = vrot.slane %v1679_v55, %v5708_v27 }
 0x153   : > { %v1576_v15 = vpop.permute.xlu1 %1575  ;;  %v1580_v19 = vpop.permute.xlu0 %1579 }
 0x154   : > { %v1696_v38 = vcombine.high %v6091_v20, %v6083_v7  ;;  %v1596_v56 = vcombine.high %v1572_v29, %v1580_v19  ;;  %v1595_v31 = vcombine.low %v1572_v29, %v1580_v19  ;;  %v6116_v19 = vrot.slane %v2082_v54, %v5708_v27 }
 0x155   : > { %v6135_v54 = vrot.slane %v2066_v52, %v5708_v27  ;;  %v1680_v52 = vcombine.high %v6063_v23, %v1586_v30 }
 0x156   : > { %v6105_v55 = vrot.slane %v1696_v38, %v5879_v50  ;;  %v6119_v29 = vrot.slane %v1596_v56, %v5708_v27  ;;  %v6129_v61 = vrot.slane %v1595_v31, %v5708_v27  ;;  %v6146_v56 = vrot.slane %v2435_v40, %v5879_v50 }
 0x157   : > { %v1584_v57 = vpop.permute.xlu1 %1583  ;;  %v1326_v36 = vpop.permute.xlu0 %1325  ;;  %v2113_v31 = vcombine.low %v6135_v54, %v6116_v19  ;;  %v2114_v4 = vcombine.high %v6135_v54, %v6116_v19 }
 0x158   : > { %v1611_v0 = vcombine.low %v1576_v15, %v1584_v57  ;;  %v1612_v51 = vcombine.high %v1576_v15, %v1584_v57  ;;  %1764 = vrot.lane.b32.xlu1 %v6105_v55, %s5470_s23  ;;  %v2336_v15 = vcombine.high %v6041_v24, %v2308_v58  ;;  %v6132_v57 = vrot.slane %v2181_v21, %v5879_v50 }
 0x159   : > { %v6296_v19 = vrot.slane %v2114_v4, %v5879_v50 }
 0x15a   : > { %v6122_v44 = vrot.slane %v1611_v0, %v5708_v27  ;;  %v6125_v26 = vrot.slane %v1612_v51, %v5708_v27  ;;  %v2320_v51 = vcombine.high %v6031_v48, %v6043_v34  ;;  %v6151_v21 = vrot.slane %v2336_v15, %v5708_v27 }
 0x15b   : > { %v1330_v49 = vpop.permute.xlu1 %1329  ;;  %v1334_v38 = vpop.permute.xlu0 %1333  ;;  %v6178_v15 = vrot.slane %v1680_v52, %v5708_v27 }
 0x15c   : > { %8822 = vst [vmem:[#allocation26_spill] sm:$0xff] %v6125_v26  ;;  %2242 = vrot.lane.b32.xlu1 %v6132_v57, %s5471_s29  ;;  %v1628_v24 = vcombine.high %v6129_v61, %v6122_v44  ;;  %v1416_v58 = vcombine.high %v1326_v36, %v1334_v38  ;;  %v1415_v0 = vcombine.low %v1326_v36, %v1334_v38 }
 0x15d   : > { %v6160_v40 = vrot.slane %v2320_v51, %v5708_v27  ;;  %v6188_v38 = vrot.slane %v2113_v31, %v5879_v50  ;;  %v6195_v51 = vrot.slane %v1664_v3, %v5708_v27  ;;  %v1643_v16 = vcombine.low %v6119_v29, %v6125_v26 }
 0x15e   : > { %v6157_v60 = vrot.slane %v1628_v24, %v5879_v50  ;;  %v6169_v30 = vrot.slane %v1416_v58, %v5708_v27  ;;  %v6181_v59 = vrot.slane %v1415_v0, %v5708_v27 }
 0x15f   : > { %v1338_v48 = vpop.permute.xlu1 %1337  ;;  %v6154_v34 = vpop.permute.xlu0 %1323  ;;  %v1711_v3 = vcombine.low %v6195_v51, %v6178_v15  ;;  %v2368_v54 = vcombine.high %v6160_v40, %v6151_v21 }
 0x160   : > { %v1431_v9 = vcombine.low %v1330_v49, %v1338_v48  ;;  %v1432_v8 = vcombine.high %v1330_v49, %v1338_v48  ;;  %2496 = vrot.lane.b32.xlu1 %v6146_v56, %s5471_s29  ;;  %1736 = vrot.lane.b32.xlu0 %v6157_v60, %s5470_s23  ;;  %8823 = vst [vmem:[#allocation27_spill] sm:$0xff] %v6169_v30 }
 0x161   : > { %v6234_v42 = vrot.slane %v1711_v3, %v5879_v50  ;;  %v2436_v3 = vcombine.high %v6102_v35, %v6097_v10 }
 0x162   : > { %v6172_v23 = vrot.slane %v1431_v9, %v5708_v27  ;;  %v6175_v36 = vrot.slane %v1432_v8, %v5708_v27  ;;  %v2367_v9 = vcombine.low %v6160_v40, %v6151_v21  ;;  %v6319_v40 = vrot.slane %v2368_v54, %v5879_v50 }
 0x163   : > { %v6183_v6 = vpop.permute.xlu1 %1327  ;;  %v6185_v49 = vpop.permute.xlu0 %1331  ;;  %v6273_v35 = vrot.slane %v2436_v3, %v5879_v50 }
 0x164   : > { %8824 = vst [vmem:[#allocation28_spill] sm:$0xff] %v6175_v36  ;;  %2214 = vrot.lane.b32.xlu0 %v6188_v38, %s5471_s29  ;;  %v1448_v0 = vcombine.high %v6181_v59, %v6172_v23  ;;  %v1347_v24 = vcombine.low %v6154_v34, %v6185_v49  ;;  %v6211_v48 = vrot.slane %v2367_v9, %v5879_v50 }
 0x166   : > { %v6208_v52 = vrot.slane %v1448_v0, %v5879_v50  ;;  %v2182_v0 = vcombine.high %v6094_v43, %v6086_v37  ;;  %v6227_v9 = vrot.slane %v1347_v24, %v5708_v27 }
 0x167   : > { %v6203_v58 = vpop.permute.xlu1 %1335  ;;  %v6205_v31 = vpop.permute.xlu0 %601 }
 0x168   : > { %8825 = vst [vmem:[#allocation29_spill] sm:$0xff] %v6205_v31  ;;  %v1363_v8 = vcombine.low %v6183_v6, %v6203_v58  ;;  %1516 = vrot.lane.b32.xlu1 %v6208_v52, %s5470_s23  ;;  %2468 = vrot.lane.b32.xlu0 %v6211_v48, %s5471_s29  ;;  %v6241_v41 = vrot.slane %v2182_v0, %v5879_v50 }
 0x16a   : > { %v6222_v5 = vrot.slane %v1363_v8, %v5708_v27 }
 0x16b   : > { %v6229_v28 = vpop.permute.xlu1 %605  ;;  %v6231_v25 = vpop.permute.xlu0 %609 }
 0x16c   : > { %8826 = vst [vmem:[#allocation30_spill] sm:$0xff] %v6229_v28  ;;  %8827 = vst [vmem:[#allocation31_spill] sm:$0xff] %v6231_v25  ;;  %1772 = vrot.lane.b32.xlu1 %v6234_v42, %s5471_s29  ;;  %v1380_v8 = vcombine.high %v6227_v9, %v6222_v5  ;;  %v691_v43 = vcombine.low %v6205_v31, %v6231_v25  ;;  %v6276_v25 = vrot.slane %v1643_v16, %v5879_v50 }
 0x16e   : > { %v6250_v18 = vrot.slane %v1380_v8, %v5879_v50  ;;  %v6266_v8 = vrot.slane %v691_v43, %v5708_v27 }
 0x16f   : > { %v6245_v37 = vpop.permute.xlu1 %613  ;;  %v6247_v24 = vpop.permute.xlu0 %855 }
 0x170   : > { %8828 = vst [vmem:[#allocation32_spill] sm:$0xff] %v6245_v37  ;;  %8829 = vst [vmem:[#allocation33_spill] sm:$0xff] %v6247_v24  ;;  %v707_v0 = vcombine.low %v6229_v28, %v6245_v37  ;;  %2250 = vrot.lane.b32.xlu1 %v6241_v41, %s5475_s8  ;;  %1488 = vrot.lane.b32.xlu0 %v6250_v18, %s5470_s23  ;;  %v1463_v37 = vcombine.low %v6169_v30, %v6175_v36 }
 0x172   : > { %v6263_v32 = vrot.slane %v707_v0, %v5708_v27 }
 0x173   : > { %v6268_v31 = vpop.permute.xlu1 %859  ;;  %v6270_v10 = vpop.permute.xlu0 %863 }
 0x174   : > { %8830 = vst [vmem:[#allocation34_spill] sm:$0xff] %v6268_v31  ;;  %8831 = vst [vmem:[#allocation35_spill] sm:$0xff] %v6270_v10  ;;  %2504 = vrot.lane.b32.xlu1 %v6273_v35, %s5475_s8  ;;  %1744 = vrot.lane.b32.xlu0 %v6276_v25, %s5471_s29  ;;  %v724_v43 = vcombine.high %v6266_v8, %v6263_v32  ;;  %v945_v0 = vcombine.low %v6247_v24, %v6270_v10 }
 0x175   : > { %v2097_v24 = vcombine.low %v6036_v45, %v6039_v12  ;;  %v2351_v45 = vcombine.low %v6058_v17, %v6061_v22 }
 0x176   : > { %v6293_v16 = vrot.slane %v724_v43, %v5879_v50  ;;  %v6312_v4 = vrot.slane %v945_v0, %v5708_v27 }
 0x177   : > { %v6288_v3 = vpop.permute.xlu1 %867  ;;  %v6290_v2 = vpop.permute.xlu0 %599  ;;  %v6334_v12 = vrot.slane %v2097_v24, %v5879_v50  ;;  %v6357_v24 = vrot.slane %v2351_v45, %v5879_v50 }
 0x178   : > { %8832 = vst [vmem:[#allocation36_spill] sm:$0xff] %v6288_v3  ;;  %8833 = vst [vmem:[#allocation37_spill] sm:$0xff] %v6290_v2  ;;  %v961_v28 = vcombine.low %v6268_v31, %v6288_v3  ;;  %792 = vrot.lane.b32.xlu1 %v6293_v16, %s5470_s23  ;;  %2222 = vrot.lane.b32.xlu0 %v6296_v19, %s5475_s8  ;;  %v8834_v31 = vcombine.low %v5973_v47, %v5976_v53  ;;  %v8837_v53 = vmov 0.0  }
 0x179   : > { %8836 = vst [vmem:[#allocation39_spill] sm:$0xff] %v6334_v12  ;;  %v2129_v22 = vcombine.high %v6334_v12, %v8837_v53  ;;  %8838 = vst [vmem:[#allocation40_spill] sm:$0xff] %v6357_v24 }
 0x17a   : > { %v6309_v43 = vrot.slane %v961_v28, %v5708_v27  ;;  %v6325_v3 = vrot.slane %v8834_v31, %v5879_v50 }
 0x17b   : > { %v6314_v10 = vpop.permute.xlu1 %603  ;;  %v6316_v21 = vpop.permute.xlu0 %607 }
 0x17c   : > { %8835 = vst [vmem:[#allocation38_spill] sm:$0xff] %v6325_v3  ;;  %2476 = vrot.lane.b32.xlu0 %v6319_v40, %s5475_s8  ;;  %v978_v28 = vcombine.high %v6312_v4, %v6309_v43  ;;  %v2197_v31 = vcombine.high %v6325_v3, %v8837_v53  ;;  %v623_v17 = vcombine.low %v6290_v2, %v6316_v21 }
 0x17d   : > { %v1712_v3 = vcombine.high %v6195_v51, %v6178_v15 }
 0x17e   : > { %v6341_v47 = vrot.slane %v978_v28, %v5879_v50  ;;  %v1695_v28 = vcombine.low %v6091_v20, %v6083_v7  ;;  %v6374_v12 = vrot.slane %v623_v17, %v5708_v27  ;;  %v2383_v7 = vcombine.high %v6357_v24, %v8837_v53 }
 0x17f   : > { %v6336_v0 = vpop.permute.xlu1 %611  ;;  %v6338_v54 = vpop.permute.xlu0 %853 }
 0x180   : > { %v639_v26 = vcombine.low %v6314_v10, %v6336_v0  ;;  %1046 = vrot.lane.b32.xlu1 %v6341_v47, %s5470_s23  ;;  %2230 = vrot.lane.b32.xlu0 %v2197_v31, %s5472_s19  ;;  %v6371_v31 = vrot.slane %v1463_v37, %v5879_v50  ;;  %v6390_v37 = vrot.slane %v1712_v3, %v5879_v50 }
 0x181   : > { %v6393_v45 = vrot.slane %v1695_v28, %v5879_v50 }
 0x182   : > { %v6364_v36 = vrot.slane %v639_v26, %v5708_v27  ;;  %v1627_v26 = vcombine.low %v6129_v61, %v6122_v44 }
 0x183   : > { %v6366_v30 = vpop.permute.xlu1 %857  ;;  %v6368_v2 = vpop.permute.xlu0 %861  ;;  %8839 = vst [vmem:[#allocation41_spill] sm:$0xff] %v6393_v45  ;;  %v1727_v28 = vcombine.high %v6393_v45, %v8837_v53 }
 0x184   : > { %1524 = vrot.lane.b32.xlu1 %v6371_v31, %s5471_s29  ;;  %2202 = vrot.lane.b32.xlu0 %v2129_v22, %s5472_s19  ;;  %v877_v20 = vcombine.low %v6338_v54, %v6368_v2  ;;  %v656_v15 = vcombine.high %v6374_v12, %v6364_v36  ;;  %v6414_v24 = vrot.slane %v1627_v26, %v5879_v50 }
 0x186   : > { %v6401_v44 = vrot.slane %v877_v20, %v5708_v27  ;;  %v6409_v3 = vrot.slane %v656_v15, %v5879_v50  ;;  %v1659_v15 = vcombine.high %v6414_v24, %v8837_v53 }
 0x187   : > { %v6387_v51 = vpop.permute.xlu1 %865 }
 0x188   : > { %v893_v17 = vcombine.low %v6366_v30, %v6387_v51  ;;  %1780 = vrot.lane.b32.xlu1 %v6390_v37, %s5475_s8  ;;  %2456 = vrot.lane.b32.xlu0 %v2383_v7, %s5472_s19 }
 0x18a   : > { %v6404_v61 = vrot.slane %v893_v17, %v5708_v27  ;;  %v8841_v17 = vcombine.low %v6010_v33, %v6013_v39  ;;  %v2198_v39 = vcombine.high %v6018_v1, %v8837_v53  ;;  %v2452_v1 = vcombine.high %v6029_v62, %v8837_v53 }
 0x18b   : > { %v6406_v22 = vpop.permute.xlu1 %1986 }
 0x18c   : > { %8840 = vst [vmem:[#allocation42_spill] sm:$0xff] %v6406_v22  ;;  %v910_v7 = vcombine.high %v6401_v44, %v6404_v61  ;;  %764 = vrot.lane.b32.xlu1 %v6409_v3, %s5470_s23  ;;  %1760 = vrot.lane.b32.xlu0 %v1727_v28, %s5472_s19  ;;  %v6430_v26 = vrot.slane %v8841_v17, %v5879_v50  ;;  %v6432_v22 = vpop.permute.xlu0 %1958 }
 0x18d   : > { %v2130_v28 = vcombine.high %v6050_v46, %v8837_v53  ;;  %v2384_v17 = vcombine.high %v6070_v11, %v8837_v53 }
 0x18e   : > { %v6422_v20 = vrot.slane %v910_v7, %v5879_v50  ;;  %v1379_v7 = vcombine.low %v6227_v9, %v6222_v5  ;;  %v2451_v33 = vcombine.high %v6430_v26, %v8837_v53 }
 0x18f   : > { %v6434_v45 = vpop.permute.xlu1 %1262 }
 0x190   : > { %8842 = vst [vmem:[#allocation43_spill] sm:$0xff] %v6434_v45  ;;  %1018 = vrot.lane.b32.xlu1 %v6422_v20, %s5470_s23  ;;  %1732 = vrot.lane.b32.xlu0 %v1659_v15, %s5472_s19  ;;  %v1447_v15 = vcombine.low %v6181_v59, %v6172_v23  ;;  %v6453_v46 = vpop.permute.xlu0 %1234  ;;  %v6458_v5 = vrot.slane %v1379_v7, %v5879_v50 }
 0x191   : > { %8843 = vst [vmem:[#allocation44_spill] sm:$0xff] %v6453_v46  ;;  %v1728_v7 = vcombine.high %v6105_v55, %v8837_v53  ;;  %v2385_v55 = vcombine.high %v6211_v48, %v8837_v53  ;;  %v909_v48 = vcombine.low %v6401_v44, %v6404_v61  ;;  %v8876_v46 = vld [vmem:[#allocation12_spill] sm:$0xff] }
 0x192   : > { %8844 = vst [vmem:[#allocation45_spill] sm:$0xff] %v6458_v5  ;;  %v1411_v11 = vcombine.high %v6458_v5, %v8837_v53  ;;  %v6467_v9 = vrot.slane %v1447_v15, %v5879_v50 }
 0x193   : > { %v6455_v45 = vpop.permute.xlu1 %1994  ;;  %v6533_v61 = vrot.slane %v909_v48, %v5879_v50 }
 0x194   : > { %2484 = vrot.lane.b32.xlu1 %v2451_v33, %s5472_s19  ;;  %2210 = vrot.lane.b32.xlu0 %v2130_v28, %s5473_s21  ;;  %8845 = vst [vmem:[#allocation46_spill] sm:$0xff] %v6467_v9  ;;  %v6469_v23 = vpop.permute.xlu0 %1966  ;;  %v1660_v28 = vcombine.high %v6157_v60, %v8837_v53  ;;  %v1479_v62 = vcombine.high %v6467_v9, %v8837_v53 }
 0x195   : > { %v2131_v33 = vcombine.high %v6188_v38, %v8837_v53  ;;  %v2199_v60 = vcombine.high %v6132_v57, %v8837_v53  ;;  %v977_v38 = vcombine.low %v6312_v4, %v6309_v43  ;;  %v2453_v57 = vcombine.high %v6146_v56, %v8837_v53  ;;  %8852 = vst [vmem:[#allocation53_spill] sm:$0xff] %v6533_v61 }
 0x197   : > { %v6471_v59 = vpop.permute.xlu1 %1270  ;;  %v6517_v43 = vrot.slane %v977_v38, %v5879_v50  ;;  %v1661_v38 = vcombine.high %v6276_v25, %v8837_v53  ;;  %v1348_v25 = vcombine.high %v6154_v34, %v6185_v49  ;;  %v1010_v49 = vcombine.high %v6341_v47, %v8837_v53 }
 0x198   : > { %2238 = vrot.lane.b32.xlu1 %v2198_v39, %s5473_s21  ;;  %2464 = vrot.lane.b32.xlu0 %v2384_v17, %s5473_s21  ;;  %8846 = vst [vmem:[#allocation47_spill] sm:$0xff] %v6471_v59  ;;  %v723_v39 = vcombine.low %v6266_v8, %v6263_v32  ;;  %v6487_v17 = vpop.permute.xlu0 %1954  ;;  %v655_v32 = vcombine.low %v6374_v12, %v6364_v36 }
 0x199   : > { %8848 = vst [vmem:[#allocation49_spill] sm:$0xff] %v6517_v43  ;;  %v1009_v56 = vcombine.high %v6517_v43, %v8837_v53 }
 0x19a   : > { %v6502_v8 = vrot.slane %v723_v39, %v5879_v50  ;;  %v6520_v4 = vrot.slane %v655_v32, %v5879_v50 }
 0x19b   : > { %v6489_v15 = vpop.permute.xlu1 %1982 }
 0x19c   : > { %2492 = vrot.lane.b32.xlu1 %v2452_v1, %s5473_s21  ;;  %1484 = vrot.lane.b32.xlu0 %v1411_v11, %s5472_s19  ;;  %8847 = vst [vmem:[#allocation48_spill] sm:$0xff] %v6502_v8  ;;  %v6504_v1 = vpop.permute.xlu0 %1258  ;;  %v755_v36 = vcombine.high %v6502_v8, %v8837_v53  ;;  %8849 = vst [vmem:[#allocation50_spill] sm:$0xff] %v6520_v4  ;;  %v687_v44 = vcombine.high %v6520_v4, %v8837_v53  ;;  %v8865_v4 = vld [vmem:[#allocation29_spill] sm:$0xff] }
 0x19d   : > { %v8870_v8 = vld [vmem:[#allocation33_spill] sm:$0xff] }
 0x19f   : > { %v6506_v11 = vpop.permute.xlu1 %1990 }
 0x1a0   : > { %1512 = vrot.lane.b32.xlu1 %v1479_v62, %s5472_s19  ;;  %1740 = vrot.lane.b32.xlu0 %v1660_v28, %s5473_s21  ;;  %v6524_v12 = vpop.permute.xlu0 %1230  ;;  %v1480_v62 = vcombine.high %v6208_v52, %v8837_v53  ;;  %v2200_v52 = vcombine.high %v6241_v41, %v8837_v53  ;;  %v2132_v41 = vcombine.high %v6296_v19, %v8837_v53 }
 0x1a1   : > { %8850 = vst [vmem:[#allocation51_spill] sm:$0xff] %v6524_v12 }
 0x1a3   : > { %v6526_v28 = vpop.permute.xlu1 %1266 }
 0x1a4   : > { %1768 = vrot.lane.b32.xlu1 %v1728_v7, %s5473_s21  ;;  %2218 = vrot.lane.b32.xlu0 %v2131_v33, %s5474_s9  ;;  %8851 = vst [vmem:[#allocation52_spill] sm:$0xff] %v6526_v28  ;;  %v941_v7 = vcombine.high %v6533_v61, %v8837_v53  ;;  %v6541_v33 = vpop.permute.xlu0 %1962  ;;  %v8864_v61 = vld [vmem:[#allocation31_spill] sm:$0xff] }
 0x1a5   : > { %v692_v43 = vcombine.high %v8865_v4, %v8864_v61  ;;  %v8869_v61 = vld [vmem:[#allocation35_spill] sm:$0xff] }
 0x1a7   : > { %v6543_v39 = vpop.permute.xlu1 %1998  ;;  %v6661_v4 = vrot.slane %v692_v43, %v5708_v27  ;;  %v8872_v43 = vld [vmem:[#allocation16_spill] sm:$0xff] }
 0x1a8   : > { %2246 = vrot.lane.b32.xlu1 %v2199_v60, %s5474_s9  ;;  %2472 = vrot.lane.b32.xlu0 %v2385_v55, %s5474_s9  ;;  %v1729_v60 = vcombine.high %v6234_v42, %v8837_v53  ;;  %v1412_v55 = vcombine.high %v6250_v18, %v8837_v53  ;;  %v6557_v32 = vpop.permute.xlu0 %1238  ;;  %v1364_v42 = vcombine.high %v6183_v6, %v6203_v58 }
 0x1a9   : > { %8853 = vst [vmem:[#allocation54_spill] sm:$0xff] %v6557_v32  ;;  %v2454_v18 = vcombine.high %v6273_v35, %v8837_v53  ;;  %v756_v6 = vcombine.high %v6293_v16, %v8837_v53  ;;  %v2386_v58 = vcombine.high %v6319_v40, %v8837_v53  ;;  %v6585_v35 = vrot.slane %v1348_v25, %v5708_v27 }
 0x1aa   : > { %v8855_v16 = vcombine.low %v5789_v13, %v5792_v14 }
 0x1ac   : > { %2500 = vrot.lane.b32.xlu1 %v2453_v57, %s5474_s9  ;;  %788 = vrot.lane.b32.xlu0 %v755_v36, %s5472_s19  ;;  %v6559_v57 = vpop.permute.xlu1 %2002  ;;  %v6571_v48 = vpop.permute.xlu0 %1970  ;;  %v1149_v40 = vrot.slane %v8855_v16, %v5879_v50  ;;  %v8859_v16 = vld [vmem:[#allocation30_spill] sm:$0xff] }
 0x1b0   : > { %1042 = vrot.lane.b32.xlu1 %v1009_v56, %s5472_s19  ;;  %760 = vrot.lane.b32.xlu0 %v687_v44, %s5472_s19  ;;  %v6573_v36 = vpop.permute.xlu1 %2234  ;;  %v6578_v56 = vrot.slane %v1364_v42, %v5708_v27  ;;  %v6593_v19 = vpop.permute.xlu0 %533 }
 0x1b1   : > { %8854 = vst [vmem:[#allocation55_spill] sm:$0xff] %v6593_v19 }
 0x1b2   : > { %v1395_v34 = vcombine.low %v6585_v35, %v6578_v56 }
 0x1b4   : > { %1520 = vrot.lane.b32.xlu1 %v1480_v62, %s5473_s21  ;;  %1014 = vrot.lane.b32.xlu0 %v941_v7, %s5472_s19  ;;  %v6595_v44 = vpop.permute.xlu1 %2488  ;;  %v5339_v62 = vld [vmem:[#allocation2] ss:$48 sps:$4 sm:$0xff]   ;;  %v5341_v7 = vld [vmem:[#allocation2 + $0x18] ss:$48 sps:$4 sm:$0xff]  }
 0x1b5   : > { %v6614_v42 = vrot.slane %v5341_v7, %v5708_v27  ;;  %v8860_v7 = vld [vmem:[#allocation14_spill] sm:$0xff] }
 0x1b8   : > { %1776 = vrot.lane.b32.xlu1 %v1729_v60, %s5474_s9  ;;  %1492 = vrot.lane.b32.xlu0 %v1412_v55, %s5473_s21  ;;  %v1227_v60 = vcombine.high %v5926_v63, %v8837_v53 }
 0x1ba   : > { %v6605_v55 = vpop.permute.xlu0 %2206 }
 0x1bc   : > { %2254 = vrot.lane.b32.xlu1 %v2200_v52, %s5476_s16  ;;  %1748 = vrot.lane.b32.xlu0 %v1661_v38, %s5474_s9  ;;  %v1403_v52 = vrot.slane %v1395_v34, %v5879_v50  ;;  %v6611_v38 = vrot.slane %v5339_v62, %v5708_v27 }
 0x1c0   : > { %2508 = vrot.lane.b32.xlu1 %v2454_v18, %s5476_s16  ;;  %2226 = vrot.lane.b32.xlu0 %v2132_v41, %s5476_s16  ;;  %v1481_v18 = vcombine.high %v6371_v31, %v8837_v53  ;;  %v8856_v41 = vld [vmem:[#allocation26_spill] sm:$0xff] }
 0x1c1   : > { %v8857_v25 = vcombine.high %v6119_v29, %v8856_v41  ;;  %v1730_v41 = vcombine.high %v6390_v37, %v8837_v53 }
 0x1c2   : > { %v6620_v63 = vpop.permute.xlu0 %2460 }
 0x1c4   : > { %2480 = vrot.lane.b32.xlu1 %v2386_v58, %s5476_s16  ;;  %796 = vrot.lane.b32.xlu0 %v756_v6, %s5473_s21  ;;  %v1658_v6 = vrot.slane %v8857_v25, %v5879_v50  ;;  %v400_v58 = vcombine.low %v6611_v38, %v6614_v42 }
 0x1c6   : > { %v6643_v25 = vrot.slane %v400_v58, %v5879_v50 }
 0x1c8   : > { %1242 = vrot.lane.b32.xlu1 %v1149_v40, %s5471_s29  ;;  %1050 = vrot.lane.b32.xlu0 %v1010_v49, %s5473_s21  ;;  %v8858_v49 = vld [vmem:[#allocation32_spill] sm:$0xff]  ;;  %8863 = vst [vmem:[#allocation26_spill] sm:$0xff] %v6643_v25  ;;  %v432_v58 = vcombine.high %v6643_v25, %v8837_v53 }
 0x1c9   : > { %v708_v62 = vcombine.high %v8859_v16, %v8858_v49 }
 0x1ca   : > { %v6607_v47 = vpop.permute.xlu1 %1764 }
 0x1cb   : > { %v6652_v16 = vrot.slane %v708_v62, %v5708_v27 }
 0x1cc   : > { %1496 = vrot.lane.b32.xlu1 %v1403_v52, %s5471_s29  ;;  %1274 = vrot.lane.b32.xlu0 %v1227_v60, %s5474_s9  ;;  %v8861_v60 = vld [vmem:[#allocation15_spill] sm:$0xff] }
 0x1cd   : > { %v8862_v19 = vcombine.high %v8860_v7, %v8861_v60  ;;  %v8868_v7 = vld [vmem:[#allocation34_spill] sm:$0xff]  ;;  %v739_v62 = vcombine.low %v6661_v4, %v6652_v16 }
 0x1ce   : > { %v6628_v34 = vpop.permute.xlu1 %2242 }
 0x1cf   : > { %v1880_v29 = vrot.slane %v8862_v19, %v5879_v50  ;;  %v8867_v19 = vld [vmem:[#allocation36_spill] sm:$0xff] }
 0x1d0   : > { %1752 = vrot.lane.b32.xlu1 %v1658_v6, %s5475_s8  ;;  %1528 = vrot.lane.b32.xlu0 %v1481_v18, %s5474_s9  ;;  %v8866_v18 = vld [vmem:[#allocation25_spill] sm:$0xff]  ;;  %v962_v60 = vcombine.high %v8868_v7, %v8867_v19 }
 0x1d1   : > { %v1952_v49 = vcombine.high %v8866_v18, %v8837_v53  ;;  %v8873_v7 = vld [vmem:[#allocation17_spill] sm:$0xff] }
 0x1d2   : > { %v6634_v31 = vpop.permute.xlu0 %1736  ;;  %v6656_v37 = vpop.permute.xlu1 %2496  ;;  %v6672_v18 = vrot.slane %v962_v60, %v5708_v27  ;;  %v8874_v25 = vcombine.high %v8872_v43, %v8873_v7  ;;  %v747_v43 = vrot.slane %v739_v62, %v5879_v50  ;;  %v640_v62 = vcombine.high %v6314_v10, %v6336_v0 }
 0x1d3   : > { %v401_v10 = vcombine.high %v6611_v38, %v6614_v42  ;;  %v878_v38 = vcombine.high %v6338_v54, %v6368_v2 }
 0x1d4   : > { %1974 = vrot.lane.b32.xlu1 %v1880_v29, %s5475_s8  ;;  %1784 = vrot.lane.b32.xlu0 %v1730_v41, %s5476_s16  ;;  %v946_v41 = vcombine.high %v8870_v8, %v8869_v61  ;;  %v483_v32 = vrot.slane %v8874_v25, %v5879_v50  ;;  %v688_v8 = vcombine.high %v6409_v3, %v8837_v53 }
 0x1d5   : > { %v942_v25 = vcombine.high %v6422_v20, %v8837_v53  ;;  %v6724_v0 = vrot.slane %v640_v62, %v5708_v27  ;;  %v6754_v2 = vrot.slane %v878_v38, %v5708_v27 }
 0x1d6   : > { %v6665_v5 = vpop.permute.xlu0 %2214 }
 0x1d8   : > { %2006 = vrot.lane.b32.xlu0 %v1952_v49, %s5476_s16  ;;  %505 = vrot.lane.b32.xlu1 %v432_v58, %s5472_s19  ;;  %v6683_v49 = vrot.slane %v946_v41, %v5708_v27 }
 0x1da   : > { %v6674_v19 = vpop.permute.xlu1 %1516  ;;  %v993_v60 = vcombine.low %v6683_v49, %v6672_v18  ;;  %v6689_v58 = vpop.permute.xlu0 %2468 }
 0x1db   : > { %8871 = vst [vmem:[#allocation32_spill] sm:$0xff] %v6674_v19 }
 0x1dc   : > { %537 = vrot.lane.b32.xlu0 %v483_v32, %s5470_s23  ;;  %768 = vrot.lane.b32.xlu1 %v688_v8, %s5473_s21  ;;  %v1001_v7 = vrot.slane %v993_v60, %v5879_v50  ;;  %v1159_v8 = vcombine.high %v1149_v40, %v8837_v53  ;;  %v8879_v60 = vld [vmem:[#allocation37_spill] sm:$0xff] }
 0x1dd   : > { %v624_v19 = vcombine.high %v8879_v60, %v6316_v21  ;;  %v8881_v21 = vld [vmem:[#allocation28_spill] sm:$0xff]  ;;  %v1662_v60 = vcombine.high %v1658_v6, %v8837_v53  ;;  %v1884_v6 = vcombine.high %v1880_v29, %v8837_v53 }
 0x1de   : > { %v6691_v61 = vpop.permute.xlu1 %1772 }
 0x1e0   : > { %800 = vrot.lane.b32.xlu0 %v747_v43, %s5471_s29  ;;  %1022 = vrot.lane.b32.xlu1 %v942_v25, %s5473_s21  ;;  %v8877_v25 = vld [vmem:[#allocation13_spill] sm:$0xff] }
 0x1e1   : > { %v8878_v12 = vcombine.high %v8876_v46, %v8877_v25  ;;  %v894_v46 = vcombine.high %v6366_v30, %v6387_v51 }
 0x1e2   : > { %v6698_v3 = vpop.permute.xlu1 %2250  ;;  %v6700_v41 = vpop.permute.xlu0 %1488 }
 0x1e3   : > { %8875 = vst [vmem:[#allocation30_spill] sm:$0xff] %v6700_v41  ;;  %v1224_v59 = vrot.slane %v8878_v12, %v5879_v50  ;;  %v1413_v41 = vcombine.high %v1403_v52, %v8837_v53  ;;  %v8880_v52 = vld [vmem:[#allocation27_spill] sm:$0xff]  ;;  %v6745_v51 = vrot.slane %v894_v46, %v5708_v27 }
 0x1e4   : > { %1054 = vrot.lane.b32.xlu0 %v1001_v7, %s5471_s29  ;;  %1246 = vrot.lane.b32.xlu1 %v1159_v8, %s5474_s9  ;;  %v8882_v8 = vcombine.high %v8880_v52, %v8881_v21  ;;  %v501_v21 = vcombine.high %v483_v32, %v8837_v53  ;;  %v1396_v32 = vcombine.high %v6585_v35, %v6578_v56 }
 0x1e5   : > { %v925_v54 = vcombine.low %v6754_v2, %v6745_v51  ;;  %v1228_v56 = vcombine.high %v1224_v59, %v8837_v53 }
 0x1e6   : > { %v6708_v20 = vpop.permute.xlu0 %1744  ;;  %v6717_v40 = vpop.permute.xlu1 %2504  ;;  %v1478_v25 = vrot.slane %v8882_v8, %v5879_v50  ;;  %v1410_v35 = vrot.slane %v1396_v32, %v5879_v50 }
 0x1e7   : > { %v933_v38 = vrot.slane %v925_v54, %v5879_v50 }
 0x1e8   : > { %1278 = vrot.lane.b32.xlu0 %v1224_v59, %s5475_s8  ;;  %1500 = vrot.lane.b32.xlu1 %v1413_v41, %s5474_s9  ;;  %v6736_v41 = vrot.slane %v624_v19, %v5708_v27  ;;  %v415_v19 = vrot.slane %v401_v10, %v5879_v50  ;;  %v740_v59 = vcombine.high %v6661_v4, %v6652_v16 }
 0x1e9   : > { %v994_v16 = vcombine.high %v6683_v49, %v6672_v18  ;;  %v943_v28 = vcombine.high %v933_v38, %v8837_v53 }
 0x1ea   : > { %v6728_v12 = vpop.permute.xlu0 %2222  ;;  %v671_v30 = vcombine.low %v6736_v41, %v6724_v0  ;;  %v6747_v42 = vpop.permute.xlu1 %792  ;;  %v754_v9 = vrot.slane %v740_v59, %v5879_v50 }
 0x1eb   : > { %8883 = vst [vmem:[#allocation14_spill] sm:$0xff] %v6747_v42 }
 0x1ec   : > { %1532 = vrot.lane.b32.xlu0 %v1478_v25, %s5475_s8  ;;  %1756 = vrot.lane.b32.xlu1 %v1662_v60, %s5476_s16  ;;  %v679_v29 = vrot.slane %v671_v30, %v5879_v50  ;;  %v757_v60 = vcombine.high %v747_v43, %v8837_v53 }
 0x1ee   : > { %v6749_v62 = vpop.permute.xlu0 %2476 }
 0x1f0   : > { %1978 = vrot.lane.b32.xlu0 %v1884_v6, %s5476_s16  ;;  %509 = vrot.lane.b32.xlu1 %v415_v19, %s5470_s23 }
 0x1f2   : > { %v6760_v46 = vpop.permute.xlu1 %1046  ;;  %v6762_v52 = vpop.permute.xlu0 %2230 }
 0x1f3   : > { %8884 = vst [vmem:[#allocation15_spill] sm:$0xff] %v6760_v46  ;;  %v8886_v46 = vcombine.high %v5789_v13, %v5792_v14  ;;  %v1482_v14 = vcombine.high %v1478_v25, %v8837_v53  ;;  %v689_v25 = vcombine.high %v679_v29, %v8837_v53 }
 0x1f4   : > { %541 = vrot.lane.b32.xlu0 %v501_v21, %s5473_s21  ;;  %772 = vrot.lane.b32.xlu1 %v679_v29, %s5471_s29  ;;  %v1011_v21 = vcombine.high %v1001_v7, %v8837_v53 }
 0x1f5   : > { %v1156_v43 = vrot.slane %v8886_v46, %v5879_v50  ;;  %v433_v46 = vcombine.high %v415_v19, %v8837_v53  ;;  %v5346_v19 = vld [vmem:[#allocation2 + $0x1c] ss:$48 sps:$4 sm:$0xff]  }
 0x1f6   : > { %v6768_v10 = vpop.permute.xlu1 %1524  ;;  %v6770_v8 = vpop.permute.xlu0 %2202 }
 0x1f7   : > { %8885 = vst [vmem:[#allocation31_spill] sm:$0xff] %v6768_v10  ;;  %v1160_v18 = vcombine.high %v1156_v43, %v8837_v53 }
 0x1f8   : > { %804 = vrot.lane.b32.xlu0 %v757_v60, %s5474_s9  ;;  %1026 = vrot.lane.b32.xlu1 %v933_v38, %s5471_s29  ;;  %v672_v38 = vcombine.high %v6736_v41, %v6724_v0 }
 0x1fa   : > { %v6778_v30 = vpop.permute.xlu1 %1780  ;;  %v6780_v6 = vpop.permute.xlu0 %2456  ;;  %v686_v41 = vrot.slane %v672_v38, %v5879_v50 }
 0x1fc   : > { %1058 = vrot.lane.b32.xlu0 %v1011_v21, %s5474_s9  ;;  %1250 = vrot.lane.b32.xlu1 %v1156_v43, %s5475_s8  ;;  %v5345_v21 = vld [vmem:[#allocation2 + $0x4] ss:$48 sps:$4 sm:$0xff]   ;;  %v926_v43 = vcombine.high %v6754_v2, %v6745_v51 }
 0x1fe   : > { %v6789_v54 = vpop.permute.xlu1 %764  ;;  %v6791_v60 = vpop.permute.xlu0 %1760 }
 0x1ff   : > { %8887 = vst [vmem:[#allocation29_spill] sm:$0xff] %v6789_v54  ;;  %v8890_v54 = vld [vmem:[#allocation19_spill] sm:$0xff] }
 0x200   : > { %1282 = vrot.lane.b32.xlu0 %v1228_v56, %s5476_s16  ;;  %1504 = vrot.lane.b32.xlu1 %v1410_v35, %s5475_s8 }
 0x202   : > { %v6797_v7 = vpop.permute.xlu1 %1018  ;;  %v6799_v13 = vpop.permute.xlu0 %1732 }
 0x203   : > { %8888 = vst [vmem:[#allocation25_spill] sm:$0xff] %v6797_v7  ;;  %v8889_v7 = vld [vmem:[#allocation18_spill] sm:$0xff] }
 0x204   : > { %1536 = vrot.lane.b32.xlu0 %v1482_v14, %s5476_s16  ;;  %513 = vrot.lane.b32.xlu1 %v433_v46, %s5473_s21  ;;  %v8891_v42 = vcombine.low %v8889_v7, %v8890_v54  ;;  %v383_v14 = vrot.slane %v5345_v21, %v5708_v27  ;;  %v1008_v21 = vrot.slane %v994_v16, %v5879_v50 }
 0x206   : > { %v6807_v32 = vpop.permute.xlu1 %2484  ;;  %v6809_v56 = vpop.permute.xlu0 %2210  ;;  %v492_v10 = vrot.slane %v8891_v42, %v5879_v50  ;;  %v399_v42 = vrot.slane %v5346_v19, %v5708_v27 }
 0x208   : > { %545 = vrot.lane.b32.xlu0 %v492_v10, %s5471_s29  ;;  %776 = vrot.lane.b32.xlu1 %v689_v25, %s5474_s9  ;;  %v416_v49 = vcombine.low %v383_v14, %v399_v42  ;;  %v502_v0 = vcombine.high %v492_v10, %v8837_v53  ;;  %v1012_v10 = vcombine.high %v1008_v21, %v8837_v53 }
 0x20a   : > { %v2239_v4 = vpop.permute.xlu1 %2238  ;;  %v6821_v46 = vpop.permute.xlu0 %2464  ;;  %v424_v27 = vrot.slane %v416_v49, %v5879_v50 }
 0x20c   : > { %808 = vrot.lane.b32.xlu0 %v754_v9, %s5475_s8  ;;  %1030 = vrot.lane.b32.xlu1 %v943_v28, %s5474_s9  ;;  %v1414_v28 = vcombine.high %v1410_v35, %v8837_v53  ;;  %v434_v38 = vcombine.high %v424_v27, %v8837_v53 }
 0x20e   : > { %v6828_v29 = vpop.permute.xlu1 %2492  ;;  %v6830_v25 = vpop.permute.xlu0 %1484 }
 0x20f   : > { %8892 = vst [vmem:[#allocation36_spill] sm:$0xff] %v6830_v25  ;;  %v940_v25 = vrot.slane %v926_v43, %v5879_v50 }
 0x210   : > { %1062 = vrot.lane.b32.xlu0 %v1008_v21, %s5475_s8  ;;  %1254 = vrot.lane.b32.xlu1 %v1160_v18, %s5476_s16  ;;  %v8896_v21 = vld [vmem:[#allocation38_spill] sm:$0xff] }
 0x212   : > { %v6838_v59 = vpop.permute.xlu1 %1512  ;;  %v6840_v19 = vpop.permute.xlu0 %1740 }
 0x213   : > { %8893 = vst [vmem:[#allocation34_spill] sm:$0xff] %v6838_v59 }
 0x214   : > { %1508 = vrot.lane.b32.xlu0 %v1414_v28, %s5476_s16  ;;  %517 = vrot.lane.b32.xlu1 %v424_v27, %s5471_s29  ;;  %v758_v28 = vcombine.high %v754_v9, %v8837_v53  ;;  %v2264_v27 = vsel %vm560_vm3, %v8896_v21, %v6762_v52  ;;  %v944_v52 = vcombine.high %v940_v25, %v8837_v53 }
 0x216   : > { %v6848_v16 = vpop.permute.xlu1 %1768  ;;  %v6850_v18 = vpop.permute.xlu0 %2218 }
 0x218   : > { %549 = vrot.lane.b32.xlu0 %v502_v0, %s5474_s9  ;;  %780 = vrot.lane.b32.xlu1 %v686_v41, %s5475_s8  ;;  %v417_v0 = vcombine.high %v383_v14, %v399_v42  ;;  %v8897_v42 = vld [vmem:[#allocation39_spill] sm:$0xff] }
 0x21a   : > { %v2247_v35 = vpop.permute.xlu1 %2246  ;;  %v6856_v49 = vpop.permute.xlu0 %2472  ;;  %v431_v14 = vrot.slane %v417_v0, %v5879_v50 }
 0x21c   : > { %812 = vrot.lane.b32.xlu0 %v758_v28, %s5476_s16  ;;  %1034 = vrot.lane.b32.xlu1 %v940_v25, %s5475_s8  ;;  %v8895_v28 = vcombine.high %v8889_v7, %v8890_v54  ;;  %v2265_v54 = vsel %vm562_vm4, %v2264_v27, %v6573_v36  ;;  %v8898_v25 = vld [vmem:[#allocation40_spill] sm:$0xff] }
 0x21e   : > { %v2501_v51 = vpop.permute.xlu1 %2500  ;;  %v6862_v2 = vpop.permute.xlu0 %788  ;;  %v499_v59 = vrot.slane %v8895_v28, %v5879_v50  ;;  %v2511_v28 = vsel %vm560_vm3, %v8898_v25, %v6780_v6 }
 0x21f   : > { %8894 = vst [vmem:[#allocation35_spill] sm:$0xff] %v6862_v2  ;;  %v690_v2 = vcombine.high %v686_v41, %v8837_v53  ;;  %v2512_v6 = vsel %vm562_vm4, %v2511_v28, %v6620_v63 }
 0x220   : > { %1066 = vrot.lane.b32.xlu0 %v1012_v10, %s5476_s16  ;;  %521 = vrot.lane.b32.xlu1 %v434_v38, %s5474_s9  ;;  %v2257_v10 = vsel %vm560_vm3, %v8897_v42, %v6770_v8  ;;  %v2266_v38 = vsel %vm564_vm5, %v2265_v54, %v2239_v4  ;;  %v435_v8 = vcombine.high %v431_v14, %v8837_v53 }
 0x221   : > { %v2258_v36 = vsel %vm562_vm4, %v2257_v10, %v6605_v55  ;;  %v503_v0 = vcombine.high %v499_v59, %v8837_v53  ;;  %v2513_v54 = vsel %vm564_vm5, %v2512_v6, %v6821_v46 }
 0x222   : > { %v6868_v9 = vpop.permute.xlu1 %1042  ;;  %v6870_v43 = vpop.permute.xlu0 %760  ;;  %v2259_v27 = vsel %vm564_vm5, %v2258_v36, %v6809_v56 }
 0x223   : > { %v2260_v56 = vsel %vm566_vm6, %v2259_v27, %v6665_v5 }
 0x224   : > { %553 = vrot.lane.b32.xlu0 %v499_v59, %s5475_s8  ;;  %784 = vrot.lane.b32.xlu1 %v690_v2, %s5476_s16  ;;  %v2518_v2 = vsel %vm560_vm3, %v6430_v26, %v6807_v32  ;;  %v2267_v32 = vsel %vm566_vm6, %v2266_v38, %v6628_v34  ;;  %v2630_v34 = vld [vmem:[%s8723_s3] sm:$0xf] }
 0x225   : > { %v2519_v26 = vsel %vm562_vm4, %v2518_v2, %v6595_v44  ;;  %v2268_v59 = vsel %vm568_vm7, %v2267_v32, %v2247_v35  ;;  %v2622_v44 = vld [vmem:[%s8722_s2] sm:$0xf] }
 0x226   : > { %v6888_v7 = vpop.permute.xlu1 %1520  ;;  %v6890_v41 = vpop.permute.xlu0 %1014  ;;  %v2520_v55 = vsel %vm564_vm5, %v2519_v26, %v6828_v29  ;;  %v2269_v42 = vsel %vm570_vm9, %v2268_v59, %v6698_v3  ;;  %v8899_v26 = vld [vmem:[#allocation41_spill] sm:$0xff] }
 0x227   : > { %v2521_v29 = vsel %vm566_vm6, %v2520_v55, %v6656_v37  ;;  %v2514_v37 = vsel %vm566_vm6, %v2513_v54, %v6689_v58  ;;  %v1794_v32 = vsel %vm560_vm3, %v8899_v26, %v6791_v60 }
 0x228   : > { %1038 = vrot.lane.b32.xlu0 %v944_v52, %s5476_s16  ;;  %525 = vrot.lane.b32.xlu1 %v431_v14, %s5475_s8  ;;  %v5477_v14 = vmov 0   ;;  %v2261_v52 = vsel %vm568_vm7, %v2260_v56, %v6850_v18  ;;  %v2522_v63 = vsel %vm568_vm7, %v2521_v29, %v2501_v51  ;;  %v2515_v18 = vsel %vm568_vm7, %v2514_v37, %v6856_v49 }
 0x229   : > { %5321 = vset.pattern.permute.xlu0 %v5477_v14  ;;  %5322 = vset.pattern.permute.xlu1 %v5477_v14  ;;  %v2523_v3 = vsel %vm570_vm9, %v2522_v63, %v6717_v40  ;;  %v2262_v46 = vsel %vm570_vm9, %v2261_v52, %v6728_v12  ;;  %v2516_v25 = vsel %vm570_vm9, %v2515_v18, %v6749_v62 }
 0x22a   : > { %v1777_v4 = vpop.permute.xlu1 %1776  ;;  %v6910_v21 = vpop.permute.xlu0 %1492  ;;  %v1795_v62 = vsel %vm562_vm4, %v1794_v32, %v6607_v47 }
 0x22b   : > { %v1796_v14 = vsel %vm564_vm5, %v1795_v62, %v6848_v16 }
 0x22c   : > { %557 = vrot.lane.b32.xlu0 %v503_v0, %s5476_s16  ;;  %529 = vrot.lane.b32.xlu1 %v435_v8, %s5476_s16  ;;  %v1797_v6 = vsel %vm566_vm6, %v1796_v14, %v6691_v61 }
 0x22d   : > { %v1798_v47 = vsel %vm568_vm7, %v1797_v6, %v1777_v4  ;;  %v8903_v6 = vld [vmem:[#allocation21_spill] sm:$0xff] }
 0x22e   : > { %v2255_v35 = vpop.permute.xlu1 %2254  ;;  %v6933_v10 = vpop.permute.xlu0 %1748  ;;  %v1799_v52 = vsel %vm570_vm9, %v1798_v47, %v6778_v30 }
 0x22f   : > { %v2270_v2 = vsel %vm572_vm8, %v2269_v42, %v2255_v35  ;;  %v8901_v35 = vld [vmem:[#allocation42_spill] sm:$0xff] }
 0x230   : > { %v2274_v5 = vrot.slane %v2270_v2, 4  ;;  %2625 = vperm.xlu0 %5321, %v2622_v44   ;;  %2633 = vperm.xlu1 %5322, %v2630_v34   ;;  %v8900_v34 = vld [vmem:[#allocation22_spill] sm:$0xff] }
 0x231   : > { %v2016_v60 = vsel %vm560_vm3, %v8900_v34, %v6489_v15 }
 0x232   : > { %2278 = vst [vmem:[#allocation4 + $0x20] sm:$0xf0] %v2274_v5  ;;  %v2509_v38 = vpop.permute.xlu1 %2508  ;;  %v2227_v8 = vpop.permute.xlu0 %2226  ;;  %v2017_v42 = vsel %vm562_vm4, %v2016_v60, %v8901_v35  ;;  %v8904_v35 = vld [vmem:[#allocation43_spill] sm:$0xff] }
 0x233   : > { %v2524_v51 = vsel %vm572_vm8, %v2523_v3, %v2509_v38  ;;  %v2263_v36 = vsel %vm572_vm8, %v2262_v46, %v2227_v8  ;;  %v2018_v16 = vsel %vm564_vm5, %v2017_v42, %v6506_v11 }
 0x234   : > { %2526 = vst [vmem:[#allocation4 + $0x38] sm:$0xf] %v2524_v51  ;;  %v2273_v0 = vrot.slane %v2263_v36, 4  ;;  %v2019_v61 = vsel %vm566_vm6, %v2018_v16, %v6455_v45  ;;  %v8902_v36 = vld [vmem:[#allocation20_spill] sm:$0xff] }
 0x235   : > { %v2020_v4 = vsel %vm568_vm7, %v2019_v61, %v6543_v39  ;;  %v1787_v39 = vsel %vm560_vm3, %v6414_v24, %v6799_v13  ;;  %v8905_v16 = vld [vmem:[#allocation52_spill] sm:$0xff] }
 0x236   : > { %2277 = vst [vmem:[#allocation4 + $0x8] sm:$0xf0] %v2273_v0  ;;  %v2481_v58 = vpop.permute.xlu1 %2480  ;;  %v6953_v40 = vpop.permute.xlu0 %796  ;;  %v2021_v5 = vsel %vm570_vm9, %v2020_v4, %v6559_v57  ;;  %v1788_v51 = vsel %vm562_vm4, %v1787_v39, %v6634_v31  ;;  %v2009_v0 = vsel %vm560_vm3, %v8902_v36, %v6487_v17  ;;  %v8908_v4 = vld [vmem:[#allocation32_spill] sm:$0xff] }
 0x237   : > { %v2517_v28 = vsel %vm572_vm8, %v2516_v25, %v2481_v58  ;;  %v1789_v58 = vsel %vm564_vm5, %v1788_v51, %v6840_v19  ;;  %v2010_v24 = vsel %vm562_vm4, %v2009_v0, %v6432_v22 }
 0x238   : > { %2525 = vst [vmem:[#allocation4 + $0x40] sm:$0xf] %v2517_v28  ;;  %v1790_v13 = vsel %vm566_vm6, %v1789_v58, %v6708_v20  ;;  %v2011_v26 = vsel %vm564_vm5, %v2010_v24, %v6541_v33  ;;  %v8910_v58 = vld [vmem:[#allocation31_spill] sm:$0xff] }
 0x239   : > { %v1791_v31 = vsel %vm568_vm7, %v1790_v13, %v6933_v10  ;;  %v2012_v62 = vsel %vm566_vm6, %v2011_v26, %v6469_v23  ;;  %v1292_v23 = vsel %vm560_vm3, %v8903_v6, %v6504_v1  ;;  %v8915_v6 = vld [vmem:[#allocation36_spill] sm:$0xff] }
 0x23a   : > { %v6956_v12 = vpop.permute.xlu1 %1242  ;;  %v6958_v49 = vpop.permute.xlu0 %1050  ;;  %v2013_v22 = vsel %vm568_vm7, %v2012_v62, %v6571_v48  ;;  %v1293_v42 = vsel %vm562_vm4, %v1292_v23, %v8904_v35  ;;  %v8912_v62 = vld [vmem:[#allocation23_spill] sm:$0xff]  ;;  %v8916_v23 = vld [vmem:[#allocation45_spill] sm:$0xff] }
 0x23b   : > { %v2539_v27 = vld [vmem:[#allocation4 + $0x38] sm:$0xf] }
 0x23c   : > { %5246 = vmatprep.subr.msk.mxu0 %vm2544_vm10, %v2539_v27 }
 0x23e   : > { %v6966_v55 = vpop.permute.xlu1 %1496  ;;  %v6968_v59 = vpop.permute.xlu0 %1274 }
 0x23f   : > { %v2538_v44 = vld [vmem:[#allocation4 + $0x40] sm:$0xf] }
 0x240   : > { %5247 = vmatpush1.msk.msra.mxu0 %vm2544_vm10, %v2538_v44 }
 0x242   : > { %v1753_v56 = vpop.permute.xlu1 %1752  ;;  %v6978_v29 = vpop.permute.xlu0 %1528 }
 0x243   : > { %v1792_v17 = vsel %vm570_vm9, %v1791_v31, %v1753_v56 }
 0x246   : > { %v1975_v54 = vpop.permute.xlu1 %1974  ;;  %v1785_v63 = vpop.permute.xlu0 %1784 }
 0x247   : > { %v1800_v15 = vsel %vm572_vm8, %v1799_v52, %v1785_v63  ;;  %v2014_v20 = vsel %vm570_vm9, %v2013_v22, %v1975_v54  ;;  %v1294_v54 = vsel %vm564_vm5, %v1293_v42, %v8905_v16  ;;  %v8906_v52 = vld [vmem:[#allocation34_spill] sm:$0xff]  ;;  %v8913_v22 = vld [vmem:[#allocation44_spill] sm:$0xff] }
 0x248   : > { %v1804_v2 = vrot.slane %v1800_v15, 4  ;;  %v8907_v63 = vld [vmem:[#allocation46_spill] sm:$0xff] }
 0x249   : > { %v1546_v15 = vsel %vm560_vm3, %v8907_v63, %v8906_v52 }
 0x24a   : > { %1808 = vst [vmem:[#allocation4 + $0x28] sm:$0xf0] %v1804_v2  ;;  %v2007_v37 = vpop.permute.xlu0 %2006  ;;  %v6994_v11 = vpop.permute.xlu1 %505  ;;  %v1547_v1 = vsel %vm562_vm4, %v1546_v15, %v8908_v4 }
 0x24b   : > { %v2022_v3 = vsel %vm572_vm8, %v2021_v5, %v2007_v37  ;;  %v8909_v5 = vld [vmem:[#allocation47_spill] sm:$0xff] }
 0x24c   : > { %2024 = vst [vmem:[#allocation4 + $0x20] sm:$0xf] %v2022_v3  ;;  %v1295_v37 = vsel %vm566_vm6, %v1294_v54, %v8909_v5  ;;  %v1548_v3 = vsel %vm564_vm5, %v1547_v1, %v6888_v7  ;;  %v8917_v54 = vld [vmem:[#allocation30_spill] sm:$0xff] }
 0x24d   : > { %v1549_v24 = vsel %vm566_vm6, %v1548_v3, %v8910_v58  ;;  %v8920_v58 = vld [vmem:[#allocation14_spill] sm:$0xff] }
 0x24e   : > { %v6997_v30 = vpop.permute.xlu0 %537  ;;  %v6999_v38 = vpop.permute.xlu1 %768  ;;  %v1550_v26 = vsel %vm568_vm7, %v1549_v24, %v6978_v29 }
 0x252   : > { %v7001_v46 = vpop.permute.xlu0 %800  ;;  %v7003_v45 = vpop.permute.xlu1 %1022 }
 0x253   : > { %v2537_v8 = vld [vmem:[#allocation4 + $0x20] sm:$0xff] }
 0x254   : > { %2575 = vmatprep.subr.mxu0 %v2537_v8  ;;  %v1296_v8 = vsel %vm568_vm7, %v1295_v37, %v6968_v59 }
 0x256   : > { %v7008_v57 = vpop.permute.xlu0 %1054  ;;  %v7010_v18 = vpop.permute.xlu1 %1246 }
 0x25a   : > { %v1279_v25 = vpop.permute.xlu0 %1278  ;;  %v7019_v28 = vpop.permute.xlu1 %1500 }
 0x25b   : > { %v1297_v39 = vsel %vm570_vm9, %v1296_v8, %v1279_v25 }
 0x25e   : > { %v1533_v32 = vpop.permute.xlu0 %1532  ;;  %v1757_v27 = vpop.permute.xlu1 %1756 }
 0x25f   : > { %v1793_v19 = vsel %vm572_vm8, %v1792_v17, %v1757_v27  ;;  %v1551_v31 = vsel %vm570_vm9, %v1550_v26, %v1533_v32  ;;  %v8914_v32 = vld [vmem:[#allocation54_spill] sm:$0xff]  ;;  %v8921_v26 = vld [vmem:[#allocation49_spill] sm:$0xff] }
 0x260   : > { %v1803_v14 = vrot.slane %v1793_v19, 4  ;;  %v8911_v19 = vld [vmem:[#allocation51_spill] sm:$0xff] }
 0x262   : > { %1807 = vst [vmem:[#allocation4 + $0x48] sm:$0xf0] %v1803_v14  ;;  %v1979_v33 = vpop.permute.xlu0 %1978  ;;  %v7036_v44 = vpop.permute.xlu1 %509  ;;  %v1285_v14 = vsel %vm560_vm3, %v8912_v62, %v8911_v19 }
 0x263   : > { %v2015_v10 = vsel %vm572_vm8, %v2014_v20, %v1979_v33  ;;  %v1286_v20 = vsel %vm562_vm4, %v1285_v14, %v8913_v22 }
 0x264   : > { %2023 = vst [vmem:[#allocation4 + $0x8] sm:$0xf] %v2015_v10  ;;  %v1287_v10 = vsel %vm564_vm5, %v1286_v20, %v8914_v32  ;;  %v8923_v20 = vld [vmem:[#allocation50_spill] sm:$0xff] }
 0x265   : > { %v1288_v42 = vsel %vm566_vm6, %v1287_v10, %v6956_v12  ;;  %v815_v32 = vsel %vm560_vm3, %v8923_v20, %v6870_v43 }
 0x266   : > { %v7039_v34 = vpop.permute.xlu0 %541  ;;  %v7041_v60 = vpop.permute.xlu1 %772  ;;  %v1289_v16 = vsel %vm568_vm7, %v1288_v42, %v7010_v18 }
 0x26a   : > { %v805_v56 = vpop.permute.xlu0 %804  ;;  %v7046_v47 = vpop.permute.xlu1 %1026 }
 0x26b   : > { %v2536_v48 = vld [vmem:[#allocation4 + $0x8] sm:$0xff] }
 0x26c   : > { %2576 = vmatpush1.msra.mxu0 %v2536_v48  ;;  %v1539_v48 = vsel %vm560_vm3, %v8916_v23, %v8915_v6  ;;  %v8924_v6 = vld [vmem:[#allocation29_spill] sm:$0xff] }
 0x26d   : > { %v1540_v52 = vsel %vm562_vm4, %v1539_v48, %v8917_v54  ;;  %v816_v23 = vsel %vm562_vm4, %v815_v32, %v8924_v6 }
 0x26e   : > { %v7055_v61 = vpop.permute.xlu0 %1058  ;;  %v1251_v2 = vpop.permute.xlu1 %1250  ;;  %v1541_v1 = vsel %vm564_vm5, %v1540_v52, %v6910_v21  ;;  %v8926_v52 = vld [vmem:[#allocation25_spill] sm:$0xff] }
 0x26f   : > { %v1290_v63 = vsel %vm570_vm9, %v1289_v16, %v1251_v2  ;;  %v1542_v37 = vsel %vm566_vm6, %v1541_v1, %v6966_v55  ;;  %v8918_v2 = vld [vmem:[#allocation35_spill] sm:$0xff] }
 0x270   : > { %v1543_v3 = vsel %vm568_vm7, %v1542_v37, %v7019_v28  ;;  %v1076_v28 = vsel %vm560_vm3, %v8921_v26, %v6868_v9 }
 0x272   : > { %v1283_v51 = vpop.permute.xlu0 %1282  ;;  %v1505_v36 = vpop.permute.xlu1 %1504 }
 0x273   : > { %v1298_v0 = vsel %vm572_vm8, %v1297_v39, %v1283_v51  ;;  %v1544_v18 = vsel %vm570_vm9, %v1543_v3, %v1505_v36  ;;  %v8919_v51 = vld [vmem:[#allocation48_spill] sm:$0xff]  ;;  %v8929_v3 = vld [vmem:[#allocation26_spill] sm:$0xff] }
 0x274   : > { %v1302_v13 = vrot.slane %v1298_v0, 4  ;;  %v822_v0 = vsel %vm560_vm3, %v8919_v51, %v8918_v2 }
 0x275   : > { %v823_v24 = vsel %vm562_vm4, %v822_v0, %v8920_v58 }
 0x276   : > { %1306 = vst [vmem:[#allocation4 + $0x10] sm:$0xf0] %v1302_v13  ;;  %v1537_v7 = vpop.permute.xlu0 %1536  ;;  %v7072_v17 = vpop.permute.xlu1 %513  ;;  %v824_v36 = vsel %vm564_vm5, %v823_v24, %v6953_v40 }
 0x277   : > { %v1552_v59 = vsel %vm572_vm8, %v1551_v31, %v1537_v7  ;;  %v825_v31 = vsel %vm566_vm6, %v824_v36, %v7001_v46 }
 0x278   : > { %1554 = vst [vmem:[#allocation4 + $0x28] sm:$0xf] %v1552_v59  ;;  %v826_v7 = vsel %vm568_vm7, %v825_v31, %v805_v56  ;;  %v8922_v59 = vld [vmem:[#allocation15_spill] sm:$0xff] }
 0x279   : > { %v1077_v19 = vsel %vm562_vm4, %v1076_v28, %v8922_v59 }
 0x27a   : > { %v7075_v25 = vpop.permute.xlu0 %545  ;;  %v777_v27 = vpop.permute.xlu1 %776  ;;  %v1078_v9 = vsel %vm564_vm5, %v1077_v19, %v6958_v49  ;;  %v8925_v49 = vld [vmem:[#allocation53_spill] sm:$0xff] }
 0x27b   : > { %v1079_v46 = vsel %vm566_vm6, %v1078_v9, %v7008_v57  ;;  %v1069_v42 = vsel %vm560_vm3, %v8925_v49, %v6890_v41  ;;  %v817_v57 = vsel %vm564_vm5, %v816_v23, %v6999_v38 }
 0x27e   : > { %v809_v29 = vpop.permute.xlu0 %808  ;;  %v7082_v33 = vpop.permute.xlu1 %1030 }
 0x27f   : > { %v2535_v35 = vld [vmem:[#allocation4 + $0x28] sm:$0xff]  ;;  %v827_v62 = vsel %vm570_vm9, %v826_v7, %v809_v29  ;;  %v1080_v29 = vsel %vm568_vm7, %v1079_v46, %v7055_v61  ;;  %v818_v61 = vsel %vm566_vm6, %v817_v57, %v7041_v60  ;;  %v8927_v60 = vld [vmem:[#allocation55_spill] sm:$0xff] }
 0x280   : > { %2577 = vmatprep.subr.mxu0 %v2535_v35  ;;  %v819_v54 = vsel %vm568_vm7, %v818_v61, %v777_v27  ;;  %v8930_v57 = vld [vmem:[#allocation11_spill] sm:$0xff] }
 0x282   : > { %v1063_v15 = vpop.permute.xlu0 %1062  ;;  %v1255_v4 = vpop.permute.xlu1 %1254 }
 0x283   : > { %v1291_v5 = vsel %vm572_vm8, %v1290_v63, %v1255_v4  ;;  %v1081_v48 = vsel %vm570_vm9, %v1080_v29, %v1063_v15  ;;  %v1070_v63 = vsel %vm562_vm4, %v1069_v42, %v8926_v52 }
 0x284   : > { %v1301_v12 = vrot.slane %v1291_v5, 4  ;;  %v1071_v41 = vsel %vm564_vm5, %v1070_v63, %v7003_v45 }
 0x285   : > { %v1072_v5 = vsel %vm566_vm6, %v1071_v41, %v7046_v47 }
 0x286   : > { %1305 = vst [vmem:[#allocation4 + $0x18] sm:$0xf0] %v1301_v12  ;;  %v1509_v8 = vpop.permute.xlu0 %1508  ;;  %v518_v39 = vpop.permute.xlu1 %517  ;;  %v8928_v12 = vld [vmem:[#allocation24_spill] sm:$0xff] }
 0x287   : > { %v1545_v21 = vsel %vm572_vm8, %v1544_v18, %v1509_v8  ;;  %v574_v27 = vsel %vm560_vm3, %v8928_v12, %v8927_v60  ;;  %v561_v18 = vsel %vm560_vm3, %v8929_v3, %v6994_v11  ;;  %v1073_v8 = vsel %vm568_vm7, %v1072_v5, %v7082_v33 }
 0x288   : > { %1553 = vst [vmem:[#allocation4 + $0x48] sm:$0xf] %v1545_v21  ;;  %v575_v45 = vsel %vm562_vm4, %v574_v27, %v6997_v30  ;;  %v563_v2 = vsel %vm562_vm4, %v561_v18, %v7036_v44 }
 0x289   : > { %v576_v21 = vsel %vm564_vm5, %v575_v45, %v7039_v34  ;;  %v565_v11 = vsel %vm564_vm5, %v563_v2, %v7072_v17 }
 0x28a   : > { %v550_v55 = vpop.permute.xlu0 %549  ;;  %v781_v13 = vpop.permute.xlu1 %780  ;;  %v577_v30 = vsel %vm566_vm6, %v576_v21, %v7075_v25  ;;  %v567_v24 = vsel %vm566_vm6, %v565_v11, %v518_v39 }
 0x28b   : > { %v820_v15 = vsel %vm570_vm9, %v819_v54, %v781_v13  ;;  %v578_v44 = vsel %vm568_vm7, %v577_v30, %v550_v55  ;;  %v2529_v55 = vld [vmem:[%s8721_s1] sm:$0xf] }
 0x28e   : > { %v813_v14 = vpop.permute.xlu0 %812  ;;  %v1035_v22 = vpop.permute.xlu1 %1034 }
 0x28f   : > { %v828_v40 = vsel %vm572_vm8, %v827_v62, %v813_v14  ;;  %v2534_v10 = vld [vmem:[#allocation4 + $0x48] sm:$0xff]  ;;  %v1074_v47 = vsel %vm570_vm9, %v1073_v8, %v1035_v22 }
 0x290   : > { %v832_v56 = vrot.slane %v828_v40, 4  ;;  %2578 = vmatpush1.msra.mxu0 %v2534_v10 }
 0x292   : > { %836 = vst [vmem:[#allocation4] sm:$0xf0] %v832_v56  ;;  %v1067_v43 = vpop.permute.xlu0 %1066  ;;  %v522_v35 = vpop.permute.xlu1 %521 }
 0x293   : > { %v1082_v16 = vsel %vm572_vm8, %v1081_v48, %v1067_v43  ;;  %v569_v13 = vsel %vm568_vm7, %v567_v24, %v522_v35 }
 0x294   : > { %1084 = vst [vmem:[#allocation4 + $0x10] sm:$0xf] %v1082_v16 }
 0x296   : > { %v554_v4 = vpop.permute.xlu0 %553  ;;  %v785_v1 = vpop.permute.xlu1 %784 }
 0x297   : > { %v821_v38 = vsel %vm572_vm8, %v820_v15, %v785_v1  ;;  %v579_v26 = vsel %vm570_vm9, %v578_v44, %v554_v4 }
 0x298   : > { %v831_v37 = vrot.slane %v821_v38, 4 }
 0x29a   : > { %835 = vst [vmem:[#allocation4 + $0x30] sm:$0xf0] %v831_v37  ;;  %v1039_v51 = vpop.permute.xlu0 %1038  ;;  %v526_v0 = vpop.permute.xlu1 %525 }
 0x29b   : > { %v1075_v58 = vsel %vm572_vm8, %v1074_v47, %v1039_v51  ;;  %v2533_v33 = vld [vmem:[#allocation4 + $0x10] sm:$0xff]  ;;  %v571_v34 = vsel %vm570_vm9, %v569_v13, %v526_v0 }
 0x29c   : > { %1083 = vst [vmem:[#allocation4 + $0x18] sm:$0xf] %v1075_v58  ;;  %2579 = vmatprep.subr.mxu0 %v2533_v33 }
 0x29e   : > { %v558_v28 = vpop.permute.xlu0 %557  ;;  %v530_v17 = vpop.permute.xlu1 %529 }
 0x29f   : > { %v580_v36 = vsel %vm572_vm8, %v579_v26, %v558_v28  ;;  %v573_v31 = vsel %vm572_vm8, %v571_v34, %v530_v17 }
 0x2a0   : > { %582 = vst [vmem:[#allocation4] sm:$0xf] %v580_v36  ;;  %581 = vst [vmem:[#allocation4 + $0x30] sm:$0xf] %v573_v31 }
 0x2a3   : > { %v2532_v25 = vld [vmem:[#allocation4 + $0x18] sm:$0xff] }
 0x2a4   : > { %2580 = vmatpush1.msra.mxu0 %v2532_v25 }
 0x2a7   : > { %v2531_v39 = vld [vmem:[#allocation4] sm:$0xff]  ;;  %v2530_v7 = vld [vmem:[#allocation4 + $0x30] sm:$0xff] }
 0x2a8   : > { %2581 = vmatprep.subr.mxu0 %v2531_v39 }
 0x2a9   : > { %2582 = vmatpush1.msra.mxu0 %v2530_v7 }
 0x2aa   : > { %5248 = vmatmul.mubr.msk.f32.vlgmr.msra.gmra.mxu0 %vm2540_vm11, %v2529_v55 }
 0x2ab   : > { %v2626_v59 = vpop.permute.xlu0 %2625  ;;  %v2634_v62 = vpop.permute.xlu1 %2633 }
 0x36a   : > { %v2617_v19 = vpop.f32.mrf.mxu0 }
 0x36b   : > { %v2628_v14 = vmul.f32 %v2626_v59, %v2617_v19 }
 0x36c   : > { %v2619_v20 = vpop.f32.mrf.mxu0 }
 0x36d   : > { %v2636_v22 = vadd.f32 %v2634_v62, %v2628_v14  ;;  %v2629_v9 = vmul.f32 %v2626_v59, %v2619_v20 }
 0x36f   : > { %v2638_v32 = vmax.f32 %v2636_v22, 0.0  ;;  %v2637_v10 = vadd.f32 %v2634_v62, %v2629_v9 }
 0x371   : > { %v2640_v40 = vmin.f32 %v2638_v32, 20.0  ;;  %v2639_v46 = vmax.f32 %v2637_v10, 0.0 }
 0x373   : > { %2658 = vrot.lane.b32.xlu1 %v2640_v40, %s5475_s8  ;;  %2655 = vrot.lane.b32.xlu0 %v2640_v40, %s5476_s16  ;;  %v2641_v56 = vmin.f32 %v2639_v46, 20.0 }
 0x377   : > { %2664 = vrot.lane.b32.xlu1 %v2640_v40, %s5471_s29  ;;  %2661 = vrot.lane.b32.xlu0 %v2640_v40, %s5474_s9 }
 0x37b   : > { %2670 = vrot.lane.b32.xlu1 %v2640_v40, %s5470_s23  ;;  %2667 = vrot.lane.b32.xlu0 %v2640_v40, %s5473_s21 }
 0x37f   : > { %2677 = vrot.lane.b32.xlu1 %v2641_v56, %s5476_s16  ;;  %2673 = vrot.lane.b32.xlu0 %v2640_v40, %s5472_s19 }
 0x383   : > { %2683 = vrot.lane.b32.xlu1 %v2641_v56, %s5474_s9  ;;  %2680 = vrot.lane.b32.xlu0 %v2641_v56, %s5475_s8 }
 0x387   : > { %2689 = vrot.lane.b32.xlu1 %v2641_v56, %s5473_s21  ;;  %2686 = vrot.lane.b32.xlu0 %v2641_v56, %s5471_s29 }
 0x38b   : > { %2695 = vrot.lane.b32.xlu1 %v2641_v56, %s5472_s19  ;;  %2692 = vrot.lane.b32.xlu0 %v2641_v56, %s5470_s23 }
 0x3e5   : > { %v2659_v29 = vpop.permute.xlu1 %2658  ;;  %v2656_v6 = vpop.permute.xlu0 %2655 }
 0x3e6   : > { %v2698_v42 = vcombine.low %v2640_v40, %v2659_v29 }
 0x3e8   : > { %v2705_v63 = vrot.slane %v2698_v42, %v8930_v57 }
 0x3e9   : > { %v2665_v23 = vpop.permute.xlu1 %2664  ;;  %v2662_v48 = vpop.permute.xlu0 %2661 }
 0x3ea   : > { %v2706_v43 = vcombine.low %v2656_v6, %v2662_v48 }
 0x3ec   : > { %v2713_v16 = vrot.slane %v2706_v43, %v8930_v57 }
 0x3ed   : > { %v2671_v35 = vpop.permute.xlu1 %2670  ;;  %v2668_v49 = vpop.permute.xlu0 %2667 }
 0x3ee   : > { %v2714_v61 = vcombine.low %v2665_v23, %v2671_v35  ;;  %v2730_v4 = vcombine.low %v2705_v63, %v2713_v16  ;;  %v2731_v12 = vcombine.high %v2705_v63, %v2713_v16 }
 0x3f0   : > { %v2721_v1 = vrot.slane %v2714_v61, %v8930_v57  ;;  %v2738_v27 = vrot.slane %v2730_v4, %v5879_v50  ;;  %v2745_v21 = vrot.slane %v2731_v12, %v5879_v50 }
 0x3f1   : > { %v2678_v54 = vpop.permute.xlu1 %2677  ;;  %v2674_v52 = vpop.permute.xlu0 %2673 }
 0x3f2   : > { %v2722_v15 = vcombine.low %v2668_v49, %v2674_v52 }
 0x3f4   : > { %v2729_v41 = vrot.slane %v2722_v15, %v8930_v57 }
 0x3f5   : > { %v2684_v38 = vpop.permute.xlu1 %2683  ;;  %v2681_v5 = vpop.permute.xlu0 %2680 }
 0x3f6   : > { %v2746_v37 = vcombine.low %v2721_v1, %v2729_v41  ;;  %v2747_v60 = vcombine.high %v2721_v1, %v2729_v41  ;;  %v2774_v18 = vcombine.low %v2678_v54, %v2684_v38  ;;  %v2766_v8 = vcombine.low %v2641_v56, %v2681_v5 }
 0x3f8   : > { %v2754_v3 = vrot.slane %v2746_v37, %v5879_v50  ;;  %v2761_v47 = vrot.slane %v2747_v60, %v5879_v50  ;;  %v2781_v11 = vrot.slane %v2774_v18, %v8930_v57  ;;  %v2773_v58 = vrot.slane %v2766_v8, %v8930_v57 }
 0x3f9   : > { %v2690_v45 = vpop.permute.xlu1 %2689  ;;  %v2687_v2 = vpop.permute.xlu0 %2686 }
 0x3fa   : > { %v2763_v51 = vcombine.high %v2738_v27, %v2754_v3  ;;  %v2762_v0 = vcombine.low %v2738_v27, %v2754_v3  ;;  %v2765_v13 = vcombine.high %v2745_v21, %v2761_v47  ;;  %v2764_v26 = vcombine.low %v2745_v21, %v2761_v47 }
 0x3fb   : > { %v2798_v34 = vcombine.low %v2773_v58, %v2781_v11  ;;  %v2799_v25 = vcombine.high %v2773_v58, %v2781_v11 }
 0x3fc   : > { %2846 = vrot.lane.b32.xlu0 %v2763_v51, %s5465_s12  ;;  %2842 = vrot.lane.b32.xlu1 %v2762_v0, %s5465_s12 }
 0x3fd   : > { %v2696_v33 = vpop.permute.xlu1 %2695  ;;  %v2693_v30 = vpop.permute.xlu0 %2692  ;;  %v2806_v39 = vrot.slane %v2798_v34, %v5879_v50  ;;  %v2813_v62 = vrot.slane %v2799_v25, %v5879_v50 }
 0x3fe   : > { %v2790_v24 = vcombine.low %v2690_v45, %v2696_v33  ;;  %v2782_v44 = vcombine.low %v2687_v2, %v2693_v30 }
 0x400   : > { %v2797_v28 = vrot.slane %v2790_v24, %v8930_v57  ;;  %v2789_v17 = vrot.slane %v2782_v44, %v8930_v57  ;;  %2854 = vrot.lane.b32.xlu0 %v2765_v13, %s5465_s12  ;;  %2850 = vrot.lane.b32.xlu1 %v2764_v26, %s5465_s12 }
 0x402   : > { %v2814_v36 = vcombine.low %v2789_v17, %v2797_v28  ;;  %v2815_v31 = vcombine.high %v2789_v17, %v2797_v28 }
 0x404   : > { %v2822_v7 = vrot.slane %v2814_v36, %v5879_v50  ;;  %v2829_v55 = vrot.slane %v2815_v31, %v5879_v50 }
 0x406   : > { %v2831_v59 = vcombine.high %v2806_v39, %v2822_v7  ;;  %v2830_v19 = vcombine.low %v2806_v39, %v2822_v7  ;;  %v2833_v14 = vcombine.high %v2813_v62, %v2829_v55  ;;  %v2832_v22 = vcombine.low %v2813_v62, %v2829_v55 }
 0x408   : > { %2848 = vrot.lane.b32.xlu0 %v2831_v59, %s5465_s12  ;;  %2844 = vrot.lane.b32.xlu1 %v2830_v19, %s5465_s12 }
 0x40c   : > { %2856 = vrot.lane.b32.xlu0 %v2833_v14, %s5465_s12  ;;  %2852 = vrot.lane.b32.xlu1 %v2832_v22, %s5465_s12  ;;  %s8932_s12 = smov 127  }
 0x46e   : > { %v2843_v20 = vpop.permute.xlu1 %2842  ;;  %v2847_v32 = vpop.permute.xlu0 %2846 }
 0x46f   : > { %2866 = vst.msk [vmem:[#allocation3 + $0x1] sm:$0xff] %vm351_vm2, %v2843_v20  ;;  %2868 = vst.msk [vmem:[#allocation3 + $0x19] sm:$0xff] %vm351_vm2, %v2847_v32 }
 0x472   : > { %v2851_v9 = vpop.permute.xlu1 %2850  ;;  %v2855_v40 = vpop.permute.xlu0 %2854 }
 0x473   : > { %2870 = vst.msk [vmem:[#allocation3 + $0x31] sm:$0xff] %vm351_vm2, %v2851_v9  ;;  %2872 = vst.msk [vmem:[#allocation3 + $0x49] sm:$0xff] %vm351_vm2, %v2855_v40 }
 0x476   : > { %v4062_v10 = vld [vmem:[#allocation3 + $0x1] sm:$0xff]  ;;  %v4064_v46 = vld [vmem:[#allocation3 + $0x19] sm:$0xff] }
 0x477   : > { %4078 = vrot.lane.b32.xlu1 %v4062_v10, %s5468_s22  ;;  %4082 = vrot.lane.b32.xlu0 %v4064_v46, %s5468_s22  ;;  %v3090_v43 = vld [vmem:[#allocation3] sm:$0xff]  ;;  %v3092_v35 = vld [vmem:[#allocation3 + $0x18] sm:$0xff] }
 0x47a   : > { %v2845_v56 = vpop.permute.xlu1 %2844  ;;  %v2849_v29 = vpop.permute.xlu0 %2848  ;;  %v4066_v6 = vld [vmem:[#allocation3 + $0x31] sm:$0xff]  ;;  %v4068_v23 = vld [vmem:[#allocation3 + $0x49] sm:$0xff] }
 0x47b   : > { %v3094_v48 = vld [vmem:[#allocation3 + $0x30] sm:$0xff]  ;;  %2867 = vst.msk [vmem:[#allocation3 + $0x9] sm:$0xff] %vm351_vm2, %v2845_v56  ;;  %2869 = vst.msk [vmem:[#allocation3 + $0x21] sm:$0xff] %vm351_vm2, %v2849_v29  ;;  %4086 = vrot.lane.b32.xlu1 %v4066_v6, %s5468_s22  ;;  %4090 = vrot.lane.b32.xlu0 %v4068_v23, %s5468_s22  ;;  %v3096_v49 = vld [vmem:[#allocation3 + $0x48] sm:$0xff]  ;;  %v3600_v42 = vcombine.low %v4062_v10, %v4066_v6  ;;  %v3616_v16 = vcombine.low %v4064_v46, %v4068_v23 }
 0x47c   : > { %v3601_v61 = vcombine.high %v4062_v10, %v4066_v6  ;;  %v3617_v54 = vcombine.high %v4064_v46, %v4068_v23  ;;  %v2882_v52 = vcombine.low %v3090_v43, %v3094_v48  ;;  %v2898_v63 = vcombine.low %v3092_v35, %v3096_v49 }
 0x47d   : > { %v2883_v15 = vcombine.high %v3090_v43, %v3094_v48  ;;  %v7231_v4 = vrot.slane %v3600_v42, %v8930_v57  ;;  %v7234_v1 = vrot.slane %v3616_v16, %v8930_v57  ;;  %v2899_v38 = vcombine.high %v3092_v35, %v3096_v49 }
 0x47e   : > { %v7237_v41 = vrot.slane %v3601_v61, %v8930_v57  ;;  %v2853_v5 = vpop.permute.xlu1 %2852  ;;  %v2857_v37 = vpop.permute.xlu0 %2856  ;;  %v7240_v60 = vrot.slane %v3617_v54, %v8930_v57  ;;  %v7243_v12 = vrot.slane %v2882_v52, %v8930_v57  ;;  %v7246_v27 = vrot.slane %v2898_v63, %v8930_v57 }
 0x47f   : > { %v7249_v3 = vrot.slane %v2883_v15, %v8930_v57  ;;  %2871 = vst.msk [vmem:[#allocation3 + $0x39] sm:$0xff] %vm351_vm2, %v2853_v5  ;;  %2873 = vst.msk [vmem:[#allocation3 + $0x51] sm:$0xff] %vm351_vm2, %v2857_v37  ;;  %3830 = vrot.lane.b32.xlu1 %v4062_v10, %s8932_s12  ;;  %3834 = vrot.lane.b32.xlu0 %v4064_v46, %s8932_s12  ;;  %v3633_v18 = vcombine.high %v7231_v4, %v7234_v1 }
 0x480   : > { %v3632_v8 = vcombine.low %v7231_v4, %v7234_v1  ;;  %v7260_v45 = vrot.slane %v2899_v38, %v8930_v57  ;;  %v3648_v2 = vcombine.low %v7237_v41, %v7240_v60  ;;  %v2915_v47 = vcombine.high %v7243_v12, %v7246_v27 }
 0x481   : > { %8931 = vst [vmem:[#allocation33_spill] sm:$0xff] %v7249_v3  ;;  %v3649_v51 = vcombine.high %v7237_v41, %v7240_v60  ;;  %v2914_v0 = vcombine.low %v7243_v12, %v7246_v27 }
 0x482   : > { %8933 = vst [vmem:[#allocation16_spill] sm:$0xff] %v7260_v45  ;;  %v2930_v21 = vcombine.low %v7249_v3, %v7260_v45  ;;  %v4533_v58 = vld [vmem:[#allocation3 + $0xa] sm:$0xff]  ;;  %v4535_v24 = vld [vmem:[#allocation3 + $0x22] sm:$0xff]  ;;  %v4534_v19 = vld [vmem:[#allocation3 + $0x1a] sm:$0xff]  ;;  %v7377_v61 = vrot.slane %v3632_v8, %v5879_v50  ;;  %v7386_v52 = vrot.slane %v2915_v47, %v5879_v50 }
 0x483   : > { %3838 = vrot.lane.b32.xlu1 %v4066_v6, %s8932_s12  ;;  %3842 = vrot.lane.b32.xlu0 %v4068_v23, %s8932_s12  ;;  %v4532_v59 = vld [vmem:[#allocation3 + $0x2] sm:$0xff] }
 0x484   : > { %v7320_v22 = vld [vmem:[#allocation3 + $0x9] sm:$0xff]  ;;  %v7322_v20 = vld [vmem:[#allocation3 + $0x21] sm:$0xff]  ;;  %v3664_v37 = vcombine.high %v7377_v61, %v8837_v53  ;;  %v7430_v60 = vrot.slane %v2930_v21, %v5879_v50 }
 0x485   : > { %v7336_v40 = vld [vmem:[#allocation3 + $0x8] sm:$0xff]  ;;  %v7338_v10 = vld [vmem:[#allocation3 + $0x20] sm:$0xff] }
 0x486   : > { %v4537_v33 = vld [vmem:[#allocation3 + $0x3a] sm:$0xff]  ;;  %v4539_v30 = vld [vmem:[#allocation3 + $0x52] sm:$0xff]  ;;  %v4538_v14 = vld [vmem:[#allocation3 + $0x4a] sm:$0xff] }
 0x487   : > { %3106 = vrot.lane.b32.xlu1 %v3090_v43, %s8932_s12  ;;  %3110 = vrot.lane.b32.xlu0 %v3092_v35, %s8932_s12  ;;  %v4392_v44 = vcombine.low %v4533_v58, %v4537_v33  ;;  %v4408_v13 = vcombine.low %v4535_v24, %v4539_v30  ;;  %v4393_v17 = vcombine.high %v4533_v58, %v4537_v33  ;;  %v4536_v62 = vld [vmem:[#allocation3 + $0x32] sm:$0xff] }
 0x488   : > { %v4409_v36 = vcombine.high %v4535_v24, %v4539_v30  ;;  %v4067_v32 = vld [vmem:[#allocation3 + $0x39] sm:$0xff]  ;;  %v4069_v9 = vld [vmem:[#allocation3 + $0x51] sm:$0xff]  ;;  %v4324_v29 = vcombine.low %v4532_v59, %v4536_v62  ;;  %v4340_v6 = vcombine.low %v4534_v19, %v4538_v14  ;;  %v4325_v42 = vcombine.high %v4532_v59, %v4536_v62 }
 0x489   : > { %v7279_v26 = vrot.slane %v4392_v44, %v8930_v57  ;;  %v7282_v34 = vrot.slane %v4408_v13, %v8930_v57  ;;  %v7289_v31 = vrot.slane %v4393_v17, %v8930_v57  ;;  %v3095_v46 = vld [vmem:[#allocation3 + $0x38] sm:$0xff]  ;;  %v3097_v56 = vld [vmem:[#allocation3 + $0x50] sm:$0xff]  ;;  %v4341_v16 = vcombine.high %v4534_v19, %v4538_v14 }
 0x48a   : > { %v7294_v25 = vrot.slane %v4409_v36, %v8930_v57  ;;  %v7351_v23 = vrot.slane %v4324_v29, %v8930_v57  ;;  %v7389_v63 = vrot.slane %v4325_v42, %v8930_v57  ;;  %v3668_v4 = vcombine.low %v7320_v22, %v4067_v32 }
 0x48b   : > { %3114 = vrot.lane.b32.xlu1 %v3094_v48, %s8932_s12  ;;  %3118 = vrot.lane.b32.xlu0 %v3096_v49, %s8932_s12  ;;  %v4425_v28 = vcombine.high %v7279_v26, %v7282_v34  ;;  %v4424_v55 = vcombine.low %v7279_v26, %v7282_v34  ;;  %v7392_v15 = vrot.slane %v4341_v16, %v8930_v57 }
 0x48c   : > { %v4440_v39 = vcombine.low %v7289_v31, %v7294_v25  ;;  %v4441_v7 = vcombine.high %v7289_v31, %v7294_v25  ;;  %v3684_v1 = vcombine.low %v7322_v20, %v4069_v9  ;;  %v2950_v38 = vcombine.low %v7336_v40, %v3095_v46 }
 0x48d   : > { %v2966_v5 = vcombine.low %v7338_v10, %v3097_v56  ;;  %v4372_v8 = vcombine.low %v7389_v63, %v7392_v15  ;;  %v7443_v44 = vrot.slane %v4425_v28, %v5879_v50  ;;  %v7530_v25 = vrot.slane %v2914_v0, %v5879_v50 }
 0x48e   : > { %v3692_v47 = vrot.slane %v3684_v1, %v8930_v57  ;;  %v4373_v1 = vcombine.high %v7389_v63, %v7392_v15 }
 0x48f   : > { %3360 = vrot.lane.b32.xlu1 %v3090_v43, %s5468_s22  ;;  %3364 = vrot.lane.b32.xlu0 %v3092_v35, %s5468_s22  ;;  %v3647_v43 = vrot.slane %v3633_v18, %v5879_v50  ;;  %v7366_v35 = vrot.slane %v3648_v2, %v5879_v50  ;;  %v7408_v18 = vrot.slane %v3649_v51, %v5879_v50 }
 0x490   : > { %v3676_v2 = vrot.slane %v3668_v4, %v8930_v57  ;;  %v7424_v41 = vrot.slane %v4372_v8, %v5879_v50  ;;  %v3669_v51 = vcombine.high %v7320_v22, %v4067_v32  ;;  %8935 = vst [vmem:[#allocation12_spill] sm:$0xff] %v7530_v25 }
 0x491   : > { %v3666_v0 = vcombine.high %v7366_v35, %v8837_v53 }
 0x492   : > { %v3701_v21 = vcombine.high %v3676_v2, %v3692_v47  ;;  %v3683_v17 = vrot.slane %v3669_v51, %v8930_v57  ;;  %v4387_v51 = vrot.slane %v4373_v1, %v5879_v50 }
 0x493   : > { %3368 = vrot.lane.b32.xlu1 %v3094_v48, %s5468_s22  ;;  %3372 = vrot.lane.b32.xlu0 %v3096_v49, %s5468_s22  ;;  %v7354_v48 = vrot.slane %v4340_v6, %v8930_v57 }
 0x494   : > { %v7455_v28 = vrot.slane %v3701_v21, %v5879_v50  ;;  %v4391_v1 = vcombine.high %v4387_v51, %v8837_v53 }
 0x495   : > { %v4357_v49 = vcombine.high %v7351_v23, %v7354_v48  ;;  %v4356_v4 = vcombine.low %v7351_v23, %v7354_v48  ;;  %v3700_v48 = vcombine.low %v3676_v2, %v3692_v47 }
 0x497   : > { %4550 = vrot.lane.b32.xlu1 %v4533_v58, %s8932_s12  ;;  %4554 = vrot.lane.b32.xlu0 %v4535_v24, %s8932_s12  ;;  %v7380_v54 = vrot.slane %v4357_v49, %v5879_v50  ;;  %v7514_v23 = vrot.slane %v4356_v4, %v5879_v50  ;;  %v4457_v4 = vcombine.high %v7443_v44, %v8837_v53 }
 0x499   : > { %v4388_v31 = vcombine.high %v7514_v23, %v8837_v53  ;;  %v4389_v21 = vcombine.high %v7380_v54, %v8837_v53 }
 0x49b   : > { %4558 = vrot.lane.b32.xlu1 %v4537_v33, %s8932_s12  ;;  %4562 = vrot.lane.b32.xlu0 %v4539_v30, %s8932_s12 }
 0x49f   : > { %4804 = vrot.lane.b32.xlu1 %v4533_v58, %s5468_s22  ;;  %4808 = vrot.lane.b32.xlu0 %v4535_v24, %s5468_s22  ;;  %v7418_v58 = vrot.slane %v2950_v38, %v8930_v57  ;;  %v3665_v24 = vcombine.high %v3647_v43, %v8837_v53 }
 0x4a3   : > { %4812 = vrot.lane.b32.xlu1 %v4537_v33, %s5468_s22  ;;  %4816 = vrot.lane.b32.xlu0 %v4539_v30, %s5468_s22  ;;  %v7421_v33 = vrot.slane %v2966_v5, %v8930_v57  ;;  %v3685_v30 = vcombine.high %v7322_v20, %v4069_v9 }
 0x4a5   : > { %v2983_v13 = vcombine.high %v7418_v58, %v7421_v33  ;;  %v3699_v36 = vrot.slane %v3685_v30, %v8930_v57  ;;  %v2946_v30 = vcombine.high %v7530_v25, %v8837_v53 }
 0x4a7   : > { %4548 = vrot.lane.b32.xlu1 %v4532_v59, %s8932_s12  ;;  %4552 = vrot.lane.b32.xlu0 %v4534_v19, %s8932_s12  ;;  %v3716_v29 = vcombine.low %v3683_v17, %v3699_v36 }
 0x4a9   : > { %v3724_v42 = vrot.slane %v3716_v29, %v5879_v50 }
 0x4ab   : > { %4556 = vrot.lane.b32.xlu1 %v4536_v62, %s8932_s12  ;;  %4560 = vrot.lane.b32.xlu0 %v4538_v14, %s8932_s12 }
 0x4af   : > { %4802 = vrot.lane.b32.xlu1 %v4532_v59, %s5468_s22  ;;  %4806 = vrot.lane.b32.xlu0 %v4534_v19, %s5468_s22  ;;  %v2951_v59 = vcombine.high %v7336_v40, %v3095_v46  ;;  %v2967_v19 = vcombine.high %v7338_v10, %v3097_v56 }
 0x4b3   : > { %4810 = vrot.lane.b32.xlu1 %v4536_v62, %s5468_s22  ;;  %4814 = vrot.lane.b32.xlu0 %v4538_v14, %s5468_s22 }
 0x4b7   : > { %4080 = vrot.lane.b32.xlu1 %v7320_v22, %s5468_s22  ;;  %4084 = vrot.lane.b32.xlu0 %v7322_v20, %s5468_s22 }
 0x4bb   : > { %4088 = vrot.lane.b32.xlu1 %v4067_v32, %s5468_s22  ;;  %4092 = vrot.lane.b32.xlu0 %v4069_v9, %s5468_s22 }
 0x4bf   : > { %3832 = vrot.lane.b32.xlu1 %v7320_v22, %s8932_s12  ;;  %3836 = vrot.lane.b32.xlu0 %v7322_v20, %s8932_s12  ;;  %v7462_v22 = vrot.slane %v2983_v13, %v5879_v50  ;;  %v3717_v20 = vcombine.high %v3683_v17, %v3699_v36  ;;  %v2982_v13 = vcombine.low %v7418_v58, %v7421_v33 }
 0x4c0   : > { %v3667_v33 = vcombine.high %v7408_v18, %v8837_v53 }
 0x4c3   : > { %3840 = vrot.lane.b32.xlu1 %v4067_v32, %s8932_s12  ;;  %3844 = vrot.lane.b32.xlu0 %v4069_v9, %s8932_s12  ;;  %v2965_v32 = vrot.slane %v2951_v59, %v8930_v57  ;;  %v2981_v9 = vrot.slane %v2967_v19, %v8930_v57  ;;  %v2947_v59 = vcombine.high %v7386_v52, %v8837_v53 }
 0x4c4   : > { %v7568_v19 = vrot.slane %v2982_v13, %v5879_v50 }
 0x4c5   : > { %v2998_v6 = vcombine.low %v2965_v32, %v2981_v9  ;;  %v2999_v16 = vcombine.high %v2965_v32, %v2981_v9  ;;  %v2948_v32 = vcombine.high %v7430_v60, %v8837_v53  ;;  %v3734_v9 = vcombine.high %v3724_v42, %v8837_v53 }
 0x4c6   : > { %8937 = vst [vmem:[#allocation37_spill] sm:$0xff] %v7568_v19 }
 0x4c7   : > { %3108 = vrot.lane.b32.xlu1 %v7336_v40, %s8932_s12  ;;  %3112 = vrot.lane.b32.xlu0 %v7338_v10, %s8932_s12  ;;  %v7511_v8 = vrot.slane %v2999_v16, %v5879_v50 }
 0x4c9   : > { %8934 = vst [vmem:[#allocation17_spill] sm:$0xff] %v7511_v8 }
 0x4cb   : > { %3116 = vrot.lane.b32.xlu1 %v3095_v46, %s8932_s12  ;;  %3120 = vrot.lane.b32.xlu0 %v3097_v56, %s8932_s12 }
 0x4cf   : > { %3362 = vrot.lane.b32.xlu1 %v7336_v40, %s5468_s22  ;;  %3366 = vrot.lane.b32.xlu0 %v7338_v10, %s5468_s22 }
 0x4d3   : > { %3370 = vrot.lane.b32.xlu1 %v3095_v46, %s5468_s22  ;;  %3374 = vrot.lane.b32.xlu0 %v3097_v56, %s5468_s22  ;;  %v7478_v46 = vrot.slane %v4440_v39, %v5879_v50  ;;  %v7481_v56 = vrot.slane %v3717_v20, %v5879_v50  ;;  %v7493_v39 = vrot.slane %v2998_v6, %v5879_v50  ;;  %s5153_s22 = scalar_lea.sflag [#allocation7], %s5616_s17 }
 0x4d7   : > { %3741 = vrot.lane.b32.xlu1 %v3647_v43, %s5470_s23  ;;  %3749 = vrot.lane.b32.xlu0 %v7366_v35, %s5471_s29  ;;  %v4390_v35 = vcombine.high %v7424_v41, %v8837_v53 }
 0x4db   : > { %4465 = vrot.lane.b32.xlu1 %v7380_v54, %s5470_s23  ;;  %3023 = vrot.lane.b32.xlu0 %v7386_v52, %s5470_s23  ;;  %v3014_v52 = vcombine.high %v7568_v19, %v8837_v53 }
 0x4df   : > { %3737 = vrot.lane.b32.xlu1 %v3664_v37, %s5472_s19  ;;  %3757 = vrot.lane.b32.xlu0 %v7408_v18, %s5475_s8  ;;  %v4455_v37 = vrot.slane %v4441_v7, %v5879_v50  ;;  %v7533_v7 = vrot.slane %v3700_v48, %v5879_v50  ;;  %v7593_v18 = vrot.slane %v4424_v55, %v5879_v50 }
 0x4e1   : > { %8936 = vst [vmem:[#allocation13_spill] sm:$0xff] %v7533_v7  ;;  %8938 = vst [vmem:[#allocation27_spill] sm:$0xff] %v7593_v18  ;;  %v4456_v16 = vcombine.high %v7593_v18, %v8837_v53 }
 0x4e3   : > { %4473 = vrot.lane.b32.xlu1 %v7424_v41, %s5471_s29  ;;  %3031 = vrot.lane.b32.xlu0 %v7430_v60, %s5471_s29  ;;  %v4459_v60 = vcombine.high %v4455_v37, %v8837_v53 }
 0x4e7   : > { %3745 = vrot.lane.b32.xlu1 %v3665_v24, %s5473_s21  ;;  %4493 = vrot.lane.b32.xlu0 %v7443_v44, %s5470_s23  ;;  %v3732_v24 = vcombine.high %v7533_v7, %v8837_v53 }
 0x4e9   : > { %v7457_v62 = vpop.permute.xlu1 %4078  ;;  %v7459_v14 = vpop.permute.xlu0 %4082 }
 0x4eb   : > { %3769 = vrot.lane.b32.xlu0 %v7455_v28, %s5470_s23  ;;  %3051 = vrot.lane.b32.xlu1 %v7462_v22, %s5470_s23 }
 0x4ed   : > { %v7470_v40 = vpop.permute.xlu1 %4086  ;;  %v7472_v10 = vpop.permute.xlu0 %4090 }
 0x4ef   : > { %4501 = vrot.lane.b32.xlu0 %v7478_v46, %s5471_s29  ;;  %3785 = vrot.lane.b32.xlu1 %v7481_v56, %s5475_s8 }
 0x4f1   : > { %v7487_v43 = vpop.permute.xlu1 %3830  ;;  %v7489_v49 = vpop.permute.xlu0 %3834 }
 0x4f3   : > { %3777 = vrot.lane.b32.xlu0 %v3724_v42, %s5471_s29  ;;  %3059 = vrot.lane.b32.xlu1 %v7493_v39, %s5471_s29 }
 0x4f5   : > { %v7502_v38 = vpop.permute.xlu1 %3838  ;;  %v7504_v5 = vpop.permute.xlu0 %3842 }
 0x4f7   : > { %4509 = vrot.lane.b32.xlu0 %v4455_v37, %s5475_s8  ;;  %3067 = vrot.lane.b32.xlu1 %v7511_v8, %s5475_s8 }
 0x4f9   : > { %v7519_v63 = vpop.permute.xlu1 %3106  ;;  %v7521_v15 = vpop.permute.xlu0 %3110 }
 0x4fb   : > { %4481 = vrot.lane.b32.xlu0 %v4387_v51, %s5475_s8  ;;  %4461 = vrot.lane.b32.xlu1 %v4388_v31, %s5472_s19  ;;  %v4102_v31 = vcombine.low %v7457_v62, %v7470_v40 }
 0x4fd   : > { %v7537_v2 = vpop.permute.xlu1 %3114  ;;  %v7539_v47 = vpop.permute.xlu0 %3118 }
 0x4fe   : > { %v3130_v26 = vcombine.low %v7519_v63, %v7537_v2  ;;  %v3146_v34 = vcombine.low %v7521_v15, %v7539_v47 }
 0x4ff   : > { %3019 = vrot.lane.b32.xlu0 %v2946_v30, %s5472_s19  ;;  %3765 = vrot.lane.b32.xlu1 %v3732_v24, %s5472_s19  ;;  %v4118_v30 = vcombine.low %v7459_v14, %v7472_v10  ;;  %v3733_v24 = vcombine.high %v7455_v28, %v8837_v53 }
 0x500   : > { %v7641_v13 = vrot.slane %v3146_v34, %v8930_v57  ;;  %v3735_v34 = vcombine.high %v7481_v56, %v8837_v53 }
 0x501   : > { %v7547_v12 = vpop.permute.xlu1 %3360  ;;  %v7549_v27 = vpop.permute.xlu0 %3364 }
 0x503   : > { %3753 = vrot.lane.b32.xlu0 %v3666_v0, %s5474_s9  ;;  %4469 = vrot.lane.b32.xlu1 %v4389_v21, %s5473_s21  ;;  %v3015_v0 = vcombine.high %v7462_v22, %v8837_v53  ;;  %v7638_v21 = vrot.slane %v3130_v26, %v8930_v57  ;;  %v7654_v22 = vrot.slane %v4102_v31, %v8930_v57 }
 0x504   : > { %v3870_v26 = vcombine.low %v7489_v49, %v7504_v5  ;;  %v4119_v31 = vcombine.high %v7459_v14, %v7472_v10 }
 0x505   : > { %v7559_v17 = vpop.permute.xlu1 %3368  ;;  %v7561_v36 = vpop.permute.xlu0 %3372 }
 0x507   : > { %3027 = vrot.lane.b32.xlu0 %v2947_v59, %s5473_s21  ;;  %4477 = vrot.lane.b32.xlu1 %v4390_v35, %s5474_s9  ;;  %v3384_v59 = vcombine.low %v7547_v12, %v7559_v17  ;;  %v3400_v35 = vcombine.low %v7549_v27, %v7561_v36 }
 0x509   : > { %v7572_v54 = vpop.permute.xlu1 %4550  ;;  %v7574_v58 = vpop.permute.xlu0 %4554 }
 0x50b   : > { %3761 = vrot.lane.b32.xlu0 %v3667_v33, %s5476_s16  ;;  %3047 = vrot.lane.b32.xlu1 %v3014_v52, %s5472_s19 }
 0x50d   : > { %v7582_v41 = vpop.permute.xlu1 %4558  ;;  %v7584_v20 = vpop.permute.xlu0 %4562 }
 0x50f   : > { %3035 = vrot.lane.b32.xlu0 %v2948_v32, %s5474_s9  ;;  %3781 = vrot.lane.b32.xlu1 %v3734_v9, %s5474_s9  ;;  %v7657_v32 = vrot.slane %v4118_v30, %v8930_v57  ;;  %v4458_v9 = vcombine.high %v7478_v46, %v8837_v53  ;;  %v7676_v46 = vrot.slane %v3384_v59, %v8930_v57 }
 0x511   : > { %v7597_v29 = vpop.permute.xlu1 %4804  ;;  %v7599_v6 = vpop.permute.xlu0 %4808  ;;  %v4135_v30 = vcombine.high %v7654_v22, %v7657_v32 }
 0x513   : > { %4489 = vrot.lane.b32.xlu0 %v4456_v16, %s5472_s19  ;;  %4513 = vrot.lane.b32.xlu1 %v4459_v60, %s5476_s16  ;;  %v3854_v16 = vcombine.low %v7487_v43, %v7502_v38  ;;  %v3855_v60 = vcombine.high %v7487_v43, %v7502_v38 }
 0x515   : > { %v7610_v55 = vpop.permute.xlu1 %4812  ;;  %v7612_v42 = vpop.permute.xlu0 %4816  ;;  %v7712_v14 = vrot.slane %v3855_v60, %v8930_v57  ;;  %v4133_v60 = vrot.slane %v4119_v31, %v8930_v57 }
 0x516   : > { %v4894_v37 = vcombine.low %v7597_v29, %v7610_v55  ;;  %v4910_v48 = vcombine.low %v7599_v6, %v7612_v42 }
 0x517   : > { %4497 = vrot.lane.b32.xlu0 %v4457_v4, %s5473_s21  ;;  %4485 = vrot.lane.b32.xlu1 %v4391_v1, %s5476_s16  ;;  %v3871_v4 = vcombine.high %v7489_v49, %v7504_v5  ;;  %v3163_v1 = vcombine.high %v7638_v21, %v7641_v13  ;;  %v3016_v49 = vcombine.high %v7493_v39, %v8837_v53 }
 0x518   : > { %v7628_v44 = vrot.slane %v4894_v37, %v8930_v57  ;;  %v7631_v51 = vrot.slane %v4910_v48, %v8930_v57  ;;  %v7679_v37 = vrot.slane %v3400_v35, %v8930_v57  ;;  %v4103_v5 = vcombine.high %v7457_v62, %v7470_v40 }
 0x519   : > { %v7647_v33 = vpop.permute.xlu1 %4548  ;;  %v7649_v52 = vpop.permute.xlu0 %4552  ;;  %v7715_v40 = vrot.slane %v3871_v4, %v8930_v57  ;;  %v7736_v4 = vrot.slane %v4135_v30, %v5879_v50 }
 0x51a   : > { %8939 = vst [vmem:[#allocation28_spill] sm:$0xff] %v7628_v44  ;;  %8940 = vst [vmem:[#allocation18_spill] sm:$0xff] %v7631_v51  ;;  %v3417_v10 = vcombine.high %v7676_v46, %v7679_v37 }
 0x51b   : > { %3773 = vrot.lane.b32.xlu0 %v3733_v24, %s5473_s21  ;;  %3055 = vrot.lane.b32.xlu1 %v3015_v0, %s5473_s21  ;;  %v7700_v24 = vrot.slane %v3854_v16, %v8930_v57  ;;  %v7703_v0 = vrot.slane %v3870_v26, %v8930_v57  ;;  %v4117_v26 = vrot.slane %v4103_v5, %v8930_v57 }
 0x51c   : > { %v7749_v31 = vrot.slane %v3417_v10, %v5879_v50  ;;  %v3903_v19 = vcombine.high %v7712_v14, %v7715_v40 }
 0x51d   : > { %v7681_v48 = vpop.permute.xlu1 %4556  ;;  %v7683_v43 = vpop.permute.xlu0 %4560  ;;  %v4150_v28 = vcombine.low %v4117_v26, %v4133_v60  ;;  %v4151_v16 = vcombine.high %v4117_v26, %v4133_v60 }
 0x51e   : > { %v4572_v38 = vcombine.low %v7647_v33, %v7681_v48  ;;  %v4588_v56 = vcombine.low %v7649_v52, %v7683_v43 }
 0x51f   : > { %4505 = vrot.lane.b32.xlu0 %v4458_v9, %s5474_s9  ;;  %3789 = vrot.lane.b32.xlu1 %v3735_v34, %s5476_s16  ;;  %v7724_v9 = vrot.slane %v3163_v1, %v5879_v50  ;;  %v3887_v34 = vcombine.high %v7700_v24, %v7703_v0  ;;  %v3902_v1 = vcombine.low %v7712_v14, %v7715_v40 }
 0x520   : > { %v7706_v39 = vrot.slane %v4572_v38, %v8930_v57  ;;  %v7709_v62 = vrot.slane %v4588_v56, %v8930_v57  ;;  %v3131_v38 = vcombine.high %v7519_v63, %v7537_v2  ;;  %v3147_v56 = vcombine.high %v7521_v15, %v7539_v47 }
 0x521   : > { %v7719_v59 = vpop.permute.xlu1 %4802  ;;  %v7721_v35 = vpop.permute.xlu0 %4806  ;;  %v3385_v63 = vcombine.high %v7547_v12, %v7559_v17  ;;  %v3401_v15 = vcombine.high %v7549_v27, %v7561_v36  ;;  %v7776_v8 = vrot.slane %v3887_v34, %v5879_v50  ;;  %v7779_v12 = vrot.slane %v3902_v1, %v5879_v50 }
 0x522   : > { %v3145_v10 = vrot.slane %v3131_v38, %v8930_v57  ;;  %v3161_v26 = vrot.slane %v3147_v56, %v8930_v57  ;;  %v4605_v34 = vcombine.high %v7706_v39, %v7709_v62  ;;  %v7796_v56 = vrot.slane %v4150_v28, %v5879_v50 }
 0x523   : > { %3063 = vrot.lane.b32.xlu1 %v3016_v49, %s5474_s9  ;;  %3271 = vrot.lane.b32.xlu0 %v7724_v9, %s5470_s23  ;;  %v3415_v17 = vrot.slane %v3401_v15, %v8930_v57  ;;  %v4134_v27 = vcombine.low %v7654_v22, %v7657_v32  ;;  %v4573_v15 = vcombine.high %v7647_v33, %v7681_v48 }
 0x524   : > { %v3178_v36 = vcombine.low %v3145_v10, %v3161_v26  ;;  %v4589_v28 = vcombine.high %v7649_v52, %v7683_v43  ;;  %v7821_v32 = vrot.slane %v4605_v34, %v5879_v50 }
 0x525   : > { %v7744_v5 = vpop.permute.xlu1 %4810  ;;  %v7746_v49 = vpop.permute.xlu0 %4814  ;;  %v7830_v33 = vrot.slane %v4134_v27, %v5879_v50  ;;  %v7833_v52 = vrot.slane %v4573_v15, %v8930_v57 }
 0x526   : > { %v4826_v30 = vcombine.low %v7719_v59, %v7744_v5  ;;  %v4842_v11 = vcombine.low %v7721_v35, %v7746_v49  ;;  %v7818_v22 = vrot.slane %v3178_v36, %v5879_v50  ;;  %8943 = vst [vmem:[#allocation39_spill] sm:$0xff] %v7821_v32  ;;  %v7839_v43 = vrot.slane %v4589_v28, %v8930_v57 }
 0x527   : > { %4243 = vrot.lane.b32.xlu1 %v7736_v4, %s5470_s23  ;;  %3525 = vrot.lane.b32.xlu0 %v7749_v31, %s5470_s23  ;;  %8944 = vst [vmem:[#allocation40_spill] sm:$0xff] %v7830_v33  ;;  %v4827_v14 = vcombine.high %v7719_v59, %v7744_v5  ;;  %v4843_v40 = vcombine.high %v7721_v35, %v7746_v49 }
 0x528   : > { %v7764_v2 = vrot.slane %v4826_v30, %v8930_v57  ;;  %v7767_v47 = vrot.slane %v4842_v11, %v8930_v57  ;;  %v3399_v11 = vrot.slane %v3385_v63, %v8930_v57  ;;  %v7799_v30 = vrot.slane %v4151_v16, %v5879_v50  ;;  %8942 = vst [vmem:[#allocation38_spill] sm:$0xff] %v7818_v22 }
 0x529   : > { %v7771_v60 = vpop.permute.xlu1 %4080  ;;  %v7773_v25 = vpop.permute.xlu0 %4084  ;;  %v7861_v59 = vrot.slane %v3903_v19, %v5879_v50  ;;  %v4166_v35 = vcombine.high %v7830_v33, %v8837_v53  ;;  %v3179_v5 = vcombine.high %v3145_v10, %v3161_v26  ;;  %v4640_v49 = vcombine.low %v7572_v54, %v7582_v41 }
 0x52a   : > { %8941 = vst [vmem:[#allocation19_spill] sm:$0xff] %v7767_v47  ;;  %v3432_v63 = vcombine.low %v3399_v11, %v3415_v17  ;;  %v4859_v16 = vcombine.high %v7764_v2, %v7767_v47  ;;  %v4620_v19 = vcombine.low %v7833_v52, %v7839_v43  ;;  %v7881_v10 = vrot.slane %v4843_v40, %v8930_v57 }
 0x52b   : > { %3995 = vrot.lane.b32.xlu1 %v7776_v8, %s5470_s23  ;;  %4003 = vrot.lane.b32.xlu0 %v7779_v12, %s5471_s29  ;;  %v7898_v40 = vrot.slane %v4640_v49, %v8930_v57 }
 0x52c   : > { %v7836_v48 = vrot.slane %v3432_v63, %v5879_v50  ;;  %v7850_v27 = vrot.slane %v4859_v16, %v5879_v50 }
 0x52d   : > { %v7791_v38 = vpop.permute.xlu1 %4088  ;;  %v7793_v1 = vpop.permute.xlu0 %4092 }
 0x52e   : > { %8945 = vst [vmem:[#allocation41_spill] sm:$0xff] %v7836_v48  ;;  %8946 = vst [vmem:[#allocation22_spill] sm:$0xff] %v7850_v27 }
 0x52f   : > { %4251 = vrot.lane.b32.xlu1 %v7796_v56, %s5471_s29  ;;  %4259 = vrot.lane.b32.xlu0 %v7799_v30, %s5475_s8 }
 0x531   : > { %v7813_v45 = vpop.permute.xlu1 %3832  ;;  %v7815_v3 = vpop.permute.xlu0 %3836 }
 0x533   : > { %3279 = vrot.lane.b32.xlu0 %v7818_v22, %s5471_s29  ;;  %4713 = vrot.lane.b32.xlu1 %v7821_v32, %s5470_s23  ;;  %v4656_v32 = vcombine.low %v7574_v58, %v7584_v20 }
 0x535   : > { %v7845_v36 = vpop.permute.xlu1 %3840  ;;  %v7847_v34 = vpop.permute.xlu0 %3844  ;;  %v7901_v18 = vrot.slane %v4656_v32, %v8930_v57  ;;  %v4186_v32 = vcombine.low %v7773_v25, %v7793_v1 }
 0x536   : > { %v3922_v63 = vcombine.low %v7813_v45, %v7845_v36  ;;  %v3938_v15 = vcombine.low %v7815_v3, %v7847_v34 }
 0x537   : > { %3533 = vrot.lane.b32.xlu0 %v7836_v48, %s5471_s29  ;;  %4967 = vrot.lane.b32.xlu1 %v7850_v27, %s5470_s23  ;;  %v7878_v27 = vrot.slane %v4827_v14, %v8930_v57  ;;  %v3433_v14 = vcombine.high %v3399_v11, %v3415_v17  ;;  %v7895_v48 = vrot.slane %v3179_v5, %v5879_v50 }
 0x538   : > { %v7868_v28 = vrot.slane %v3922_v63, %v8930_v57  ;;  %v7871_v16 = vrot.slane %v3938_v15, %v8930_v57  ;;  %v3886_v15 = vcombine.low %v7700_v24, %v7703_v0  ;;  %v4673_v11 = vcombine.high %v7898_v40, %v7901_v18 }
 0x539   : > { %v7883_v26 = vpop.permute.xlu1 %3108  ;;  %v7885_v33 = vpop.permute.xlu0 %3112  ;;  %8947 = vst [vmem:[#allocation42_spill] sm:$0xff] %v7895_v48  ;;  %v4874_v63 = vcombine.low %v7878_v27, %v7881_v10  ;;  %v7917_v24 = vrot.slane %v3433_v14, %v5879_v50  ;;  %v4170_v17 = vcombine.low %v7771_v60, %v7791_v38  ;;  %v4657_v14 = vcombine.high %v7574_v58, %v7584_v20 }
 0x53a   : > { %v7920_v0 = vrot.slane %v3886_v15, %v5879_v50  ;;  %v4641_v15 = vcombine.high %v7572_v54, %v7582_v41  ;;  %v7951_v54 = vrot.slane %v4186_v32, %v8930_v57  ;;  %v4895_v32 = vcombine.high %v7597_v29, %v7610_v55 }
 0x53b   : > { %4011 = vrot.lane.b32.xlu0 %v7861_v59, %s5475_s8  ;;  %4239 = vrot.lane.b32.xlu1 %v4166_v35, %s5472_s19  ;;  %v7910_v35 = vrot.slane %v4620_v19, %v5879_v50  ;;  %v7933_v19 = vrot.slane %v4874_v63, %v5879_v50  ;;  %v7948_v63 = vrot.slane %v4170_v17, %v8930_v57 }
 0x53c   : > { %8949 = vst [vmem:[#allocation21_spill] sm:$0xff] %v7920_v0  ;;  %v4167_v17 = vcombine.high %v7736_v4, %v8837_v53 }
 0x53d   : > { %v7905_v7 = vpop.permute.xlu1 %3116  ;;  %v7907_v22 = vpop.permute.xlu0 %3120  ;;  %8948 = vst [vmem:[#allocation20_spill] sm:$0xff] %v7910_v35  ;;  %8950 = vst [vmem:[#allocation43_spill] sm:$0xff] %v7933_v19  ;;  %v4203_v4 = vcombine.high %v7948_v63, %v7951_v54 }
 0x53f   : > { %3287 = vrot.lane.b32.xlu0 %v7895_v48, %s5475_s8  ;;  %4721 = vrot.lane.b32.xlu1 %v7910_v35, %s5471_s29  ;;  %v3918_v35 = vcombine.high %v7920_v0, %v8837_v53  ;;  %v4927_v48 = vcombine.high %v7628_v44, %v7631_v51  ;;  %v7965_v0 = vrot.slane %v4641_v15, %v8930_v57 }
 0x541   : > { %v7928_v5 = vpop.permute.xlu1 %3362  ;;  %v7930_v49 = vpop.permute.xlu0 %3366  ;;  %v7994_v29 = vrot.slane %v4927_v48, %v5879_v50 }
 0x543   : > { %3541 = vrot.lane.b32.xlu0 %v7917_v24, %s5475_s8  ;;  %4975 = vrot.lane.b32.xlu1 %v7933_v19, %s5471_s29  ;;  %v7958_v19 = vrot.slane %v4673_v11, %v5879_v50  ;;  %v7973_v11 = vrot.slane %v4657_v14, %v8930_v57 }
 0x545   : > { %v7953_v41 = vpop.permute.xlu1 %3370  ;;  %v7955_v47 = vpop.permute.xlu0 %3374  ;;  %8951 = vst [vmem:[#allocation52_spill] sm:$0xff] %v7958_v19 }
 0x546   : > { %v3452_v58 = vcombine.low %v7928_v5, %v7953_v41  ;;  %v3468_v20 = vcombine.low %v7930_v49, %v7955_v47 }
 0x547   : > { %4741 = vrot.lane.b32.xlu0 %v7958_v19, %s5470_s23  ;;  %3991 = vrot.lane.b32.xlu1 %v3918_v35, %s5472_s19  ;;  %v4911_v19 = vcombine.high %v7599_v6, %v7612_v42  ;;  %v4621_v35 = vcombine.high %v7833_v52, %v7839_v43  ;;  %v3162_v6 = vcombine.low %v7638_v21, %v7641_v13 }
 0x548   : > { %v7978_v51 = vrot.slane %v3452_v58, %v8930_v57  ;;  %v7981_v15 = vrot.slane %v3468_v20, %v8930_v57  ;;  %v4688_v42 = vcombine.low %v7965_v0, %v7973_v11  ;;  %v8006_v52 = vrot.slane %v4895_v32, %v8930_v57 }
 0x549   : > { %v7989_v14 = vpop.permute.xlu1 %3741  ;;  %v7991_v44 = vpop.permute.xlu0 %3749  ;;  %v8009_v48 = vrot.slane %v4911_v19, %v8930_v57  ;;  %v4875_v43 = vcombine.high %v7878_v27, %v7881_v10  ;;  %v8021_v21 = vrot.slane %v4203_v4, %v5879_v50  ;;  %v4171_v13 = vcombine.high %v7771_v60, %v7791_v38 }
 0x54a   : > { %v4187_v27 = vcombine.high %v7773_v25, %v7793_v1  ;;  %v8032_v10 = vrot.slane %v3162_v6, %v5879_v50  ;;  %v3416_v19 = vcombine.low %v7676_v46, %v7679_v37  ;;  %v8046_v60 = vrot.slane %v4688_v42, %v5879_v50 }
 0x54b   : > { %4995 = vrot.lane.b32.xlu0 %v7994_v29, %s5470_s23  ;;  %4247 = vrot.lane.b32.xlu1 %v4167_v17, %s5473_s21  ;;  %v8018_v17 = vrot.slane %v4621_v35, %v5879_v50  ;;  %v4942_v32 = vcombine.low %v8006_v52, %v8009_v48  ;;  %v8043_v55 = vrot.slane %v4875_v43, %v5879_v50 }
 0x54c   : > { %8953 = vst [vmem:[#allocation46_spill] sm:$0xff] %v8032_v10  ;;  %8955 = vst [vmem:[#allocation47_spill] sm:$0xff] %v8046_v60  ;;  %v8053_v25 = vrot.slane %v4171_v13, %v8930_v57  ;;  %v8056_v46 = vrot.slane %v4187_v27, %v8930_v57  ;;  %v3955_v37 = vcombine.high %v7868_v28, %v7871_v16 }
 0x54d   : > { %v8013_v58 = vpop.permute.xlu1 %4465  ;;  %v8015_v20 = vpop.permute.xlu0 %3023  ;;  %8954 = vst [vmem:[#allocation32_spill] sm:$0xff] %v8043_v55  ;;  %v3194_v6 = vcombine.high %v8032_v10, %v8837_v53  ;;  %v8067_v42 = vrot.slane %v4942_v32, %v5879_v50  ;;  %v8070_v43 = vrot.slane %v3416_v19, %v5879_v50  ;;  %v3199_v27 = vcombine.high %v7883_v26, %v7905_v7 }
 0x54e   : > { %8952 = vst [vmem:[#allocation34_spill] sm:$0xff] %v8015_v20  ;;  %v4218_v13 = vcombine.low %v8053_v25, %v8056_v46  ;;  %v4689_v10 = vcombine.high %v7965_v0, %v7973_v11  ;;  %v3453_v11 = vcombine.high %v7928_v5, %v7953_v41  ;;  %v3939_v5 = vcombine.high %v7815_v3, %v7847_v34 }
 0x54f   : > { %4729 = vrot.lane.b32.xlu1 %v8018_v17, %s5475_s8  ;;  %4271 = vrot.lane.b32.xlu0 %v8021_v21, %s5470_s23  ;;  %8957 = vst [vmem:[#allocation51_spill] sm:$0xff] %v8067_v42  ;;  %8958 = vst [vmem:[#allocation23_spill] sm:$0xff] %v8070_v43  ;;  %v3448_v19 = vcombine.high %v8070_v43, %v8837_v53  ;;  %v3919_v43 = vcombine.high %v7776_v8, %v8837_v53 }
 0x550   : > { %v4168_v8 = vcombine.high %v7796_v56, %v8837_v53  ;;  %v3467_v56 = vrot.slane %v3453_v11, %v8930_v57 }
 0x551   : > { %v8038_v35 = vpop.permute.xlu1 %3737  ;;  %v8040_v4 = vpop.permute.xlu0 %3757 }
 0x553   : > { %4983 = vrot.lane.b32.xlu1 %v8043_v55, %s5475_s8  ;;  %4749 = vrot.lane.b32.xlu0 %v8046_v60, %s5471_s29  ;;  %v3198_v55 = vcombine.low %v7883_v26, %v7905_v7  ;;  %v3213_v60 = vrot.slane %v3199_v27, %v8930_v57 }
 0x555   : > { %v8060_v38 = vpop.permute.xlu1 %4473  ;;  %v8062_v1 = vpop.permute.xlu0 %3031 }
 0x556   : > { %8956 = vst [vmem:[#allocation31_spill] sm:$0xff] %v8062_v1  ;;  %v3215_v1 = vcombine.high %v7885_v33, %v7907_v22 }
 0x557   : > { %3267 = vrot.lane.b32.xlu1 %v3194_v6, %s5472_s19  ;;  %5003 = vrot.lane.b32.xlu0 %v8067_v42, %s5471_s29  ;;  %v8088_v6 = vrot.slane %v3955_v37, %v5879_v50  ;;  %v3214_v42 = vcombine.low %v7885_v33, %v7907_v22  ;;  %v8102_v37 = vrot.slane %v4218_v13, %v5879_v50 }
 0x558   : > { %v3229_v0 = vrot.slane %v3215_v1, %v8930_v57  ;;  %v8120_v22 = vrot.slane %v4689_v10, %v5879_v50  ;;  %v4943_v33 = vcombine.high %v8006_v52, %v8009_v48 }
 0x559   : > { %v8081_v20 = vpop.permute.xlu1 %3745  ;;  %v8083_v32 = vpop.permute.xlu0 %4493  ;;  %v8132_v41 = vrot.slane %v3214_v42, %v8930_v57 }
 0x55a   : > { %v3246_v1 = vcombine.low %v3213_v60, %v3229_v0 }
 0x55b   : > { %3521 = vrot.lane.b32.xlu1 %v3448_v19, %s5472_s19  ;;  %4023 = vrot.lane.b32.xlu0 %v8088_v6, %s5470_s23  ;;  %v3469_v19 = vcombine.high %v7930_v49, %v7955_v47  ;;  %v3923_v47 = vcombine.high %v7813_v45, %v7845_v36  ;;  %v8129_v49 = vrot.slane %v3198_v55, %v8930_v57 }
 0x55c   : > { %v8145_v45 = vrot.slane %v4943_v33, %v5879_v50  ;;  %v3953_v36 = vrot.slane %v3939_v5, %v8930_v57  ;;  %v8155_v13 = vrot.slane %v3246_v1, %v5879_v50  ;;  %v3247_v5 = vcombine.high %v3213_v60, %v3229_v0 }
 0x55d   : > { %v8110_v7 = vpop.permute.xlu1 %3051  ;;  %v8112_v26 = vpop.permute.xlu0 %3769  ;;  %v3483_v10 = vrot.slane %v3469_v19, %v8930_v57  ;;  %v3937_v3 = vrot.slane %v3923_v47, %v8930_v57  ;;  %v3231_v34 = vcombine.high %v8129_v49, %v8132_v41  ;;  %v3485_v57 = vcombine.high %v7978_v51, %v7981_v15 }
 0x55e   : > { %8959 = vst [vmem:[#allocation44_spill] sm:$0xff] %v8145_v45 }
 0x55f   : > { %3999 = vrot.lane.b32.xlu1 %v3919_v43, %s5473_s21  ;;  %4279 = vrot.lane.b32.xlu0 %v8102_v37, %s5471_s29  ;;  %v3500_v55 = vcombine.low %v3467_v56, %v3483_v10  ;;  %v3971_v27 = vcombine.high %v3937_v3, %v3953_v36  ;;  %v3970_v47 = vcombine.low %v3937_v3, %v3953_v36 }
 0x560   : > { %v3501_v3 = vcombine.high %v3467_v56, %v3483_v10  ;;  %v8194_v36 = vrot.slane %v3247_v5, %v5879_v50 }
 0x561   : > { %v8136_v43 = vpop.permute.xlu1 %3785  ;;  %v8138_v52 = vpop.permute.xlu0 %4501  ;;  %v8171_v33 = vrot.slane %v3500_v55, %v5879_v50  ;;  %v4219_v55 = vcombine.high %v8053_v25, %v8056_v46 }
 0x562   : > { %v8209_v10 = vrot.slane %v3501_v3, %v5879_v50 }
 0x563   : > { %4255 = vrot.lane.b32.xlu1 %v4168_v8, %s5474_s9  ;;  %4757 = vrot.lane.b32.xlu0 %v8120_v22, %s5475_s8  ;;  %v8168_v8 = vrot.slane %v3231_v34, %v5879_v50  ;;  %v8183_v34 = vrot.slane %v3485_v57, %v5879_v50  ;;  %v3792_v57 = vsel %vm560_vm3, %v7377_v61, %v8038_v35 }
 0x564   : > { %v3793_v25 = vsel %vm562_vm4, %v3792_v57, %v7989_v14  ;;  %v4672_v14 = vcombine.low %v7898_v40, %v7901_v18  ;;  %v3451_v40 = vcombine.high %v7917_v24, %v8837_v53 }
 0x565   : > { %v8150_v48 = vpop.permute.xlu1 %3059  ;;  %v8152_v42 = vpop.permute.xlu0 %3777  ;;  %v3794_v61 = vsel %vm564_vm5, %v3793_v25, %v8081_v20  ;;  %v3195_v20 = vcombine.high %v7724_v9, %v8837_v53 }
 0x566   : > { %v3795_v35 = vsel %vm566_vm6, %v3794_v61, %v7991_v44  ;;  %v8240_v61 = vrot.slane %v4672_v14, %v5879_v50 }
 0x567   : > { %5011 = vrot.lane.b32.xlu0 %v8145_v45, %s5475_s8  ;;  %3307 = vrot.lane.b32.xlu1 %v8155_v13, %s5471_s29 }
 0x569   : > { %v8163_v11 = vpop.permute.xlu1 %3067  ;;  %v8165_v19 = vpop.permute.xlu0 %4509 }
 0x56a   : > { %8960 = vst [vmem:[#allocation54_spill] sm:$0xff] %v8163_v11  ;;  %v8180_v11 = vrot.slane %v3971_v27, %v5879_v50  ;;  %v8197_v27 = vrot.slane %v3970_v47, %v5879_v50  ;;  %v8212_v47 = vrot.slane %v4219_v55, %v5879_v50  ;;  %v3921_v55 = vcombine.high %v7861_v59, %v8837_v53 }
 0x56b   : > { %3299 = vrot.lane.b32.xlu0 %v8168_v8, %s5470_s23  ;;  %3561 = vrot.lane.b32.xlu1 %v8171_v33, %s5471_s29  ;;  %v3449_v59 = vcombine.high %v7749_v31, %v8837_v53  ;;  %v4704_v31 = vcombine.high %v8240_v61, %v8837_v53 }
 0x56d   : > { %v4462_v1 = vpop.permute.xlu1 %4461  ;;  %v8177_v45 = vpop.permute.xlu0 %4481 }
 0x56e   : > { %v4516_v9 = vsel %vm560_vm3, %v7514_v23, %v4462_v1  ;;  %v3920_v23 = vcombine.high %v7779_v12, %v8837_v53  ;;  %v8961_v1 = vcombine.low %v7706_v39, %v7709_v62  ;;  %v8962_v62 = vld [vmem:[#allocation19_spill] sm:$0xff] }
 0x56f   : > { %4039 = vrot.lane.b32.xlu1 %v8180_v11, %s5475_s8  ;;  %3553 = vrot.lane.b32.xlu0 %v8183_v34, %s5470_s23 }
 0x570   : > { %v8259_v14 = vrot.slane %v8961_v1, %v5879_v50 }
 0x571   : > { %v3766_v60 = vpop.permute.xlu1 %3765  ;;  %v8191_v0 = vpop.permute.xlu0 %3019 }
 0x572   : > { %v4636_v39 = vcombine.high %v8259_v14, %v8837_v53 }
 0x573   : > { %3315 = vrot.lane.b32.xlu1 %v8194_v36, %s5475_s8  ;;  %4031 = vrot.lane.b32.xlu0 %v8197_v27, %s5471_s29  ;;  %s5478_s29 = smov [#allocation8]  }
 0x575   : > { %v4470_v46 = vpop.permute.xlu1 %4469  ;;  %v3754_v56 = vpop.permute.xlu0 %3753 }
 0x576   : > { %v3796_v57 = vsel %vm568_vm7, %v3795_v35, %v3754_v56 }
 0x577   : > { %3569 = vrot.lane.b32.xlu1 %v8209_v10, %s5475_s8  ;;  %4287 = vrot.lane.b32.xlu0 %v8212_v47, %s5475_s8  ;;  %v3797_v18 = vsel %vm570_vm9, %v3796_v57, %v8040_v4  ;;  %v4517_v4 = vsel %vm562_vm4, %v4516_v9, %v8013_v58  ;;  %v4169_v58 = vcombine.high %v7799_v30, %v8837_v53  ;;  %v8964_v9 = vld [vmem:[#allocation38_spill] sm:$0xff] }
 0x578   : > { %v4202_v57 = vcombine.low %v7948_v63, %v7951_v54 }
 0x579   : > { %v4478_v5 = vpop.permute.xlu1 %4477  ;;  %v8224_v3 = vpop.permute.xlu0 %3027 }
 0x57b   : > { %4015 = vrot.lane.b32.xlu1 %v3921_v55, %s5476_s16  ;;  %3275 = vrot.lane.b32.xlu0 %v3195_v20, %s5473_s21  ;;  %v4518_v20 = vsel %vm564_vm5, %v4517_v4, %v4470_v46  ;;  %v8963_v46 = vcombine.low %v7764_v2, %v8962_v62  ;;  %v8288_v2 = vrot.slane %v4202_v57, %v5879_v50  ;;  %v8966_v4 = vld [vmem:[#allocation27_spill] sm:$0xff]  ;;  %v8967_v57 = vld [vmem:[#allocation41_spill] sm:$0xff] }
 0x57c   : > { %v4519_v12 = vsel %vm566_vm6, %v4518_v20, %v8060_v38 }
 0x57d   : > { %v3048_v25 = vpop.permute.xlu1 %3047  ;;  %v3762_v44 = vpop.permute.xlu0 %3761 }
 0x57e   : > { %v3798_v56 = vsel %vm572_vm8, %v3797_v18, %v3762_v44 }
 0x57f   : > { %v3808_v35 = vrot.slane %v3798_v56, 4  ;;  %3545 = vrot.lane.b32.xlu1 %v3451_v40, %s5476_s16  ;;  %3529 = vrot.lane.b32.xlu0 %v3449_v59, %s5473_s21  ;;  %v8276_v40 = vrot.slane %v8963_v46, %v5879_v50  ;;  %v4520_v59 = vsel %vm568_vm7, %v4519_v12, %v4478_v5  ;;  %v3196_v56 = vcombine.high %v8964_v9, %v8837_v53 }
 0x580   : > { %v4521_v63 = vsel %vm570_vm9, %v4520_v59, %v8177_v45  ;;  %v3450_v12 = vcombine.high %v8967_v57, %v8837_v53  ;;  %v8969_v59 = vld [vmem:[#allocation42_spill] sm:$0xff] }
 0x581   : > { %3812 = vst [vmem:[#allocation4 + $0x18] sm:$0xf0] %v3808_v35  ;;  %v3782_v24 = vpop.permute.xlu1 %3781  ;;  %v8249_v55 = vpop.permute.xlu0 %3035  ;;  %v4890_v38 = vcombine.high %v8276_v40, %v8837_v53  ;;  %v8965_v35 = vld [vmem:[#allocation13_spill] sm:$0xff] }
 0x582   : > { %v3799_v5 = vsel %vm560_vm3, %v8965_v35, %v3766_v60  ;;  %v4234_v60 = vcombine.high %v8288_v2, %v8837_v53 }
 0x583   : > { %4737 = vrot.lane.b32.xlu1 %v4704_v31, %s5472_s19  ;;  %4007 = vrot.lane.b32.xlu0 %v3920_v23, %s5474_s9  ;;  %v3800_v20 = vsel %vm562_vm4, %v3799_v5, %v8112_v26  ;;  %v8973_v5 = vld [vmem:[#allocation39_spill] sm:$0xff] }
 0x585   : > { %v4514_v18 = vpop.permute.xlu1 %4513  ;;  %v4490_v44 = vpop.permute.xlu0 %4489 }
 0x586   : > { %v4523_v31 = vsel %vm560_vm3, %v8966_v4, %v4490_v44  ;;  %v8968_v44 = vld [vmem:[#allocation37_spill] sm:$0xff]  ;;  %v4637_v4 = vcombine.high %v8973_v5, %v8837_v53 }
 0x587   : > { %4709 = vrot.lane.b32.xlu1 %v4636_v39, %s5472_s19  ;;  %4263 = vrot.lane.b32.xlu0 %v4169_v58, %s5476_s16  ;;  %v4524_v45 = vsel %vm562_vm4, %v4523_v31, %v8083_v32  ;;  %v3081_v39 = vsel %vm560_vm3, %v8968_v44, %v3048_v25 }
 0x589   : > { %v4486_v30 = vpop.permute.xlu1 %4485  ;;  %v4498_v54 = vpop.permute.xlu0 %4497 }
 0x58a   : > { %v4522_v23 = vsel %vm572_vm8, %v4521_v63, %v4486_v30  ;;  %v4525_v62 = vsel %vm564_vm5, %v4524_v45, %v4498_v54  ;;  %v3197_v30 = vcombine.high %v8969_v59, %v8837_v53  ;;  %v8970_v63 = vld [vmem:[#allocation28_spill] sm:$0xff]  ;;  %v3082_v54 = vsel %vm562_vm4, %v3081_v39, %v8110_v7 }
 0x58b   : > { %4530 = vst [vmem:[#allocation4 + $0x8] sm:$0xf] %v4522_v23  ;;  %4963 = vrot.lane.b32.xlu1 %v4890_v38, %s5472_s19  ;;  %3283 = vrot.lane.b32.xlu0 %v3196_v56, %s5474_s9  ;;  %v8971_v38 = vld [vmem:[#allocation18_spill] sm:$0xff]  ;;  %v4526_v35 = vsel %vm566_vm6, %v4525_v62, %v8138_v52  ;;  %v8976_v39 = vld [vmem:[#allocation20_spill] sm:$0xff] }
 0x58c   : > { %v8972_v25 = vcombine.low %v8970_v63, %v8971_v38  ;;  %v4638_v62 = vcombine.high %v8976_v39, %v8837_v53  ;;  %v8979_v38 = vcombine.low %v7868_v28, %v7871_v16 }
 0x58d   : > { %v3056_v1 = vpop.permute.xlu1 %3055  ;;  %v3774_v58 = vpop.permute.xlu0 %3773 }
 0x58e   : > { %v3801_v46 = vsel %vm564_vm5, %v3800_v20, %v3774_v58  ;;  %v8320_v9 = vrot.slane %v8972_v25, %v5879_v50  ;;  %v3083_v31 = vsel %vm564_vm5, %v3082_v54, %v3056_v1  ;;  %v8376_v25 = vrot.slane %v8979_v38, %v5879_v50 }
 0x58f   : > { %v3802_v32 = vsel %vm566_vm6, %v3801_v46, %v8152_v42  ;;  %4267 = vrot.lane.b32.xlu1 %v4234_v60, %s5472_s19  ;;  %3537 = vrot.lane.b32.xlu0 %v3450_v12, %s5474_s9  ;;  %v3084_v52 = vsel %vm566_vm6, %v3083_v31, %v8150_v48  ;;  %v8974_v60 = vld [vmem:[#allocation22_spill] sm:$0xff]  ;;  %v8977_v46 = vld [vmem:[#allocation52_spill] sm:$0xff]  ;;  %v3263_v31 = vcombine.high %v8168_v8, %v8837_v53 }
 0x590   : > { %v3803_v26 = vsel %vm568_vm7, %v3802_v32, %v3782_v24  ;;  %v4891_v57 = vcombine.high %v8974_v60, %v8837_v53  ;;  %v4705_v32 = vcombine.high %v8977_v46, %v8837_v53  ;;  %v8982_v8 = vcombine.low %v7978_v51, %v7981_v15 }
 0x591   : > { %v3790_v56 = vpop.permute.xlu1 %3789  ;;  %v3804_v42 = vsel %vm570_vm9, %v3803_v26, %v8136_v43  ;;  %v4506_v24 = vpop.permute.xlu0 %4505 }
 0x592   : > { %v3805_v23 = vsel %vm572_vm8, %v3804_v42, %v3790_v56  ;;  %v4527_v45 = vsel %vm568_vm7, %v4526_v35, %v4506_v24  ;;  %v4639_v35 = vcombine.high %v8018_v17, %v8837_v53  ;;  %v4235_v24 = vcombine.high %v8021_v21, %v8837_v53 }
 0x593   : > { %v3809_v20 = vrot.slane %v3805_v23, 4  ;;  %v4528_v7 = vsel %vm570_vm9, %v4527_v45, %v8165_v19  ;;  %4717 = vrot.lane.b32.xlu1 %v4637_v4, %s5473_s21  ;;  %3291 = vrot.lane.b32.xlu0 %v3197_v30, %s5476_s16  ;;  %v4958_v19 = vcombine.high %v8320_v9, %v8837_v53  ;;  %v8978_v30 = vld [vmem:[#allocation43_spill] sm:$0xff] }
 0x594   : > { %v4529_v43 = vsel %vm572_vm8, %v4528_v7, %v4514_v18  ;;  %v3230_v18 = vcombine.low %v8129_v49, %v8132_v41  ;;  %v4892_v49 = vcombine.high %v8978_v30, %v8837_v53  ;;  %v4959_v41 = vcombine.high %v7994_v29, %v8837_v53  ;;  %v8980_v23 = vld [vmem:[#allocation47_spill] sm:$0xff] }
 0x595   : > { %3813 = vst [vmem:[#allocation4 + $0x10] sm:$0xf0] %v3809_v20  ;;  %4531 = vst [vmem:[#allocation4 + $0x20] sm:$0xf] %v4529_v43  ;;  %v3064_v1 = vpop.permute.xlu1 %3063  ;;  %v8340_v58 = vpop.permute.xlu0 %3271  ;;  %v3986_v29 = vcombine.high %v8376_v25, %v8837_v53  ;;  %v4706_v45 = vcombine.high %v8980_v23, %v8837_v53  ;;  %v3517_v20 = vcombine.high %v8183_v34, %v8837_v53  ;;  %v8981_v7 = vld [vmem:[#allocation51_spill] sm:$0xff] }
 0x596   : > { %v8347_v12 = vsel %vm568_vm7, %v3084_v52, %v3064_v1  ;;  %v8370_v63 = vrot.slane %v3230_v18, %v5879_v50  ;;  %v4960_v43 = vcombine.high %v8981_v7, %v8837_v53  ;;  %v8418_v52 = vrot.slane %v8982_v8, %v5879_v50  ;;  %v8983_v1 = vld [vmem:[#allocation40_spill] sm:$0xff] }
 0x597   : > { %8975 = vst [vmem:[#allocation36_spill] sm:$0xff] %v8347_v12  ;;  %4971 = vrot.lane.b32.xlu1 %v4891_v57, %s5473_s21  ;;  %4991 = vrot.lane.b32.xlu0 %v4958_v19, %s5472_s19  ;;  %v3988_v18 = vcombine.high %v8197_v27, %v8837_v53  ;;  %v4236_v30 = vcombine.high %v8102_v37, %v8837_v53  ;;  %v8987_v7 = vld [vmem:[#allocation16_spill] sm:$0xff] }
 0x598   : > { %v3262_v42 = vcombine.high %v8370_v63, %v8837_v53  ;;  %v3516_v51 = vcombine.high %v8418_v52, %v8837_v53 }
 0x599   : > { %v4244_v48 = vpop.permute.xlu1 %4243  ;;  %v8353_v44 = vpop.permute.xlu0 %3525 }
 0x59b   : > { %4725 = vrot.lane.b32.xlu1 %v4638_v62, %s5474_s9  ;;  %4745 = vrot.lane.b32.xlu0 %v4705_v32, %s5473_s21  ;;  %v3987_v62 = vcombine.high %v8088_v6, %v8837_v53  ;;  %v3264_v32 = vcombine.high %v8155_v13, %v8837_v53  ;;  %v3518_v6 = vcombine.high %v8171_v33, %v8837_v53  ;;  %v8984_v33 = vld [vmem:[#allocation44_spill] sm:$0xff] }
 0x59d   : > { %v8361_v26 = vpop.permute.xlu1 %3995  ;;  %v8363_v59 = vpop.permute.xlu0 %4003 }
 0x59f   : > { %4979 = vrot.lane.b32.xlu1 %v4892_v49, %s5474_s9  ;;  %4999 = vrot.lane.b32.xlu0 %v4959_v41, %s5473_s21  ;;  %v4707_v41 = vcombine.high %v8120_v22, %v8837_v53 }
 0x5a1   : > { %v4252_v54 = vpop.permute.xlu1 %4251  ;;  %v8380_v56 = vpop.permute.xlu0 %4259 }
 0x5a3   : > { %3295 = vrot.lane.b32.xlu1 %v3262_v42, %s5472_s19  ;;  %4019 = vrot.lane.b32.xlu0 %v3986_v29, %s5472_s19  ;;  %v3989_v29 = vcombine.high %v8180_v11, %v8837_v53 }
 0x5a5   : > { %v8388_v28 = vpop.permute.xlu1 %4713  ;;  %v8390_v16 = vpop.permute.xlu0 %3279 }
 0x5a7   : > { %4733 = vrot.lane.b32.xlu1 %v4639_v35, %s5476_s16  ;;  %4275 = vrot.lane.b32.xlu0 %v4235_v24, %s5473_s21  ;;  %v4961_v35 = vcombine.high %v8984_v33, %v8837_v53 }
 0x5a9   : > { %v8398_v5 = vpop.permute.xlu1 %4967  ;;  %v8400_v4 = vpop.permute.xlu0 %3533 }
 0x5ab   : > { %3303 = vrot.lane.b32.xlu1 %v3263_v31, %s5473_s21  ;;  %4753 = vrot.lane.b32.xlu0 %v4706_v45, %s5474_s9  ;;  %v8985_v31 = vld [vmem:[#allocation32_spill] sm:$0xff] }
 0x5ac   : > { %v4893_v23 = vcombine.high %v8985_v31, %v8837_v53 }
 0x5ad   : > { %v4240_v17 = vpop.permute.xlu1 %4239  ;;  %v8408_v21 = vpop.permute.xlu0 %4011 }
 0x5ae   : > { %v4294_v60 = vsel %vm560_vm3, %v8983_v1, %v4240_v17  ;;  %v3519_v17 = vcombine.high %v8209_v10, %v8837_v53 }
 0x5af   : > { %3557 = vrot.lane.b32.xlu1 %v3517_v20, %s5473_s21  ;;  %5007 = vrot.lane.b32.xlu0 %v4960_v43, %s5474_s9  ;;  %v4295_v57 = vsel %vm562_vm4, %v4294_v60, %v4244_v48  ;;  %v4237_v48 = vcombine.high %v8212_v47, %v8837_v53  ;;  %v8986_v20 = vld [vmem:[#allocation33_spill] sm:$0xff] }
 0x5b0   : > { %v8988_v43 = vcombine.high %v8986_v20, %v8987_v7  ;;  %v8989_v60 = vld [vmem:[#allocation17_spill] sm:$0xff] }
 0x5b1   : > { %v8425_v19 = vpop.permute.xlu1 %4721  ;;  %v8427_v34 = vpop.permute.xlu0 %3287 }
 0x5b2   : > { %v2945_v8 = vrot.slane %v8988_v43, %v5879_v50  ;;  %v5125_v50 = vld [vmem:[%s8725_s5] sm:$0xf] }
 0x5b3   : > { %4035 = vrot.lane.b32.xlu1 %v3988_v18, %s5474_s9  ;;  %3549 = vrot.lane.b32.xlu0 %v3516_v51, %s5472_s19  ;;  %v8990_v51 = vld [vmem:[#allocation21_spill] sm:$0xff]  ;;  %s5399_s19 = sshll.u32 %s5478_s29, 4  ;;  %s5400_s19 = int_to_ptr.vmem [resolvable:$false] %s5399_s19 }
 0x5b4   : > { %v2949_v18 = vcombine.high %v2945_v8, %v8837_v53 }
 0x5b5   : > { %v8435_v15 = vpop.permute.xlu1 %4975  ;;  %v8437_v39 = vpop.permute.xlu0 %3541 }
 0x5b7   : > { %4291 = vrot.lane.b32.xlu1 %v4237_v48, %s5476_s16  ;;  %4027 = vrot.lane.b32.xlu0 %v3987_v62, %s5473_s21  ;;  %v5133_v48 = vld [vmem:[%s8726_s6] sm:$0xf] }
 0x5b9   : > { %v3992_v27 = vpop.permute.xlu1 %3991  ;;  %v8445_v46 = vpop.permute.xlu0 %4741 }
 0x5ba   : > { %v4046_v10 = vsel %vm560_vm3, %v8990_v51, %v3992_v27  ;;  %v8543_v51 = vld [vmem:[#allocation4 + $0x48] sm:$0xf] }
 0x5bb   : > { %3311 = vrot.lane.b32.xlu1 %v3264_v32, %s5474_s9  ;;  %4283 = vrot.lane.b32.xlu0 %v4236_v30, %s5474_s9  ;;  %v4047_v62 = vsel %vm562_vm4, %v4046_v10, %v8361_v26 }
 0x5bd   : > { %v4248_v47 = vpop.permute.xlu1 %4247  ;;  %v8453_v49 = vpop.permute.xlu0 %4995 }
 0x5be   : > { %v4296_v38 = vsel %vm564_vm5, %v4295_v57, %v4248_v47  ;;  %v3017_v57 = vcombine.high %v8989_v60, %v8837_v53 }
 0x5bf   : > { %3565 = vrot.lane.b32.xlu1 %v3518_v6, %s5474_s9  ;;  %4761 = vrot.lane.b32.xlu0 %v4707_v41, %s5476_s16  ;;  %v4297_v37 = vsel %vm566_vm6, %v4296_v38, %v4252_v54  ;;  %v3265_v54 = vcombine.high %v8194_v36, %v8837_v53 }
 0x5c1   : > { %v8463_v13 = vpop.permute.xlu1 %4729  ;;  %v8465_v42 = vpop.permute.xlu0 %4271 }
 0x5c3   : > { %4043 = vrot.lane.b32.xlu1 %v3989_v29, %s5476_s16  ;;  %5015 = vrot.lane.b32.xlu0 %v4961_v35, %s5476_s16 }
 0x5c5   : > { %v8473_v22 = vpop.permute.xlu1 %4983  ;;  %v8475_v24 = vpop.permute.xlu0 %4749 }
 0x5c7   : > { %3319 = vrot.lane.b32.xlu1 %v3265_v54, %s5476_s16  ;;  %4987 = vrot.lane.b32.xlu0 %v4893_v23, %s5476_s16 }
 0x5c9   : > { %v3268_v11 = vpop.permute.xlu1 %3267  ;;  %v8483_v45 = vpop.permute.xlu0 %5003 }
 0x5cb   : > { %3573 = vrot.lane.b32.xlu1 %v3519_v17, %s5476_s16  ;;  %3039 = vrot.lane.b32.xlu0 %v2945_v8, %s5475_s8  ;;  %s5245_s8 = sshll.u32 %s5616_s17, 3 }
 0x5cc   : > { %s296_s18 = scalar_lea.vmem [#allocation8], %s5245_s8 }
 0x5cd   : > { %v3522_v36 = vpop.permute.xlu1 %3521  ;;  %v8493_v1 = vpop.permute.xlu0 %4023  ;;  %s5167_s15 = sshll.u32 %s296_s18, 4  ;;  %s5168_s15 = int_to_ptr.vmem [resolvable:$true] %s5167_s15 }
 0x5ce   : > { %s5395_s23 = scalar_lea.vmem %s5168_s15, 128  ;;  %p5402_p5 = scmp.lt.s32.totalorder %s5168_s15, %s5400_s19 }
 0x5cf   : > { %3071 = vrot.lane.b32.xlu1 %v3017_v57, %s5476_s16  ;;  %3043 = vrot.lane.b32.xlu0 %v2949_v18, %s5476_s16  ;;  %s5258_s16 = sshll.u32 %s5540_s28, 7  ;;  %p5396_p11 = scmp.ne.s32.totalorder %s5168_s15, %s5395_s23 }
 0x5d0   : > { %s5165_s12 = scalar_lea.hbm %s8727_s7, %s5258_s16  ;;  %s5401_s28 = scalar_lea.vmem %s5400_s19, 256 }
 0x5d1   : > { %v4000_v32 = vpop.permute.xlu1 %3999  ;;  %v8510_v53 = vpop.permute.xlu0 %4279  ;;  %p5397_p13 = pnand %p5396_p11, %p8998_p12  ;;  %p5403_p7 = scmp.lt.s32.totalorder %s5401_s28, %s5395_s23 }
 0x5d2   : > { %v4048_v27 = vsel %vm564_vm5, %v4047_v62, %v4000_v32  ;;  %v8991_v62 = vld [vmem:[#allocation46_spill] sm:$0xff] }
 0x5d3   : > { %5128 = vperm.xlu1 %5322, %v5125_v50   ;;  %5136 = vperm.xlu0 %5321, %v5133_v48   ;;  %v4049_v30 = vsel %vm566_vm6, %v4048_v27, %v8363_v59  ;;  %v3322_v32 = vsel %vm560_vm3, %v8991_v62, %v3268_v11  ;;  %v8992_v27 = vld [vmem:[#allocation23_spill] sm:$0xff]  ;;  %p5398_p4 = pneg %p5397_p13  ;;  %p5404_p8 = por %p5403_p7, %p5402_p5 }
 0x5d5   : > { %v4256_v47 = vpop.permute.xlu1 %4255  ;;  %v8515_v6 = vpop.permute.xlu0 %4757  ;;  %p5405_p10 = pnand %p5404_p8, %p5398_p4 }
 0x5d6   : > { %v4298_v41 = vsel %vm568_vm7, %v4297_v37, %v4256_v47  ;;  %v3576_v47 = vsel %vm560_vm3, %v8992_v27, %v3522_v36 }
 0x5d7   : > { %v4299_v38 = vsel %vm570_vm9, %v4298_v41, %v8380_v56 }
 0x5d9   : > { %v8520_v29 = vpop.permute.xlu1 %3307  ;;  %v8522_v26 = vpop.permute.xlu0 %5011 }
 0x5dd   : > { %v8524_v33 = vpop.permute.xlu1 %3561  ;;  %v8526_v35 = vpop.permute.xlu0 %3299 }
 0x5e1   : > { %v8528_v54 = vpop.permute.xlu1 %4039  ;;  %v8530_v31 = vpop.permute.xlu0 %3553 }
 0x5e5   : > { %v8532_v59 = vpop.permute.xlu1 %3315  ;;  %v8534_v23 = vpop.permute.xlu0 %4031 }
 0x5e9   : > { %v8536_v37 = vpop.permute.xlu1 %3569  ;;  %v8538_v17 = vpop.permute.xlu0 %4287 }
 0x5ed   : > { %v4016_v56 = vpop.permute.xlu1 %4015  ;;  %v3276_v20 = vpop.permute.xlu0 %3275 }
 0x5f1   : > { %v3546_v7 = vpop.permute.xlu1 %3545  ;;  %v3530_v43 = vpop.permute.xlu0 %3529 }
 0x5f5   : > { %v4738_v8 = vpop.permute.xlu1 %4737  ;;  %v4008_v60 = vpop.permute.xlu0 %4007 }
 0x5f6   : > { %v4050_v57 = vsel %vm568_vm7, %v4049_v30, %v4008_v60  ;;  %v3323_v30 = vsel %vm562_vm4, %v3322_v32, %v8340_v58 }
 0x5f7   : > { %v4051_v18 = vsel %vm570_vm9, %v4050_v57, %v8408_v21  ;;  %v3577_v21 = vsel %vm562_vm4, %v3576_v47, %v8353_v44  ;;  %v3324_v57 = vsel %vm564_vm5, %v3323_v30, %v3276_v20 }
 0x5f8   : > { %v4052_v10 = vsel %vm572_vm8, %v4051_v18, %v4016_v56  ;;  %v3578_v18 = vsel %vm564_vm5, %v3577_v21, %v3530_v43  ;;  %v3325_v11 = vsel %vm566_vm6, %v3324_v57, %v8390_v16 }
 0x5f9   : > { %4060 = vst [vmem:[#allocation4 + $0x48] sm:$0xf] %v4052_v10  ;;  %v4710_v50 = vpop.permute.xlu1 %4709  ;;  %v4264_v48 = vpop.permute.xlu0 %4263 }
 0x5fa   : > { %v4300_v41 = vsel %vm572_vm8, %v4299_v38, %v4264_v48  ;;  %v3579_v38 = vsel %vm566_vm6, %v3578_v18, %v8400_v4  ;;  %v4764_v30 = vsel %vm560_vm3, %v8259_v14, %v4710_v50 }
 0x5fb   : > { %v4310_v12 = vrot.slane %v4300_v41, 4 }
 0x5fd   : > { %4314 = vst [vmem:[#allocation4 + $0x48] sm:$0xf0] %v4310_v12  ;;  %v4964_v56 = vpop.permute.xlu1 %4963  ;;  %v3284_v60 = vpop.permute.xlu0 %3283 }
 0x5fe   : > { %v3326_v58 = vsel %vm568_vm7, %v3325_v11, %v3284_v60 }
 0x5ff   : > { %v3327_v43 = vsel %vm570_vm9, %v3326_v58, %v8427_v34 }
 0x601   : > { %v4268_v36 = vpop.permute.xlu1 %4267  ;;  %v3538_v10 = vpop.permute.xlu0 %3537 }
 0x602   : > { %v3580_v48 = vsel %vm568_vm7, %v3579_v38, %v3538_v10 }
 0x603   : > { %v3581_v12 = vsel %vm570_vm9, %v3580_v48, %v8437_v39  ;;  %v4765_v39 = vsel %vm562_vm4, %v4764_v30, %v8388_v28 }
 0x604   : > { %v3582_v44 = vsel %vm572_vm8, %v3581_v12, %v3546_v7 }
 0x605   : > { %3590 = vst [vmem:[#allocation4 + $0x18] sm:$0xf] %v3582_v44  ;;  %v4718_v20 = vpop.permute.xlu1 %4717  ;;  %v3292_v16 = vpop.permute.xlu0 %3291 }
 0x606   : > { %v3328_v62 = vsel %vm572_vm8, %v3327_v43, %v3292_v16  ;;  %v4766_v60 = vsel %vm564_vm5, %v4765_v39, %v4718_v20  ;;  %v4301_v16 = vsel %vm560_vm3, %v8288_v2, %v4268_v36 }
 0x607   : > { %v3338_v32 = vrot.slane %v3328_v62, 4  ;;  %v4767_v34 = vsel %vm566_vm6, %v4766_v60, %v8425_v19  ;;  %v4771_v19 = vsel %vm560_vm3, %v8240_v61, %v4738_v8 }
 0x608   : > { %v4772_v62 = vsel %vm562_vm4, %v4771_v19, %v8445_v46 }
 0x609   : > { %3342 = vst [vmem:[#allocation4 + $0x30] sm:$0xf0] %v3338_v32  ;;  %v4972_v4 = vpop.permute.xlu1 %4971  ;;  %v4992_v27 = vpop.permute.xlu0 %4991  ;;  %v4302_v32 = vsel %vm562_vm4, %v4301_v16, %v8465_v42 }
 0x60a   : > { %v5025_v39 = vsel %vm560_vm3, %v8320_v9, %v4992_v27 }
 0x60b   : > { %v5026_v42 = vsel %vm562_vm4, %v5025_v39, %v8453_v49 }
 0x60d   : > { %v4726_v47 = vpop.permute.xlu1 %4725  ;;  %v4746_v41 = vpop.permute.xlu0 %4745 }
 0x60e   : > { %v4768_v11 = vsel %vm568_vm7, %v4767_v34, %v4726_v47  ;;  %v4773_v60 = vsel %vm564_vm5, %v4772_v62, %v4746_v41 }
 0x60f   : > { %v4769_v38 = vsel %vm570_vm9, %v4768_v11, %v8463_v13  ;;  %v4774_v8 = vsel %vm566_vm6, %v4773_v60, %v8475_v24 }
 0x611   : > { %v4980_v7 = vpop.permute.xlu1 %4979  ;;  %v5000_v21 = vpop.permute.xlu0 %4999 }
 0x612   : > { %v5027_v41 = vsel %vm564_vm5, %v5026_v42, %v5000_v21 }
 0x615   : > { %v3296_v57 = vpop.permute.xlu1 %3295  ;;  %v4020_v18 = vpop.permute.xlu0 %4019 }
 0x616   : > { %v4053_v13 = vsel %vm560_vm3, %v8376_v25, %v4020_v18  ;;  %v5018_v25 = vsel %vm560_vm3, %v8276_v40, %v4964_v56  ;;  %v5028_v18 = vsel %vm566_vm6, %v5027_v41, %v8483_v45 }
 0x617   : > { %v4054_v2 = vsel %vm562_vm4, %v4053_v13, %v8493_v1  ;;  %v3329_v1 = vsel %vm560_vm3, %v8370_v63, %v3296_v57  ;;  %v5019_v49 = vsel %vm562_vm4, %v5018_v25, %v8398_v5  ;;  %v8995_v25 = vld [vmem:[#allocation31_spill] sm:$0xff] }
 0x618   : > { %v3330_v57 = vsel %vm562_vm4, %v3329_v1, %v8526_v35 }
 0x619   : > { %v4734_v10 = vpop.permute.xlu1 %4733  ;;  %v4276_v58 = vpop.permute.xlu0 %4275 }
 0x61a   : > { %v4770_v14 = vsel %vm572_vm8, %v4769_v38, %v4734_v10  ;;  %v4303_v61 = vsel %vm564_vm5, %v4302_v32, %v4276_v58 }
 0x61b   : > { %v4780_v50 = vrot.slane %v4770_v14, 4  ;;  %v4304_v9 = vsel %vm566_vm6, %v4303_v61, %v8510_v53  ;;  %v5020_v53 = vsel %vm564_vm5, %v5019_v49, %v4972_v4 }
 0x61c   : > { %v5021_v45 = vsel %vm566_vm6, %v5020_v53, %v8435_v15  ;;  %v5037_v53 = vld [vmem:[#allocation4 + $0x18] sm:$0xff] }
 0x61d   : > { %4784 = vst [vmem:[#allocation4 + $0x8] sm:$0xf0] %v4780_v50  ;;  %v3304_v28 = vpop.permute.xlu1 %3303  ;;  %v4754_v48 = vpop.permute.xlu0 %4753  ;;  %v5022_v14 = vsel %vm568_vm7, %v5021_v45, %v4980_v7 }
 0x61e   : > { %v4775_v40 = vsel %vm568_vm7, %v4774_v8, %v4754_v48  ;;  %v8996_v8 = vld [vmem:[#allocation54_spill] sm:$0xff] }
 0x621   : > { %v3558_v12 = vpop.permute.xlu1 %3557  ;;  %v5008_v44 = vpop.permute.xlu0 %5007 }
 0x622   : > { %v5029_v4 = vsel %vm568_vm7, %v5028_v18, %v5008_v44 }
 0x623   : > { %v5030_v48 = vsel %vm570_vm9, %v5029_v4, %v8522_v26 }
 0x625   : > { %v4036_v20 = vpop.permute.xlu1 %4035  ;;  %v3550_v43 = vpop.permute.xlu0 %3549 }
 0x626   : > { %v3583_v21 = vsel %vm560_vm3, %v8418_v52, %v3550_v43  ;;  %v8643_v43 = vld [vmem:[#allocation4 + $0x28] sm:$0xf] }
 0x627   : > { %v3584_v35 = vsel %vm562_vm4, %v3583_v21, %v8530_v31 }
 0x629   : > { %v4292_v47 = vpop.permute.xlu1 %4291  ;;  %v4028_v30 = vpop.permute.xlu0 %4027 }
 0x62a   : > { %v4055_v46 = vsel %vm564_vm5, %v4054_v2, %v4028_v30  ;;  %v8994_v30 = vld [vmem:[#allocation34_spill] sm:$0xff] }
 0x62b   : > { %v4056_v24 = vsel %vm566_vm6, %v4055_v46, %v8534_v23  ;;  %v4776_v23 = vsel %vm570_vm9, %v4775_v40, %v8515_v6 }
 0x62c   : > { %v4057_v10 = vsel %vm568_vm7, %v4056_v24, %v4036_v20  ;;  %v3585_v20 = vsel %vm564_vm5, %v3584_v35, %v3558_v12  ;;  %v5023_v12 = vsel %vm570_vm9, %v5022_v14, %v8473_v22  ;;  %v5039_v24 = vld [vmem:[#allocation4 + $0x48] sm:$0xff] }
 0x62d   : > { %v3312_v36 = vpop.permute.xlu1 %3311  ;;  %v4284_v27 = vpop.permute.xlu0 %4283  ;;  %v3586_v26 = vsel %vm566_vm6, %v3585_v20, %v8524_v33 }
 0x62e   : > { %v4305_v56 = vsel %vm568_vm7, %v4304_v9, %v4284_v27 }
 0x62f   : > { %v4306_v34 = vsel %vm570_vm9, %v4305_v56, %v8538_v17  ;;  %v3331_v17 = vsel %vm564_vm5, %v3330_v57, %v3304_v28  ;;  %v4058_v28 = vsel %vm570_vm9, %v4057_v10, %v8528_v54  ;;  %v5034_v57 = vld [vmem:[%s8724_s4] sm:$0xf] }
 0x630   : > { %v4307_v63 = vsel %vm572_vm8, %v4306_v34, %v4292_v47  ;;  %v3332_v6 = vsel %vm566_vm6, %v3331_v17, %v8520_v29  ;;  %v8993_v29 = vld [vmem:[#allocation12_spill] sm:$0xff] }
 0x631   : > { %v4311_v5 = vrot.slane %v4307_v63, 4  ;;  %v3566_v11 = vpop.permute.xlu1 %3565  ;;  %v4762_v38 = vpop.permute.xlu0 %4761  ;;  %v3333_v31 = vsel %vm568_vm7, %v3332_v6, %v3312_v36  ;;  %v3074_v54 = vsel %vm560_vm3, %v8993_v29, %v8191_v0  ;;  %v8997_v36 = vld [vmem:[#allocation36_spill] sm:$0xff] }
 0x632   : > { %v4777_v52 = vsel %vm572_vm8, %v4776_v23, %v4762_v38  ;;  %v3334_v16 = vsel %vm570_vm9, %v3333_v31, %v8532_v59  ;;  %v3587_v62 = vsel %vm568_vm7, %v3586_v26, %v3566_v11  ;;  %v3075_v0 = vsel %vm562_vm4, %v3074_v54, %v8994_v30 }
 0x633   : > { %4315 = vst [vmem:[#allocation4 + $0x28] sm:$0xf0] %v4311_v5  ;;  %v4781_v58 = vrot.slane %v4777_v52, 4  ;;  %v3076_v33 = vsel %vm564_vm5, %v3075_v0, %v8224_v3  ;;  %v3588_v22 = vsel %vm570_vm9, %v3587_v62, %v8536_v37  ;;  %v3086_v9 = vsel %vm570_vm9, %v8997_v36, %v8996_v8 }
 0x634   : > { %v3077_v46 = vsel %vm566_vm6, %v3076_v33, %v8995_v25 }
 0x635   : > { %4785 = vst [vmem:[#allocation4 + $0x20] sm:$0xf0] %v4781_v58  ;;  %v4044_v50 = vpop.permute.xlu1 %4043  ;;  %v5016_v44 = vpop.permute.xlu0 %5015  ;;  %v3078_v42 = vsel %vm568_vm7, %v3077_v46, %v8249_v55  ;;  %v5041_v55 = vld [vmem:[#allocation4 + $0x8] sm:$0xff] }
 0x636   : > { %v4059_v15 = vsel %vm572_vm8, %v4058_v28, %v4044_v50  ;;  %v5031_v7 = vsel %vm572_vm8, %v5030_v48, %v5016_v44 }
 0x637   : > { %4061 = vst [vmem:[#allocation4 + $0x28] sm:$0xf] %v4059_v15  ;;  %5033 = vst [vmem:[#allocation4 + $0x38] sm:$0xf] %v5031_v7 }
 0x639   : > { %v3320_v19 = vpop.permute.xlu1 %3319  ;;  %v4988_v13 = vpop.permute.xlu0 %4987 }
 0x63a   : > { %v3335_v32 = vsel %vm572_vm8, %v3334_v16, %v3320_v19  ;;  %v5024_v47 = vsel %vm572_vm8, %v5023_v12, %v4988_v13 }
 0x63b   : > { %v3339_v39 = vrot.slane %v3335_v32, 4  ;;  %5032 = vst [vmem:[#allocation4 + $0x40] sm:$0xf] %v5024_v47 }
 0x63c   : > { %v5042_v56 = vld [vmem:[#allocation4 + $0x20] sm:$0xff] }
 0x63d   : > { %3343 = vst [vmem:[#allocation4] sm:$0xf0] %v3339_v39  ;;  %v3574_v59 = vpop.permute.xlu1 %3573  ;;  %v3040_v60 = vpop.permute.xlu0 %3039 }
 0x63e   : > { %v3589_v61 = vsel %vm572_vm8, %v3588_v22, %v3574_v59  ;;  %v5044_v2 = vld [vmem:[#allocation4 + $0x38] sm:$0xf]  ;;  %v3079_v3 = vsel %vm570_vm9, %v3078_v42, %v3040_v60  ;;  %v5040_v49 = vld [vmem:[#allocation4 + $0x28] sm:$0xff] }
 0x63f   : > { %3591 = vst [vmem:[#allocation4 + $0x10] sm:$0xf] %v3589_v61  ;;  %5249 = vmatprep.subr.msk.mxu1 %vm2544_vm10, %v5044_v2 }
 0x641   : > { %v3072_v37 = vpop.permute.xlu1 %3071  ;;  %v3044_v27 = vpop.permute.xlu0 %3043 }
 0x642   : > { %v3087_v41 = vsel %vm572_vm8, %v3086_v9, %v3072_v37  ;;  %v3080_v1 = vsel %vm572_vm8, %v3079_v3, %v3044_v27  ;;  %v5043_v40 = vld [vmem:[#allocation4 + $0x40] sm:$0xf] }
 0x643   : > { %3089 = vst [vmem:[#allocation4] sm:$0xf] %v3087_v41  ;;  %3088 = vst [vmem:[#allocation4 + $0x30] sm:$0xf] %v3080_v1  ;;  %5250 = vmatpush1.msk.msra.mxu1 %vm2544_vm10, %v5043_v40 }
 0x644   : > { %5078 = vmatprep.subr.mxu1 %v5042_v56 }
 0x645   : > { %5079 = vmatpush1.msra.mxu1 %v5041_v55 }
 0x646   : > { %5080 = vmatprep.subr.mxu1 %v5040_v49  ;;  %v5038_v34 = vld [vmem:[#allocation4 + $0x10] sm:$0xff] }
 0x647   : > { %5081 = vmatpush1.msra.mxu1 %v5039_v24 }
 0x648   : > { %5082 = vmatprep.subr.mxu1 %v5038_v34 }
 0x649   : > { %5083 = vmatpush1.msra.mxu1 %v5037_v53 }
 0x64a   : > { %v5036_v21 = vld [vmem:[#allocation4] sm:$0xff]  ;;  %v5035_v63 = vld [vmem:[#allocation4 + $0x30] sm:$0xff] }
 0x64b   : > { %5084 = vmatprep.subr.mxu1 %v5036_v21 }
 0x64c   : > { %5085 = vmatpush1.msra.mxu1 %v5035_v63 }
 0x64d   : > { %5251 = vmatmul.mubr.msk.f32.vlgmr.msra.gmra.mxu1 %vm2540_vm11, %v5034_v57 }
 0x64e   : > { %v5129_v18 = vpop.permute.xlu1 %5128  ;;  %v5137_v23 = vpop.permute.xlu0 %5136 }
 0x70d   : > { %v5120_v5 = vpop.f32.mrf.mxu1 }
 0x70e   : > { %v5131_v11 = vmul.f32 %v5129_v18, %v5120_v5 }
 0x70f   : > { %v5122_v38 = vpop.f32.mrf.mxu1 }
 0x710   : > { %v5139_v17 = vadd.f32 %v5137_v23, %v5131_v11  ;;  %v5132_v4 = vmul.f32 %v5129_v18, %v5122_v38 }
 0x712   : > { %v5141_v52 = vadd.f32 %v5139_v17, %v8543_v51  ;;  %v5140_v10 = vadd.f32 %v5137_v23, %v5132_v4 }
 0x714   : > { %v5143_v35 = vmax.f32 %v5141_v52, 0.0  ;;  %v5142_v58 = vadd.f32 %v5140_v10, %v8643_v43 }
 0x716   : > { %v5144_v45 = vmax.f32 %v5142_v58, 0.0  ;;  %v5145_v14 = vmin.f32 %v5143_v35, 20.0 }
 0x718   : > { %v5146_v6 = vmin.f32 %v5144_v45, 20.0 }
 0x71a   : > { %v5149_v50 = vcombine.low %v5145_v14, %v5146_v6 }
 0x71c   : > { %5151 = vst [vmem:[%s296_s18] sm:$0xff] %v5149_v50 }
 0x71d   : > { %5408 = shalt.err (!%p5405_p10)
}
 0x71e   : > { %s5409_s21 = scalar_lea.hbm %s5165_s12, 128  ;;  %s5413_s8 = scalar_lea.hbm %s8727_s7, 256 }
 0x71f   : > { %p5410_p0 = scmp.ne.s32.totalorder %s5165_s12, %s5409_s21  ;;  %p5414_p1 = scmp.lt.s32.totalorder %s5165_s12, %s8727_s7 }
 0x720   : > { %p5415_p3 = scmp.lt.s32.totalorder %s5413_s8, %s5409_s21 }
 0x721   : > { %p5411_p2 = pnand %p5410_p0, %p8998_p12 }
 0x722   : > { %p5416_p6 = por %p5415_p3, %p5414_p1 }
 0x723   : > { %p5412_p9 = pneg %p5411_p2 }
 0x725   : > { %p5417_p11 = pnand %p5416_p6, %p5412_p9 }
 0x727   : > { %5420 = shalt.err (!%p5417_p11)
}
 0x728   : > { %5261 = dma.vmem_to_hbm [thread:$0]  (%p8998_p12), %s5168_s15, 128, %s5165_s12, %s5153_s22  }
 0x729 PF: > { %s5179_s20 = sand.u32 1, %s5447_s24   ;;  %p8999_p13 = scmp.ne.s32.totalorder %s8804_s14, 0 }
 0x72a   : > { %p9000_p4 = scmp.ge.s32.totalorder %s5459_s27, 2  ;;  %s5180_s11 = scalar_lea.sflag [#allocation7], %s5179_s20 }
 0x72c   : > { %p5268_p5 = pnand %p9000_p4, %p8999_p13 }
 0x72e   : > { %p5269_p7 = pneg %p5268_p5 }
 0x730   : > { %5442 = dma.done.wait (%p5269_p7), %s5180_s11, 128  }
 0x731   : > { %5444 = vsyncadd (%p5269_p7), %s5180_s11, 4294967168  ;;  %p20_p8 = scmp.ge.s32.totalorder %s5544_s30, 4   ;;  %s9001_s24 = smov %s5451_s25 }
 0x732   : > { %s9002_s25 = smov %s5455_s26  ;;  %s9003_s26 = smov %s5556_s10 }
 0x733   : > { %s9004_s27 = smov %s5544_s30  ;;  %22 = sbr.rel (!%p20_p8) target bundleno = 5 (0x5), region = 93 }
 0x738   :  { %5185 = vsyncpa [#allocation6], 1 }
 0x739   :  { %5187 = vsyncpa [#allocation6 + $0x1], 1 }
 0x73a   :  { %5188 = vsyncpa [#allocation7], 1 }
 0x73b   :  { %5190 = vsyncpa [#allocation7 + $0x1], 1 }

</bundles_post_ra>
